<compile_context>
chip_gen: v5e
topology: v5e:2x2
jax: 0.10.0
libtpu: 0.0.40
codegen_flags: <defaults>
</compile_context>

<pallas_src>
import functools

import jax
import jax.numpy as jnp
from jax import lax
from jax.experimental import pallas as pl
from jax.experimental.pallas import tpu as pltpu


def _round_up(x, m):
    return ((x + m - 1) // m) * m


def _supcon_kernel(feat_ref, lab_ref, mfeat_ref, mlab_ref, out_ref,
                   m_sc, s_sc, dot_sc, cnt_sc, *,
                   temperature, base_temperature, self_contrast, m_valid):
    bi = pl.program_id(0)                  # anchor-tile index  (parallel)
    mi = pl.program_id(1)                  # bank-tile index    (reduction)

    b_tile = feat_ref.shape[0]
    m_tile = mfeat_ref.shape[0]

    @pl.when(mi == 0)
    def _():
        m_sc[...] = jnp.full_like(m_sc, -1e30)   # running row-max
        s_sc[...] = jnp.zeros_like(s_sc)         # running sum exp(adc - max)
        dot_sc[...] = jnp.zeros_like(dot_sc)     # running sum(mask * adc)
        cnt_sc[...] = jnp.zeros_like(cnt_sc)     # running sum(mask)

    # anchor_dot_contrast tile [B_tile, M_tile]; anchors were pre-scaled by
    # 1/temperature on the host, so no per-element divide here.  bf16 -> f32 acc.
    adc = lax.dot_general(
        feat_ref[...], mfeat_ref[...], (((1,), (1,)), ((), ())),
        preferred_element_type=jnp.float32)

    # Positive-pair mask from the label vectors (tiny bf16 contraction; exact
    # for {0,1} one-/multi-hot labels, and we only need the sign).
    label_dot = lax.dot_general(
        lab_ref[...], mlab_ref[...], (((1,), (1,)), ((), ())),
        preferred_element_type=jnp.float32)
    mask = (label_dot > 0.0).astype(jnp.float32)          # padded cols/rows -> 0

    # Column / row ids built from small iotas, broadcast in the compares.
    col_g = mi * m_tile + lax.broadcasted_iota(jnp.int32, (1, m_tile), 1)
    valid = col_g < m_valid                                # (1, M_tile) real cols
    if self_contrast:
        row_g = bi * b_tile + lax.broadcasted_iota(jnp.int32, (b_tile, 1), 0)
        not_self = row_g != col_g                          # logits_mask diagonal
        mask = mask * not_self.astype(jnp.float32)
        exp_keep = jnp.logical_and(valid, not_self)
    else:
        exp_keep = valid

    # ---- online log-sum-exp over the bank axis ---------------------------
    neg_big = jnp.float32(-1e30)
    tile_max = jnp.max(jnp.where(valid, adc, neg_big), axis=1, keepdims=True)
    m_new = jnp.maximum(m_sc[...], tile_max)                       # [B_tile, 1]
    p = jnp.exp(jnp.where(exp_keep, adc, neg_big) - m_new)         # [B_tile, M_tile]
    s_sc[...] = s_sc[...] * jnp.exp(m_sc[...] - m_new) + jnp.sum(
        p, axis=1, keepdims=True)
    m_sc[...] = m_new

    # ---- positive-pair accumulators (no log_prob materialization) --------
    dot_sc[...] += jnp.sum(mask * adc, axis=1, keepdims=True)
    cnt_sc[...] += jnp.sum(mask, axis=1, keepdims=True)

    # ---- finalize once the whole bank has been streamed ------------------
    @pl.when(mi == pl.num_programs(1) - 1)
    def _():
        # sum_j mask*(adc - gmax - log(sum exp(adc - gmax))) / cnt
        #   = dot/cnt - gmax - log(s)        (the shift gmax cancels exactly)
        # TODO(synk): cnt==0 (anchor with no positives) yields NaN, matching
        # the PyTorch reference; padded anchor rows are discarded in the wrapper.
        mean_log_prob_pos = dot_sc[...] / cnt_sc[...] - m_sc[...] - jnp.log(s_sc[...])
        loss_row = (-(temperature / base_temperature)) * mean_log_prob_pos
        out_ref[...] = jnp.broadcast_to(loss_row, out_ref.shape)   # lane-dense


def supcon_loss(features, labels, m_features, m_labels, *,
                temperature=0.07, base_temperature=0.07, self_contrast=True,
                b_tile=128, m_tile=512):
    B, D = features.shape
    M = m_features.shape[0]
    C = labels.shape[1]

    # Clamp tiles for small inputs (still multiples of 128).
    b_tile = min(b_tile, _round_up(B, 128))
    m_tile = min(m_tile, _round_up(M, 128))

    # Fold 1/temperature into the anchors, quantize features AND labels to
    # bf16 (fast MXU path, halves streamed-bank HBM bytes on both streams;
    # {0,1} labels are exact in bf16 and only the sign of the dot is used).
    inv_t = jnp.float32(1.0 / float(temperature))
    feat_q = (features.astype(jnp.float32) * inv_t).astype(jnp.bfloat16)
    mfeat_q = m_features.astype(jnp.bfloat16)
    lab_q = labels.astype(jnp.bfloat16)
    mlab_q = m_labels.astype(jnp.bfloat16)

    # Pad to lane/sublane-aligned tiles.
    b_pad = _round_up(B, b_tile)
    m_pad = _round_up(M, m_tile)
    d_pad = _round_up(D, 128)
    c_pad = _round_up(C, 128)
    feat_q = jnp.pad(feat_q, ((0, b_pad - B), (0, d_pad - D)))
    lab_q = jnp.pad(lab_q, ((0, b_pad - B), (0, c_pad - C)))
    mfeat_q = jnp.pad(mfeat_q, ((0, m_pad - M), (0, d_pad - D)))
    mlab_q = jnp.pad(mlab_q, ((0, m_pad - M), (0, c_pad - C)))

    kernel = functools.partial(
        _supcon_kernel,
        temperature=float(temperature),
        base_temperature=float(base_temperature),
        self_contrast=bool(self_contrast),
        m_valid=int(M),
    )

    out = pl.pallas_call(
        kernel,
        out_shape=jax.ShapeDtypeStruct((b_pad, 128), jnp.float32),
        grid_spec=pltpu.PrefetchScalarGridSpec(
            num_scalar_prefetch=0,
            grid=(b_pad // b_tile, m_pad // m_tile),
            in_specs=[
                pl.BlockSpec((b_tile, d_pad), lambda bi, mi: (bi, 0)),   # anchors
                pl.BlockSpec((b_tile, c_pad), lambda bi, mi: (bi, 0)),   # labels
                pl.BlockSpec((m_tile, d_pad), lambda bi, mi: (mi, 0)),   # bank feats
                pl.BlockSpec((m_tile, c_pad), lambda bi, mi: (mi, 0)),   # bank labels
            ],
            out_specs=pl.BlockSpec((b_tile, 128), lambda bi, mi: (bi, 0)),
            scratch_shapes=[pltpu.VMEM((b_tile, 1), jnp.float32)] * 4,
        ),
        compiler_params=pltpu.CompilerParams(
            dimension_semantics=("parallel", "arbitrary")),
    )(feat_q, lab_q, mfeat_q, mlab_q)

    per_anchor = out[:B, 0]          # discard padded-anchor rows, lane 0 only
    return jnp.mean(per_anchor)


def _reference_supcon(features, labels, m_features, m_labels, *,
                      temperature=0.07, base_temperature=0.07,
                      self_contrast=True):
    """Pure-JAX reference mirroring the PyTorch forward (same bf16 feature
    quantization as the kernel so comparison is apples-to-apples)."""
    B = features.shape[0]
    inv_t = 1.0 / float(temperature)
    fq = (features.astype(jnp.float32) * inv_t).astype(jnp.bfloat16).astype(jnp.float32)
    mq = m_features.astype(jnp.bfloat16).astype(jnp.float32)

    mask = (labels @ m_labels.T > 0).astype(jnp.float32)
    adc = jnp.dot(fq, mq.T, precision=lax.Precision.HIGHEST)
    logits = adc - jnp.max(adc, axis=1, keepdims=True)
    logits_mask = jnp.ones_like(mask).at[jnp.arange(B), jnp.arange(B)].set(0.0)
    if self_contrast:
        mask = mask * logits_mask
        exp_logits = jnp.exp(logits) * logits_mask
    else:
        exp_logits = jnp.exp(logits)
    log_prob = logits - jnp.log(exp_logits.sum(1, keepdims=True))
    mean_log_prob_pos = (mask * log_prob).sum(1) / mask.sum(1)
    loss = -(temperature / base_temperature) * mean_log_prob_pos
    return loss.mean()


if __name__ == "__main__":
    # Small but non-trivial: memory bank spans two M tiles (exercises the
    # online-softmax accumulation and the padded-column masking).
    B, M, D, C = 32, 640, 64, 4

    key = jax.random.PRNGKey(0)
    kf, km = jax.random.split(key)

    features = jax.random.normal(kf, (B, D), dtype=jnp.float32)
    features = features / jnp.linalg.norm(features, axis=1, keepdims=True)
    m_features = jax.random.normal(km, (M, D), dtype=jnp.float32)
    m_features = m_features / jnp.linalg.norm(m_features, axis=1, keepdims=True)

    # Deterministic one-hot labels; every anchor has positives in the bank.
    labels = jax.nn.one_hot(jnp.arange(B) % C, C, dtype=jnp.float32)
    m_labels = jax.nn.one_hot(jnp.arange(M) % C, C, dtype=jnp.float32)

    loss = supcon_loss(features, labels, m_features, m_labels)
    jax.block_until_ready(loss)

    ref = _reference_supcon(features, labels, m_features, m_labels)
    assert jnp.allclose(loss, ref, rtol=1e-4, atol=1e-4), (loss, ref)

    print("KERNEL_OK")
</pallas_src>

<mosaic_0001>
module attributes {stable_mosaic.version = 11 : i64} {
  func.func @_supcon_kernel(%arg0: i32, %arg1: i32, %arg2: memref<128x128xbf16, #tpu.memory_space<vmem>>, %arg3: memref<128x128xbf16, #tpu.memory_space<vmem>>, %arg4: memref<512x128xbf16, #tpu.memory_space<vmem>>, %arg5: memref<512x128xbf16, #tpu.memory_space<vmem>>, %arg6: memref<128x128xf32, #tpu.memory_space<vmem>>, %arg7: memref<128x1xf32, #tpu.memory_space<vmem>>, %arg8: memref<128x1xf32, #tpu.memory_space<vmem>>, %arg9: memref<128x1xf32, #tpu.memory_space<vmem>>, %arg10: memref<128x1xf32, #tpu.memory_space<vmem>>) attributes {dimension_semantics = [#tpu.dimension_semantics<parallel>, #tpu.dimension_semantics<arbitrary>], iteration_bounds = array<i64: 1, 2>, scalar_prefetch = 0 : i64, scratch_operands = 4 : i64, tpu.core_type = #tpu.core_type<tc>, window_params = [{transform_indices = @transform_0, window_bounds = array<i64: 128, 128>}, {transform_indices = @transform_1, window_bounds = array<i64: 128, 128>}, {transform_indices = @transform_2, window_bounds = array<i64: 512, 128>}, {transform_indices = @transform_3, window_bounds = array<i64: 512, 128>}, {transform_indices = @transform_4, window_bounds = array<i64: 128, 128>}]} {
    %c0_i32 = arith.constant 0 : i32
    %0 = arith.cmpi eq, %arg1, %c0_i32 : i32
    %1 = arith.extui %0 : i1 to i32
    %c0_i32_0 = arith.constant 0 : i32
    %2 = arith.cmpi ne, %1, %c0_i32_0 : i32
    scf.if %2 {
      %cst_35 = arith.constant -1.000000e+30 : f32
      %68 = vector.broadcast %cst_35 : f32 to vector<128x1xf32>
      %c0_36 = arith.constant 0 : index
      %c0_37 = arith.constant 0 : index
      %69 = vector.load %arg7[%c0_36, %c0_37] : memref<128x1xf32, #tpu.memory_space<vmem>>, vector<128x1xf32>
      tpu.vector_store %arg7[%c0_36, %c0_37], %68 {strides = array<i32>} : memref<128x1xf32, #tpu.memory_space<vmem>>, vector<128x1xf32>,
      %cst_38 = arith.constant 0.000000e+00 : f32
      %70 = vector.broadcast %cst_38 : f32 to vector<128x1xf32>
      %c0_39 = arith.constant 0 : index
      %c0_40 = arith.constant 0 : index
      %71 = vector.load %arg8[%c0_39, %c0_40] : memref<128x1xf32, #tpu.memory_space<vmem>>, vector<128x1xf32>
      tpu.vector_store %arg8[%c0_39, %c0_40], %70 {strides = array<i32>} : memref<128x1xf32, #tpu.memory_space<vmem>>, vector<128x1xf32>,
      %cst_41 = arith.constant 0.000000e+00 : f32
      %72 = vector.broadcast %cst_41 : f32 to vector<128x1xf32>
      %c0_42 = arith.constant 0 : index
      %c0_43 = arith.constant 0 : index
      %73 = vector.load %arg9[%c0_42, %c0_43] : memref<128x1xf32, #tpu.memory_space<vmem>>, vector<128x1xf32>
      tpu.vector_store %arg9[%c0_42, %c0_43], %72 {strides = array<i32>} : memref<128x1xf32, #tpu.memory_space<vmem>>, vector<128x1xf32>,
      %cst_44 = arith.constant 0.000000e+00 : f32
      %74 = vector.broadcast %cst_44 : f32 to vector<128x1xf32>
      %c0_45 = arith.constant 0 : index
      %c0_46 = arith.constant 0 : index
      %75 = vector.load %arg10[%c0_45, %c0_46] : memref<128x1xf32, #tpu.memory_space<vmem>>, vector<128x1xf32>
      tpu.vector_store %arg10[%c0_45, %c0_46], %74 {strides = array<i32>} : memref<128x1xf32, #tpu.memory_space<vmem>>, vector<128x1xf32>,
    } else {
    }
    %c0 = arith.constant 0 : index
    %c0_1 = arith.constant 0 : index
    %3 = vector.load %arg2[%c0, %c0_1] : memref<128x128xbf16, #tpu.memory_space<vmem>>, vector<128x128xbf16>
    %c0_2 = arith.constant 0 : index
    %c0_3 = arith.constant 0 : index
    %4 = vector.load %arg4[%c0_2, %c0_3] : memref<512x128xbf16, #tpu.memory_space<vmem>>, vector<512x128xbf16>
    %cst = arith.constant dense<0.000000e+00> : vector<128x512xf32>
    %5 = tpu.matmul %3, %4, %cst {dimension_numbers = #tpu.dot_dimension_numbers<[1], [1], [0], [0], [0, 0, 1, 0], [], []>} : vector<128x128xbf16>, vector<512x128xbf16>, vector<128x512xf32> -> vector<128x512xf32>
    %c0_4 = arith.constant 0 : index
    %c0_5 = arith.constant 0 : index
    %6 = vector.load %arg3[%c0_4, %c0_5] : memref<128x128xbf16, #tpu.memory_space<vmem>>, vector<128x128xbf16>
    %c0_6 = arith.constant 0 : index
    %c0_7 = arith.constant 0 : index
    %7 = vector.load %arg5[%c0_6, %c0_7] : memref<512x128xbf16, #tpu.memory_space<vmem>>, vector<512x128xbf16>
    %cst_8 = arith.constant dense<0.000000e+00> : vector<128x512xf32>
    %8 = tpu.matmul %6, %7, %cst_8 {dimension_numbers = #tpu.dot_dimension_numbers<[1], [1], [0], [0], [0, 0, 1, 0], [], []>} : vector<128x128xbf16>, vector<512x128xbf16>, vector<128x512xf32> -> vector<128x512xf32>
    %cst_9 = arith.constant 0.000000e+00 : f32
    %9 = vector.broadcast %cst_9 : f32 to vector<128x512xf32>
    %10 = arith.cmpf ogt, %8, %9 : vector<128x512xf32>
    %11 = arith.extui %10 : vector<128x512xi1> to vector<128x512xi32>
    %12 = arith.sitofp %11 : vector<128x512xi32> to vector<128x512xf32>
    %c512_i32 = arith.constant 512 : i32
    %13 = arith.muli %arg1, %c512_i32 : i32
    %14 = tpu.iota {dimensions = array<i32: 1>} : vector<1x512xi32>
    %15 = vector.broadcast %13 : i32 to vector<1x512xi32>
    %16 = arith.addi %15, %14 : vector<1x512xi32>
    %c640_i32 = arith.constant 640 : i32
    %17 = vector.broadcast %c640_i32 : i32 to vector<1x512xi32>
    %18 = arith.cmpi slt, %16, %17 : vector<1x512xi32>
    %c128_i32 = arith.constant 128 : i32
    %19 = arith.muli %arg0, %c128_i32 : i32
    %20 = tpu.iota {dimensions = array<i32: 0>} : vector<128x1xi32>
    %21 = vector.broadcast %19 : i32 to vector<128x1xi32>
    %22 = arith.addi %21, %20 : vector<128x1xi32>
    %23 = vector.broadcast %22 : vector<128x1xi32> to vector<128x512xi32>
    %24 = vector.broadcast %16 : vector<1x512xi32> to vector<128x512xi32>
    %25 = arith.cmpi ne, %23, %24 : vector<128x512xi32>
    %26 = arith.extui %25 : vector<128x512xi1> to vector<128x512xi32>
    %27 = arith.sitofp %26 : vector<128x512xi32> to vector<128x512xf32>
    %28 = arith.mulf %12, %27 : vector<128x512xf32>
    %29 = vector.broadcast %18 : vector<1x512xi1> to vector<128x512xi1>
    %30 = arith.andi %29, %25 : vector<128x512xi1>
    %cst_10 = arith.constant -1.000000e+30 : f32
    %31 = vector.shape_cast %18 : vector<1x512xi1> to vector<1x512xi1>
    %32 = vector.broadcast %31 : vector<1x512xi1> to vector<128x512xi1>
    %33 = vector.broadcast %cst_10 : f32 to vector<128x512xf32>
    %34 = arith.select %32, %5, %33 : vector<128x512xi1>, vector<128x512xf32>
    %cst_11 = arith.constant dense<0xFF800000> : vector<128xf32>
    %35 = vector.multi_reduction <maximumf>, %34, %cst_11 [1] : vector<128x512xf32> to vector<128xf32>
    %36 = vector.shape_cast %35 : vector<128xf32> to vector<128x1xf32>
    %c0_12 = arith.constant 0 : index
    %c0_13 = arith.constant 0 : index
    %37 = vector.load %arg7[%c0_12, %c0_13] : memref<128x1xf32, #tpu.memory_space<vmem>>, vector<128x1xf32>
    %38 = arith.maximumf %37, %36 : vector<128x1xf32>
    %cst_14 = arith.constant -1.000000e+30 : f32
    %39 = vector.broadcast %cst_14 : f32 to vector<128x512xf32>
    %40 = arith.select %30, %5, %39 : vector<128x512xi1>, vector<128x512xf32>
    %41 = vector.broadcast %38 : vector<128x1xf32> to vector<128x512xf32>
    %42 = arith.subf %40, %41 : vector<128x512xf32>
    %43 = math.exp %42 : vector<128x512xf32>
    %c0_15 = arith.constant 0 : index
    %c0_16 = arith.constant 0 : index
    %44 = vector.load %arg8[%c0_15, %c0_16] : memref<128x1xf32, #tpu.memory_space<vmem>>, vector<128x1xf32>
    %c0_17 = arith.constant 0 : index
    %c0_18 = arith.constant 0 : index
    %45 = vector.load %arg7[%c0_17, %c0_18] : memref<128x1xf32, #tpu.memory_space<vmem>>, vector<128x1xf32>
    %46 = arith.subf %45, %38 : vector<128x1xf32>
    %47 = math.exp %46 : vector<128x1xf32>
    %48 = arith.mulf %44, %47 : vector<128x1xf32>
    %cst_19 = arith.constant dense<0.000000e+00> : vector<128xf32>
    %49 = vector.multi_reduction <add>, %43, %cst_19 [1] : vector<128x512xf32> to vector<128xf32>
    %50 = vector.shape_cast %49 : vector<128xf32> to vector<128x1xf32>
    %51 = arith.addf %48, %50 : vector<128x1xf32>
    %c0_20 = arith.constant 0 : index
    %c0_21 = arith.constant 0 : index
    %52 = vector.load %arg8[%c0_20, %c0_21] : memref<128x1xf32, #tpu.memory_space<vmem>>, vector<128x1xf32>
    tpu.vector_store %arg8[%c0_20, %c0_21], %51 {strides = array<i32>} : memref<128x1xf32, #tpu.memory_space<vmem>>, vector<128x1xf32>,
    %c0_22 = arith.constant 0 : index
    %c0_23 = arith.constant 0 : index
    %53 = vector.load %arg7[%c0_22, %c0_23] : memref<128x1xf32, #tpu.memory_space<vmem>>, vector<128x1xf32>
    tpu.vector_store %arg7[%c0_22, %c0_23], %38 {strides = array<i32>} : memref<128x1xf32, #tpu.memory_space<vmem>>, vector<128x1xf32>,
    %c0_24 = arith.constant 0 : index
    %c0_25 = arith.constant 0 : index
    %54 = vector.load %arg9[%c0_24, %c0_25] : memref<128x1xf32, #tpu.memory_space<vmem>>, vector<128x1xf32>
    %55 = arith.mulf %28, %5 : vector<128x512xf32>
    %cst_26 = arith.constant dense<0.000000e+00> : vector<128xf32>
    %56 = vector.multi_reduction <add>, %55, %cst_26 [1] : vector<128x512xf32> to vector<128xf32>
    %57 = vector.shape_cast %56 : vector<128xf32> to vector<128x1xf32>
    %58 = arith.addf %54, %57 : vector<128x1xf32>
    %c0_27 = arith.constant 0 : index
    %c0_28 = arith.constant 0 : index
    %59 = vector.load %arg9[%c0_27, %c0_28] : memref<128x1xf32, #tpu.memory_space<vmem>>, vector<128x1xf32>
    tpu.vector_store %arg9[%c0_27, %c0_28], %58 {strides = array<i32>} : memref<128x1xf32, #tpu.memory_space<vmem>>, vector<128x1xf32>,
    %c0_29 = arith.constant 0 : index
    %c0_30 = arith.constant 0 : index
    %60 = vector.load %arg10[%c0_29, %c0_30] : memref<128x1xf32, #tpu.memory_space<vmem>>, vector<128x1xf32>
    %cst_31 = arith.constant dense<0.000000e+00> : vector<128xf32>
    %61 = vector.multi_reduction <add>, %28, %cst_31 [1] : vector<128x512xf32> to vector<128xf32>
    %62 = vector.shape_cast %61 : vector<128xf32> to vector<128x1xf32>
    %63 = arith.addf %60, %62 : vector<128x1xf32>
    %c0_32 = arith.constant 0 : index
    %c0_33 = arith.constant 0 : index
    %64 = vector.load %arg10[%c0_32, %c0_33] : memref<128x1xf32, #tpu.memory_space<vmem>>, vector<128x1xf32>
    tpu.vector_store %arg10[%c0_32, %c0_33], %63 {strides = array<i32>} : memref<128x1xf32, #tpu.memory_space<vmem>>, vector<128x1xf32>,
    %c1_i32 = arith.constant 1 : i32
    %65 = arith.cmpi eq, %arg1, %c1_i32 : i32
    %66 = arith.extui %65 : i1 to i32
    %c0_i32_34 = arith.constant 0 : i32
    %67 = arith.cmpi ne, %66, %c0_i32_34 : i32
    scf.if %67 {
      %c0_35 = arith.constant 0 : index
      %c0_36 = arith.constant 0 : index
      %68 = vector.load %arg9[%c0_35, %c0_36] : memref<128x1xf32, #tpu.memory_space<vmem>>, vector<128x1xf32>
      %c0_37 = arith.constant 0 : index
      %c0_38 = arith.constant 0 : index
      %69 = vector.load %arg10[%c0_37, %c0_38] : memref<128x1xf32, #tpu.memory_space<vmem>>, vector<128x1xf32>
      %70 = arith.divf %68, %69 : vector<128x1xf32>
      %c0_39 = arith.constant 0 : index
      %c0_40 = arith.constant 0 : index
      %71 = vector.load %arg7[%c0_39, %c0_40] : memref<128x1xf32, #tpu.memory_space<vmem>>, vector<128x1xf32>
      %72 = arith.subf %70, %71 : vector<128x1xf32>
      %c0_41 = arith.constant 0 : index
      %c0_42 = arith.constant 0 : index
      %73 = vector.load %arg8[%c0_41, %c0_42] : memref<128x1xf32, #tpu.memory_space<vmem>>, vector<128x1xf32>
      %74 = math.log %73 : vector<128x1xf32>
      %75 = arith.subf %72, %74 : vector<128x1xf32>
      %cst_43 = arith.constant -1.000000e+00 : f32
      %76 = vector.broadcast %cst_43 : f32 to vector<128x1xf32>
      %77 = arith.mulf %76, %75 : vector<128x1xf32>
      %78 = vector.shape_cast %77 : vector<128x1xf32> to vector<128x1xf32>
      %79 = vector.broadcast %78 : vector<128x1xf32> to vector<128x128xf32>
      %c0_44 = arith.constant 0 : index
      %c0_45 = arith.constant 0 : index
      %80 = vector.load %arg6[%c0_44, %c0_45] : memref<128x128xf32, #tpu.memory_space<vmem>>, vector<128x128xf32>
      tpu.vector_store %arg6[%c0_44, %c0_45], %79 {strides = array<i32>} : memref<128x128xf32, #tpu.memory_space<vmem>>, vector<128x128xf32>,
    } else {
    }
    return
  }
  func.func @transform_0(%arg0: i32, %arg1: i32) -> (i32, i32) {
    %c0_i32 = arith.constant 0 : i32
    %c0_i32_0 = arith.constant 0 : i32
    return %arg0, %c0_i32 : i32, i32
  }
  func.func @transform_1(%arg0: i32, %arg1: i32) -> (i32, i32) {
    %c0_i32 = arith.constant 0 : i32
    %c0_i32_0 = arith.constant 0 : i32
    return %arg0, %c0_i32 : i32, i32
  }
  func.func @transform_2(%arg0: i32, %arg1: i32) -> (i32, i32) {
    %c0_i32 = arith.constant 0 : i32
    %c0_i32_0 = arith.constant 0 : i32
    return %arg1, %c0_i32 : i32, i32
  }
  func.func @transform_3(%arg0: i32, %arg1: i32) -> (i32, i32) {
    %c0_i32 = arith.constant 0 : i32
    %c0_i32_0 = arith.constant 0 : i32
    return %arg1, %c0_i32 : i32, i32
  }
  func.func @transform_4(%arg0: i32, %arg1: i32) -> (i32, i32) {
    %c0_i32 = arith.constant 0 : i32
    %c0_i32_0 = arith.constant 0 : i32
    return %arg0, %c0_i32 : i32, i32
  }
}

</mosaic_0001>

<bundles_post_ra>
// kernel: tpu_custom_call.1
= control target key start
LH: loop header
LB: loop body
LE: loop exit
PB: predicated region body
PF: predicated region fallthrough
CT: control target
= control target key end

     0   :  { %s7737_s0 = inlined_call_operand.hbm [shape: bf16[128,128], index: 0, kind: input, shape index: {}]   ;;  %s7738_s1 = inlined_call_operand.hbm [shape: bf16[128,128], index: 1, kind: input, shape index: {}]   ;;  %s7739_s2 = inlined_call_operand.hbm [shape: bf16[1024,128], index: 2, kind: input, shape index: {}]   ;;  %s7740_s3 = inlined_call_operand.hbm [shape: bf16[1024,128], index: 3, kind: input, shape index: {}]   ;;  %s7741_s4 = inlined_call_operand.hbm [shape: f32[128,128], index: 4, kind: output, shape index: {}]  }
   0x1   :  { %8025 = sst [smem:[#allocation137_spill]] %s7737_s0 }
   0x2   :  { %8026 = sst [smem:[#allocation138_spill]] %s7739_s2 }
   0x3   :  { %9 = vsyncpa [#allocation7], 0 }
   0x4   :  { %10 = vsyncpa [#allocation10], 0 }
   0x5   :  { %11 = vsyncpa [#allocation8], 0  ;;  %s4757_s15 = smov 0   ;;  %s4759_s16 = smov 0  }
   0x6   :  { %s4761_s17 = smov 0   ;;  %s4763_s18 = smov 0  }
   0x7   :  { %s4765_s19 = smov 0   ;;  %s4767_s20 = smov 0  }
   0x8 LB: > { %s4786_s21 = sadd.s32 4294967295, %s4718_s20   ;;  %p101_p0 = scmp.ne.s32.totalorder %s4702_s16, %s4698_s15  ;;  %s4718_s20 = sphi %s4767_s20, %s17_s20   ;;  %s4714_s19 = sphi %s4765_s19, %s8710_s19   ;;  %s4710_s18 = sphi %s4763_s18, %s8709_s18   ;;  %s4706_s17 = sphi %s4761_s17, %s8708_s17   ;;  %s4702_s16 = sphi %s4759_s16, %s8707_s16   ;;  %s4698_s15 = sphi %s4757_s15, %s8706_s15  }
   0x9   : > { %p102_p1 = scmp.eq.s32.totalorder %s4786_s21, 0  ;;  %p3629_p2 = scmp.ge.s32.totalorder %s4718_s20, 1 }
   0xa   : > { %p164_p3 = scmp.lt.s32.totalorder %s4718_s20, 3  ;;  %s8028_s0 = sld [smem:[#allocation137_spill]] }
   0xb   : > { %p4794_p4 = por %p102_p1, %p101_p0  ;;  %s4720_s27 = smov [#allocation6]  }
   0xc   : > { %p4801_p5 = pnand %p3629_p2, %p164_p3  ;;  %s180_s28 = sshll.u32 %s4720_s27, 4  ;;  %s181_s28 = int_to_ptr.vmem [resolvable:$true] %s180_s28 }
   0xd   : > { %s7742_s30 = smov 64   ;;  %s4722_s5 = smov 4  }
   0xe   : > { %p4197_p6 = pneg %p4801_p5  ;;  %s26_s6 = sadd.s32 1, %s4714_s19 }
   0xf   : > { %p27_p8 = scmp.ge.s32.totalorder %s26_s6, 2  ;;  %s88_s7 = sadd.s32 1, %s4706_s17 }
  0x10   : > { %s178_s25 = sshll.u32 %s8028_s0, 4  ;;  %p4809_p7 = pnand %p4197_p6, %p102_p1  ;;  %s179_s25 = int_to_ptr.hbm [resolvable:$true] %s178_s25 }
  0x11   : > { %p95_p9 = scmp.ne.s32.totalorder %s4706_s17, %s4702_s16  ;;  %p96_p10 = scmp.eq.s32.totalorder %s4718_s20, 0 }
  0x12   : > { %4200 = dma.hbm_to_vmem [thread:$0]  (!%p4809_p7), %s179_s25, 1024, %s181_s28, [#allocation7], %s7742_s30, %s7742_s30, %s4722_s5  }
  0x13   : > { %s8712_s6 = smov (%p27_p8, %s26_s6), 0  ;;  %p4825_p11 = por %p96_p10, %p95_p9 }
  0x14   : > { %p4213_p12 = scmp.lt.s32.totalorder %s4718_s20, 2  ;;  %s85_s9 = ssub.s32 %s4714_s19, %s8712_s6 }
  0x15   : > { %s211_s10 = sand.u32 1, %s4718_s20   ;;  %p86_p13 = scmp.eq.s32.totalorder %s85_s9, 0 }
  0x16   : > { %s213_s11 = sand.u32 1, %s4706_s17   ;;  %s4099_s12 = sshll.u32 %s4714_s19, 8 }
  0x17   : > { %s4836_s13 = scalar_select %p86_p13, %s4706_s17, %s88_s7  }
  0x18   : > { %s3633_s14 = sshll.u32 %s213_s11, 8  ;;  %s8032_s2 = sld [smem:[#allocation138_spill]] }
  0x19   : > { %s215_s27 = scalar_lea.vmem [#allocation11], %s3633_s14  ;;  %p4845_p0 = pnand %p4213_p12, %p4825_p11 }
  0x1a   : > { %s223_s28 = sshll.u32 %s215_s27, 4  ;;  %s195_s11 = sshll.u32 %s7738_s1, 4  ;;  %s224_s28 = int_to_ptr.vmem [resolvable:$true] %s223_s28  ;;  %s196_s11 = int_to_ptr.hbm [resolvable:$true] %s195_s11 }
  0x1b   : > { %s212_s15 = scalar_lea.sflag [#allocation7], %s211_s10  ;;  %s8034_s23 = smov 64  }
  0x1c   : > { %s237_s7 = scalar_lea.vmem [#allocation12], %s3633_s14 }
  0x1d   : > { %s245_s10 = sshll.u32 %s237_s7, 4  ;;  %s246_s10 = int_to_ptr.vmem [resolvable:$true] %s245_s10 }
  0x1e   : > { %s220_s24 = scalar_lea.hbm %s8032_s2, %s4099_s12  ;;  %s242_s2 = scalar_lea.hbm %s7740_s3, %s4099_s12 }
  0x1f   : > { %s221_s25 = sshll.u32 %s220_s24, 4  ;;  %s4723_s24 = smov [#allocation9]   ;;  %s222_s25 = int_to_ptr.hbm [resolvable:$true] %s221_s25 }
  0x20   : > { %4207 = dma.hbm_to_vmem [thread:$0]  (!%p4845_p0), %s222_s25, 4096, %s224_s28, %s212_s15, %s8034_s23, %s8034_s23, %s4722_s5  }
  0x21   : > { %s197_s8 = sshll.u32 %s4723_s24, 4  ;;  %s243_s9 = sshll.u32 %s242_s2, 4  ;;  %s198_s8 = int_to_ptr.vmem [resolvable:$true] %s197_s8  ;;  %s244_s9 = int_to_ptr.hbm [resolvable:$true] %s243_s9 }
  0x22   : > { %4203 = dma.hbm_to_vmem [thread:$0]  (!%p4809_p7), %s196_s11, 1024, %s198_s8, [#allocation10], %s8034_s23, %s8034_s23, %s4722_s5  }
  0x23   : > { %4210 = dma.hbm_to_vmem [thread:$0]  (!%p4845_p0), %s244_s9, 4096, %s246_s10, %s212_s15, %s8034_s23, %s8034_s23, %s4722_s5  }
  0x24   : > { %257 = sbr.rel (%p4801_p5) target bundleno = 1293 (0x50d), region = 36 }
  0x29   : > { %4681 = dma.done.wait (%p102_p1), [#allocation7], 1024  }
  0x2a   : > { %4683 = vsyncadd (%p102_p1), [#allocation7], 4294966272 }
  0x2b   : > { %4685 = dma.done.wait (%p102_p1), [#allocation10], 1024  }
  0x2c   : > { %4687 = vsyncadd (%p102_p1), [#allocation10], 4294966272  ;;  %s269_s0 = sand.u32 1, %s4786_s21   ;;  %s271_s2 = sand.u32 1, %s4702_s16  }
  0x2d   : > { %s3642_s29 = sshll.u32 %s271_s2, 8  ;;  %s270_s26 = scalar_lea.sflag [#allocation7], %s269_s0 }
  0x2e   : > { %s4882_s30 = scalar_lea.vmem [#allocation11], %s3642_s29 }
  0x2f   : > { %4689 = dma.done.wait (%p4794_p4), %s270_s26, 8192  }
  0x30   : > { %4691 = vsyncadd (%p4794_p4), %s270_s26, 4294959104  ;;  %s4888_s5 = scalar_lea.vmem [#allocation12], %s3642_s29  ;;  %p3644_p2 = scmp.ne.s32.totalorder %s4710_s18, 0 }
  0x32   : > { %317 = sbr.rel (%p3644_p2) target bundleno = 120 (0x78), region = 56 }
  0x37   : > { %vm318_vm0 = vcmask 7168   ;;  %v4724_v0 = vmov -1e+30   ;;  %v4725_v1 = vmov 0.0  }
  0x38   : > { %319 = vst.msk [vmem:[#allocation2] sm:$0xff] %vm318_vm0, %v4724_v0 }
  0x39   : > { %320 = vst.msk [vmem:[#allocation2 + $0x8] sm:$0xff] %vm318_vm0, %v4724_v0 }
  0x3a   : > { %321 = vst.msk [vmem:[#allocation2 + $0x10] sm:$0xff] %vm318_vm0, %v4724_v0 }
  0x3b   : > { %322 = vst.msk [vmem:[#allocation2 + $0x18] sm:$0xff] %vm318_vm0, %v4724_v0 }
  0x3c   : > { %323 = vst.msk [vmem:[#allocation2 + $0x20] sm:$0xff] %vm318_vm0, %v4724_v0 }
  0x3d   : > { %324 = vst.msk [vmem:[#allocation2 + $0x28] sm:$0xff] %vm318_vm0, %v4724_v0 }
  0x3e   : > { %325 = vst.msk [vmem:[#allocation2 + $0x30] sm:$0xff] %vm318_vm0, %v4724_v0 }
  0x3f   : > { %326 = vst.msk [vmem:[#allocation2 + $0x38] sm:$0xff] %vm318_vm0, %v4724_v0 }
  0x40   : > { %327 = vst.msk [vmem:[#allocation2 + $0x40] sm:$0xff] %vm318_vm0, %v4724_v0 }
  0x41   : > { %328 = vst.msk [vmem:[#allocation2 + $0x48] sm:$0xff] %vm318_vm0, %v4724_v0 }
  0x42   : > { %329 = vst.msk [vmem:[#allocation2 + $0x50] sm:$0xff] %vm318_vm0, %v4724_v0 }
  0x43   : > { %330 = vst.msk [vmem:[#allocation2 + $0x58] sm:$0xff] %vm318_vm0, %v4724_v0 }
  0x44   : > { %331 = vst.msk [vmem:[#allocation2 + $0x60] sm:$0xff] %vm318_vm0, %v4724_v0 }
  0x45   : > { %332 = vst.msk [vmem:[#allocation2 + $0x68] sm:$0xff] %vm318_vm0, %v4724_v0 }
  0x46   : > { %333 = vst.msk [vmem:[#allocation2 + $0x70] sm:$0xff] %vm318_vm0, %v4724_v0 }
  0x47   : > { %334 = vst.msk [vmem:[#allocation2 + $0x78] sm:$0xff] %vm318_vm0, %v4724_v0 }
  0x48   : > { %335 = vst.msk [vmem:[#allocation3] sm:$0xff] %vm318_vm0, %v4725_v1 }
  0x49   : > { %336 = vst.msk [vmem:[#allocation3 + $0x8] sm:$0xff] %vm318_vm0, %v4725_v1 }
  0x4a   : > { %337 = vst.msk [vmem:[#allocation3 + $0x10] sm:$0xff] %vm318_vm0, %v4725_v1 }
  0x4b   : > { %338 = vst.msk [vmem:[#allocation3 + $0x18] sm:$0xff] %vm318_vm0, %v4725_v1 }
  0x4c   : > { %339 = vst.msk [vmem:[#allocation3 + $0x20] sm:$0xff] %vm318_vm0, %v4725_v1 }
  0x4d   : > { %340 = vst.msk [vmem:[#allocation3 + $0x28] sm:$0xff] %vm318_vm0, %v4725_v1 }
  0x4e   : > { %341 = vst.msk [vmem:[#allocation3 + $0x30] sm:$0xff] %vm318_vm0, %v4725_v1 }
  0x4f   : > { %342 = vst.msk [vmem:[#allocation3 + $0x38] sm:$0xff] %vm318_vm0, %v4725_v1 }
  0x50   : > { %343 = vst.msk [vmem:[#allocation3 + $0x40] sm:$0xff] %vm318_vm0, %v4725_v1 }
  0x51   : > { %344 = vst.msk [vmem:[#allocation3 + $0x48] sm:$0xff] %vm318_vm0, %v4725_v1 }
  0x52   : > { %345 = vst.msk [vmem:[#allocation3 + $0x50] sm:$0xff] %vm318_vm0, %v4725_v1 }
  0x53   : > { %346 = vst.msk [vmem:[#allocation3 + $0x58] sm:$0xff] %vm318_vm0, %v4725_v1 }
  0x54   : > { %347 = vst.msk [vmem:[#allocation3 + $0x60] sm:$0xff] %vm318_vm0, %v4725_v1 }
  0x55   : > { %348 = vst.msk [vmem:[#allocation3 + $0x68] sm:$0xff] %vm318_vm0, %v4725_v1 }
  0x56   : > { %349 = vst.msk [vmem:[#allocation3 + $0x70] sm:$0xff] %vm318_vm0, %v4725_v1 }
  0x57   : > { %350 = vst.msk [vmem:[#allocation3 + $0x78] sm:$0xff] %vm318_vm0, %v4725_v1 }
  0x58   : > { %351 = vst.msk [vmem:[#allocation4] sm:$0xff] %vm318_vm0, %v4725_v1 }
  0x59   : > { %352 = vst.msk [vmem:[#allocation4 + $0x8] sm:$0xff] %vm318_vm0, %v4725_v1 }
  0x5a   : > { %353 = vst.msk [vmem:[#allocation4 + $0x10] sm:$0xff] %vm318_vm0, %v4725_v1 }
  0x5b   : > { %354 = vst.msk [vmem:[#allocation4 + $0x18] sm:$0xff] %vm318_vm0, %v4725_v1 }
  0x5c   : > { %355 = vst.msk [vmem:[#allocation4 + $0x20] sm:$0xff] %vm318_vm0, %v4725_v1 }
  0x5d   : > { %356 = vst.msk [vmem:[#allocation4 + $0x28] sm:$0xff] %vm318_vm0, %v4725_v1 }
  0x5e   : > { %357 = vst.msk [vmem:[#allocation4 + $0x30] sm:$0xff] %vm318_vm0, %v4725_v1 }
  0x5f   : > { %358 = vst.msk [vmem:[#allocation4 + $0x38] sm:$0xff] %vm318_vm0, %v4725_v1 }
  0x60   : > { %359 = vst.msk [vmem:[#allocation4 + $0x40] sm:$0xff] %vm318_vm0, %v4725_v1 }
  0x61   : > { %360 = vst.msk [vmem:[#allocation4 + $0x48] sm:$0xff] %vm318_vm0, %v4725_v1 }
  0x62   : > { %361 = vst.msk [vmem:[#allocation4 + $0x50] sm:$0xff] %vm318_vm0, %v4725_v1 }
  0x63   : > { %362 = vst.msk [vmem:[#allocation4 + $0x58] sm:$0xff] %vm318_vm0, %v4725_v1 }
  0x64   : > { %363 = vst.msk [vmem:[#allocation4 + $0x60] sm:$0xff] %vm318_vm0, %v4725_v1 }
  0x65   : > { %364 = vst.msk [vmem:[#allocation4 + $0x68] sm:$0xff] %vm318_vm0, %v4725_v1 }
  0x66   : > { %365 = vst.msk [vmem:[#allocation4 + $0x70] sm:$0xff] %vm318_vm0, %v4725_v1 }
  0x67   : > { %366 = vst.msk [vmem:[#allocation4 + $0x78] sm:$0xff] %vm318_vm0, %v4725_v1 }
  0x68   : > { %367 = vst.msk [vmem:[#allocation5] sm:$0xff] %vm318_vm0, %v4725_v1 }
  0x69   : > { %368 = vst.msk [vmem:[#allocation5 + $0x8] sm:$0xff] %vm318_vm0, %v4725_v1 }
  0x6a   : > { %369 = vst.msk [vmem:[#allocation5 + $0x10] sm:$0xff] %vm318_vm0, %v4725_v1 }
  0x6b   : > { %370 = vst.msk [vmem:[#allocation5 + $0x18] sm:$0xff] %vm318_vm0, %v4725_v1 }
  0x6c   : > { %371 = vst.msk [vmem:[#allocation5 + $0x20] sm:$0xff] %vm318_vm0, %v4725_v1 }
  0x6d   : > { %372 = vst.msk [vmem:[#allocation5 + $0x28] sm:$0xff] %vm318_vm0, %v4725_v1 }
  0x6e   : > { %373 = vst.msk [vmem:[#allocation5 + $0x30] sm:$0xff] %vm318_vm0, %v4725_v1 }
  0x6f   : > { %374 = vst.msk [vmem:[#allocation5 + $0x38] sm:$0xff] %vm318_vm0, %v4725_v1 }
  0x70   : > { %375 = vst.msk [vmem:[#allocation5 + $0x40] sm:$0xff] %vm318_vm0, %v4725_v1 }
  0x71   : > { %376 = vst.msk [vmem:[#allocation5 + $0x48] sm:$0xff] %vm318_vm0, %v4725_v1 }
  0x72   : > { %377 = vst.msk [vmem:[#allocation5 + $0x50] sm:$0xff] %vm318_vm0, %v4725_v1 }
  0x73   : > { %378 = vst.msk [vmem:[#allocation5 + $0x58] sm:$0xff] %vm318_vm0, %v4725_v1 }
  0x74   : > { %379 = vst.msk [vmem:[#allocation5 + $0x60] sm:$0xff] %vm318_vm0, %v4725_v1 }
  0x75   : > { %380 = vst.msk [vmem:[#allocation5 + $0x68] sm:$0xff] %vm318_vm0, %v4725_v1 }
  0x76   : > { %381 = vst.msk [vmem:[#allocation5 + $0x70] sm:$0xff] %vm318_vm0, %v4725_v1 }
  0x77   : > { %382 = vst.msk [vmem:[#allocation5 + $0x78] sm:$0xff] %vm318_vm0, %v4725_v1 }
  0x78 PF: > { %v4116_v2 = vld [vmem:[%s4882_s30 + $0x38] sm:$0xff]  ;;  %v4115_v6 = vld [vmem:[%s4882_s30 + $0x30] sm:$0xff]  ;;  %v4114_v10 = vld [vmem:[%s4882_s30 + $0x28] sm:$0xff]  ;;  %s4029_s22 = sshll.u32 %s4710_s18, 9  ;;  %vm7990_vm5 = vcmask 7168   ;;  %p4094_p1 = scmp.ne.s32.totalorder %s4710_s18, 1 }
  0x79   : > { %v4124_v3 = vld [vmem:[%s4882_s30 + $0x78] sm:$0xff]  ;;  %703 = vmatpush.bf16.xpose.msra.mxu0 %v4116_v2  ;;  %v4123_v7 = vld [vmem:[%s4882_s30 + $0x70] sm:$0xff]  ;;  %v4122_v11 = vld [vmem:[%s4882_s30 + $0x68] sm:$0xff] }
  0x7a   : > { %v4132_v4 = vld [vmem:[%s4882_s30 + $0xb8] sm:$0xff]  ;;  %752 = vmatpush.bf16.xpose.msra.mxu1 %v4124_v3  ;;  %v4131_v8 = vld [vmem:[%s4882_s30 + $0xb0] sm:$0xff]  ;;  %v4130_v12 = vld [vmem:[%s4882_s30 + $0xa8] sm:$0xff] }
  0x7b   : > { %v4140_v5 = vld [vmem:[%s4882_s30 + $0xf8] sm:$0xff]  ;;  %801 = vmatpush.bf16.xpose.msra.mxu2 %v4132_v4  ;;  %v4139_v9 = vld [vmem:[%s4882_s30 + $0xf0] sm:$0xff]  ;;  %v4138_v13 = vld [vmem:[%s4882_s30 + $0xe8] sm:$0xff] }
  0x7c   : > { %850 = vmatpush.bf16.xpose.msra.mxu3 %v4140_v5  ;;  %v4113_v14 = vld [vmem:[%s4882_s30 + $0x20] sm:$0xff]  ;;  %v4112_v18 = vld [vmem:[%s4882_s30 + $0x18] sm:$0xff]  ;;  %v4111_v22 = vld [vmem:[%s4882_s30 + $0x10] sm:$0xff] }
  0x7d   : > { %v4121_v15 = vld [vmem:[%s4882_s30 + $0x60] sm:$0xff]  ;;  %v4120_v19 = vld [vmem:[%s4882_s30 + $0x58] sm:$0xff]  ;;  %v4119_v23 = vld [vmem:[%s4882_s30 + $0x50] sm:$0xff] }
  0x7e   : > { %v4129_v16 = vld [vmem:[%s4882_s30 + $0xa0] sm:$0xff]  ;;  %v4128_v20 = vld [vmem:[%s4882_s30 + $0x98] sm:$0xff]  ;;  %v4127_v24 = vld [vmem:[%s4882_s30 + $0x90] sm:$0xff] }
  0x7f   : > { %v4137_v17 = vld [vmem:[%s4882_s30 + $0xe0] sm:$0xff]  ;;  %v4136_v21 = vld [vmem:[%s4882_s30 + $0xd8] sm:$0xff]  ;;  %v4135_v25 = vld [vmem:[%s4882_s30 + $0xd0] sm:$0xff] }
  0x80   : > { %v4110_v26 = vld [vmem:[%s4882_s30 + $0x8] sm:$0xff]  ;;  %v4109_v30 = vld [vmem:[%s4882_s30] sm:$0xff]  ;;  %v4172_v35 = vld [vmem:[%s4888_s5 + $0xb8] sm:$0xff] }
  0x81   : > { %704 = vmatpush.bf16.xpose.msra.mxu0 %v4115_v6  ;;  %v4118_v27 = vld [vmem:[%s4882_s30 + $0x48] sm:$0xff]  ;;  %v4117_v31 = vld [vmem:[%s4882_s30 + $0x40] sm:$0xff]  ;;  %v4180_v36 = vld [vmem:[%s4888_s5 + $0xf8] sm:$0xff] }
  0x82   : > { %753 = vmatpush.bf16.xpose.msra.mxu1 %v4123_v7  ;;  %v4126_v28 = vld [vmem:[%s4882_s30 + $0x88] sm:$0xff]  ;;  %v4125_v32 = vld [vmem:[%s4882_s30 + $0x80] sm:$0xff]  ;;  %v4156_v37 = vld [vmem:[%s4888_s5 + $0x38] sm:$0xff] }
  0x83   : > { %802 = vmatpush.bf16.xpose.msra.mxu2 %v4131_v8  ;;  %v4134_v29 = vld [vmem:[%s4882_s30 + $0xc8] sm:$0xff]  ;;  %v4133_v33 = vld [vmem:[%s4882_s30 + $0xc0] sm:$0xff]  ;;  %v4164_v38 = vld [vmem:[%s4888_s5 + $0x78] sm:$0xff] }
  0x84   : > { %851 = vmatpush.bf16.xpose.msra.mxu3 %v4139_v9  ;;  %v4101_v34 = vld [vmem:[#allocation6] sm:$0xff]  ;;  %v4102_v39 = vld [vmem:[#allocation6 + $0x8] sm:$0xff]  ;;  %v4171_v40 = vld [vmem:[%s4888_s5 + $0xb0] sm:$0xff] }
  0x85   : > { %v4179_v41 = vld [vmem:[%s4888_s5 + $0xf0] sm:$0xff]  ;;  %v4170_v45 = vld [vmem:[%s4888_s5 + $0xa8] sm:$0xff]  ;;  %v4104_v49 = vld [vmem:[#allocation6 + $0x18] sm:$0xff] }
  0x86   : > { %v4155_v42 = vld [vmem:[%s4888_s5 + $0x30] sm:$0xff]  ;;  %v4178_v46 = vld [vmem:[%s4888_s5 + $0xe8] sm:$0xff]  ;;  %v4169_v50 = vld [vmem:[%s4888_s5 + $0xa0] sm:$0xff] }
  0x87   : > { %v4163_v43 = vld [vmem:[%s4888_s5 + $0x70] sm:$0xff]  ;;  %v4154_v47 = vld [vmem:[%s4888_s5 + $0x28] sm:$0xff]  ;;  %v4177_v51 = vld [vmem:[%s4888_s5 + $0xe0] sm:$0xff] }
  0x88   : > { %v4103_v44 = vld [vmem:[#allocation6 + $0x10] sm:$0xff]  ;;  %v4162_v48 = vld [vmem:[%s4888_s5 + $0x68] sm:$0xff]  ;;  %v4153_v52 = vld [vmem:[%s4888_s5 + $0x20] sm:$0xff] }
  0x89   : > { %705 = vmatpush.bf16.xpose.msra.mxu0 %v4114_v10  ;;  %v4161_v53 = vld [vmem:[%s4888_s5 + $0x60] sm:$0xff]  ;;  %v4168_v55 = vld [vmem:[%s4888_s5 + $0x98] sm:$0xff]  ;;  %v4151_v59 = vld [vmem:[%s4888_s5 + $0x10] sm:$0xff]  ;;  %v7744_v10 = vlaneseq }
  0x8a   : > { %754 = vmatpush.bf16.xpose.msra.mxu1 %v4122_v11  ;;  %v4105_v54 = vld [vmem:[#allocation6 + $0x20] sm:$0xff]  ;;  %v4152_v56 = vld [vmem:[%s4888_s5 + $0x18] sm:$0xff]  ;;  %v4167_v60 = vld [vmem:[%s4888_s5 + $0x90] sm:$0xff] }
  0x8b   : > { %803 = vmatpush.bf16.xpose.msra.mxu2 %v4130_v12  ;;  %v4160_v57 = vld [vmem:[%s4888_s5 + $0x58] sm:$0xff]  ;;  %v4159_v61 = vld [vmem:[%s4888_s5 + $0x50] sm:$0xff]  ;;  %v4106_v63 = vld [vmem:[#allocation6 + $0x28] sm:$0xff]  ;;  %v1609_v11 = vand.u32 127, %v7744_v10 }
  0x8c   : > { %852 = vmatpush.bf16.xpose.msra.mxu3 %v4138_v13  ;;  %v4176_v58 = vld [vmem:[%s4888_s5 + $0xd8] sm:$0xff]  ;;  %v4175_v62 = vld [vmem:[%s4888_s5 + $0xd0] sm:$0xff]  ;;  %v4150_v0 = vld [vmem:[%s4888_s5 + $0x8] sm:$0xff]  ;;  %v1613_v13 = vstv %s4029_s22 }
  0x8d   : > { %v4158_v1 = vld [vmem:[%s4888_s5 + $0x48] sm:$0xff]  ;;  %v4149_v4 = vld [vmem:[%s4888_s5] sm:$0xff]  ;;  %v4107_v8 = vld [vmem:[#allocation6 + $0x30] sm:$0xff]  ;;  %v1610_v12 = vadd.s32 128, %v1609_v11 }
  0x8e   : > { %v4166_v2 = vld [vmem:[%s4888_s5 + $0x88] sm:$0xff]  ;;  %v4165_v5 = vld [vmem:[%s4888_s5 + $0x80] sm:$0xff]  ;;  %v4108_v9 = vld [vmem:[#allocation6 + $0x38] sm:$0xff] }
  0x8f   : > { %v4174_v3 = vld [vmem:[%s4888_s5 + $0xc8] sm:$0xff]  ;;  %v4157_v6 = vld [vmem:[%s4888_s5 + $0x40] sm:$0xff] }
  0x90   : > { %v4173_v7 = vld [vmem:[%s4888_s5 + $0xc0] sm:$0xff] }
  0x91   : > { %706 = vmatpush.bf16.xpose.msra.mxu0 %v4113_v14  ;;  %v5021_v14 = vadd.s32 %v1613_v13, %v1609_v11 }
  0x92   : > { %755 = vmatpush.bf16.xpose.msra.mxu1 %v4121_v15  ;;  %v5023_v15 = vadd.s32 %v1613_v13, %v1610_v12 }
  0x93   : > { %804 = vmatpush.bf16.xpose.msra.mxu2 %v4129_v16  ;;  %v1611_v16 = vadd.s32 256, %v1609_v11  ;;  %vm7821_vm1 = vcmp.lt.s32.totalorder %v5021_v14, 640 }
  0x94   : > { %853 = vmatpush.bf16.xpose.msra.mxu3 %v4137_v17  ;;  %v1612_v17 = vadd.s32 384, %v1609_v11  ;;  %vm7816_vm2 = vcmp.lt.s32.totalorder %v5023_v15, 640 }
  0x99   : > { %707 = vmatpush.bf16.xpose.msra.mxu0 %v4112_v18  ;;  %v4141_v18 = vld [vmem:[#allocation9] sm:$0xff] }
  0x9a   : > { %756 = vmatpush.bf16.xpose.msra.mxu1 %v4120_v19 }
  0x9b   : > { %805 = vmatpush.bf16.xpose.msra.mxu2 %v4128_v20 }
  0x9c   : > { %854 = vmatpush.bf16.xpose.msra.mxu3 %v4136_v21  ;;  %v5031_v21 = vadd.s32 %v1613_v13, %v1611_v16 }
  0x9e   : > { %vm7815_vm3 = vcmp.lt.s32.totalorder %v5031_v21, 640 }
  0xa1   : > { %708 = vmatpush.bf16.xpose.msra.mxu0 %v4111_v22 }
  0xa2   : > { %757 = vmatpush.bf16.xpose.msra.mxu1 %v4119_v23 }
  0xa3   : > { %806 = vmatpush.bf16.xpose.msra.mxu2 %v4127_v24  ;;  %v5039_v24 = vadd.s32 %v1613_v13, %v1612_v17 }
  0xa4   : > { %855 = vmatpush.bf16.xpose.msra.mxu3 %v4135_v25 }
  0xa5   : > { %vm7814_vm4 = vcmp.lt.s32.totalorder %v5039_v24, 640 }
  0xa9   : > { %709 = vmatpush.bf16.xpose.msra.mxu0 %v4110_v26 }
  0xaa   : > { %758 = vmatpush.bf16.xpose.msra.mxu1 %v4118_v27 }
  0xab   : > { %807 = vmatpush.bf16.xpose.msra.mxu2 %v4126_v28 }
  0xac   : > { %856 = vmatpush.bf16.xpose.msra.mxu3 %v4134_v29 }
  0xb1   : > { %710 = vmatpush.bf16.xpose.msra.mxu0 %v4109_v30 }
  0xb2   : > { %759 = vmatpush.bf16.xpose.msra.mxu1 %v4117_v31 }
  0xb3   : > { %808 = vmatpush.bf16.xpose.msra.mxu2 %v4125_v32 }
  0xb4   : > { %857 = vmatpush.bf16.xpose.msra.mxu3 %v4133_v33 }
  0xb8   : > { %711 = vmatmul.bf16.vlgmr.msra.gmra.mxu0 %v4101_v34 }
  0xb9   : > { %760 = vmatmul.bf16.vlgmr.msra.gmra.mxu1 %v4101_v34  ;;  %1219 = vmatpush.bf16.xpose.msrb.mxu0 %v4156_v37 }
  0xba   : > { %809 = vmatmul.bf16.vlgmr.msra.gmra.mxu2 %v4101_v34  ;;  %1268 = vmatpush.bf16.xpose.msrb.mxu1 %v4164_v38  ;;  %v4142_v38 = vld [vmem:[#allocation9 + $0x8] sm:$0xff] }
  0xbb   : > { %858 = vmatmul.bf16.vlgmr.msra.gmra.mxu3 %v4101_v34  ;;  %1317 = vmatpush.bf16.xpose.msrb.mxu2 %v4172_v35 }
  0xbc   : > { %1366 = vmatpush.bf16.xpose.msrb.mxu3 %v4180_v36 }
  0xc1   : > { %1220 = vmatpush.bf16.xpose.msrb.mxu0 %v4155_v42 }
  0xc2   : > { %1269 = vmatpush.bf16.xpose.msrb.mxu1 %v4163_v43 }
  0xc3   : > { %1318 = vmatpush.bf16.xpose.msrb.mxu2 %v4171_v40 }
  0xc4   : > { %1367 = vmatpush.bf16.xpose.msrb.mxu3 %v4179_v41 }
  0xc8   : > { %716 = vmatmul.bf16.gmra.mxu0 %v4102_v39 }
  0xc9   : > { %765 = vmatmul.bf16.gmra.mxu1 %v4102_v39  ;;  %1221 = vmatpush.bf16.xpose.msrb.mxu0 %v4154_v47 }
  0xca   : > { %814 = vmatmul.bf16.gmra.mxu2 %v4102_v39  ;;  %1270 = vmatpush.bf16.xpose.msrb.mxu1 %v4162_v48 }
  0xcb   : > { %863 = vmatmul.bf16.gmra.mxu3 %v4102_v39  ;;  %1319 = vmatpush.bf16.xpose.msrb.mxu2 %v4170_v45 }
  0xcc   : > { %1368 = vmatpush.bf16.xpose.msrb.mxu3 %v4178_v46 }
  0xd1   : > { %1222 = vmatpush.bf16.xpose.msrb.mxu0 %v4153_v52 }
  0xd2   : > { %1271 = vmatpush.bf16.xpose.msrb.mxu1 %v4161_v53 }
  0xd3   : > { %1320 = vmatpush.bf16.xpose.msrb.mxu2 %v4169_v50 }
  0xd4   : > { %1369 = vmatpush.bf16.xpose.msrb.mxu3 %v4177_v51 }
  0xd8   : > { %721 = vmatmul.bf16.gmra.mxu0 %v4103_v44 }
  0xd9   : > { %770 = vmatmul.bf16.gmra.mxu1 %v4103_v44  ;;  %1223 = vmatpush.bf16.xpose.msrb.mxu0 %v4152_v56 }
  0xda   : > { %819 = vmatmul.bf16.gmra.mxu2 %v4103_v44  ;;  %1272 = vmatpush.bf16.xpose.msrb.mxu1 %v4160_v57 }
  0xdb   : > { %868 = vmatmul.bf16.gmra.mxu3 %v4103_v44  ;;  %1321 = vmatpush.bf16.xpose.msrb.mxu2 %v4168_v55 }
  0xdc   : > { %1370 = vmatpush.bf16.xpose.msrb.mxu3 %v4176_v58 }
  0xe1   : > { %1224 = vmatpush.bf16.xpose.msrb.mxu0 %v4151_v59 }
  0xe2   : > { %1273 = vmatpush.bf16.xpose.msrb.mxu1 %v4159_v61  ;;  %v4143_v61 = vld [vmem:[#allocation9 + $0x10] sm:$0xff] }
  0xe3   : > { %1322 = vmatpush.bf16.xpose.msrb.mxu2 %v4167_v60 }
  0xe4   : > { %1371 = vmatpush.bf16.xpose.msrb.mxu3 %v4175_v62 }
  0xe8   : > { %726 = vmatmul.bf16.gmra.mxu0 %v4104_v49 }
  0xe9   : > { %775 = vmatmul.bf16.gmra.mxu1 %v4104_v49  ;;  %1225 = vmatpush.bf16.xpose.msrb.mxu0 %v4150_v0 }
  0xea   : > { %824 = vmatmul.bf16.gmra.mxu2 %v4104_v49  ;;  %1274 = vmatpush.bf16.xpose.msrb.mxu1 %v4158_v1 }
  0xeb   : > { %873 = vmatmul.bf16.gmra.mxu3 %v4104_v49  ;;  %1323 = vmatpush.bf16.xpose.msrb.mxu2 %v4166_v2 }
  0xec   : > { %1372 = vmatpush.bf16.xpose.msrb.mxu3 %v4174_v3 }
  0xf1   : > { %1226 = vmatpush.bf16.xpose.msrb.mxu0 %v4149_v4 }
  0xf2   : > { %1275 = vmatpush.bf16.xpose.msrb.mxu1 %v4157_v6 }
  0xf3   : > { %1324 = vmatpush.bf16.xpose.msrb.mxu2 %v4165_v5 }
  0xf4   : > { %1373 = vmatpush.bf16.xpose.msrb.mxu3 %v4173_v7 }
  0xf8   : > { %731 = vmatmul.bf16.gmra.mxu0 %v4105_v54 }
  0xf9   : > { %780 = vmatmul.bf16.gmra.mxu1 %v4105_v54 }
  0xfa   : > { %829 = vmatmul.bf16.gmra.mxu2 %v4105_v54 }
  0xfb   : > { %878 = vmatmul.bf16.gmra.mxu3 %v4105_v54 }
 0x108   : > { %736 = vmatmul.bf16.gmra.mxu0 %v4106_v63 }
 0x109   : > { %785 = vmatmul.bf16.gmra.mxu1 %v4106_v63 }
 0x10a   : > { %834 = vmatmul.bf16.gmra.mxu2 %v4106_v63 }
 0x10b   : > { %883 = vmatmul.bf16.gmra.mxu3 %v4106_v63 }
 0x118   : > { %741 = vmatmul.bf16.gmra.mxu0 %v4107_v8 }
 0x119   : > { %790 = vmatmul.bf16.gmra.mxu1 %v4107_v8 }
 0x11a   : > { %839 = vmatmul.bf16.gmra.mxu2 %v4107_v8 }
 0x11b   : > { %888 = vmatmul.bf16.gmra.mxu3 %v4107_v8 }
 0x128   : > { %746 = vmatmul.bf16.gmra.mxu0 %v4108_v9 }
 0x129   : > { %795 = vmatmul.bf16.gmra.mxu1 %v4108_v9 }
 0x12a   : > { %844 = vmatmul.bf16.gmra.mxu2 %v4108_v9 }
 0x12b   : > { %893 = vmatmul.bf16.gmra.mxu3 %v4108_v9 }
 0x135   : > { %v5027_v19 = vpop.f32.mrf.mxu0 }
 0x136   : > { %8035 = vst [vmem:[#allocation18_spill] sm:$0xff] %v5027_v19  ;;  %v5029_v20 = vpop.f32.mrf.mxu1  ;;  %v1985_v22 = vsel %vm7821_vm1, %v5027_v19, -1e+30 }
 0x137   : > { %8036 = vst [vmem:[#allocation19_spill] sm:$0xff] %v5029_v20  ;;  %v1986_v23 = vsel %vm7816_vm2, %v5029_v20, -1e+30 }
 0x138   : > { %1227 = vmatmul.bf16.vlgmr.msrb.gmra.mxu0 %v4141_v18  ;;  %v2049_v25 = vmax.f32 %v1985_v22, %v1986_v23 }
 0x139   : > { %1276 = vmatmul.bf16.vlgmr.msrb.gmra.mxu1 %v4141_v18 }
 0x13a   : > { %1325 = vmatmul.bf16.vlgmr.msrb.gmra.mxu2 %v4141_v18 }
 0x13b   : > { %1374 = vmatmul.bf16.vlgmr.msrb.gmra.mxu3 %v4141_v18 }
 0x13d   : > { %v5043_v26 = vpop.f32.mrf.mxu2  ;;  %v5047_v28 = vpop.f32.mrf.mxu0 }
 0x13e   : > { %8037 = vst [vmem:[#allocation20_spill] sm:$0xff] %v5043_v26  ;;  %v5045_v27 = vpop.f32.mrf.mxu3  ;;  %v5049_v29 = vpop.f32.mrf.mxu1  ;;  %v1987_v30 = vsel %vm7815_vm3, %v5043_v26, -1e+30  ;;  %v1989_v34 = vsel %vm7821_vm1, %v5047_v28, -1e+30 }
 0x13f   : > { %8038 = vst [vmem:[#allocation21_spill] sm:$0xff] %v5045_v27  ;;  %v1988_v31 = vsel %vm7814_vm4, %v5045_v27, -1e+30  ;;  %v2050_v32 = vmax.f32 %v2049_v25, %v1987_v30  ;;  %v1990_v35 = vsel %vm7816_vm2, %v5049_v29, -1e+30 }
 0x140   : > { %8039 = vst [vmem:[#allocation22_spill] sm:$0xff] %v5047_v28  ;;  %v2054_v39 = vmax.f32 %v1989_v34, %v1990_v35 }
 0x141   : > { %8040 = vst [vmem:[#allocation23_spill] sm:$0xff] %v5049_v29  ;;  %v2051_v33 = vmax.f32 %v2050_v32, %v1988_v31  ;;  %v4144_v31 = vld [vmem:[#allocation9 + $0x18] sm:$0xff] }
 0x143   : > { %2052 = vmax.xlane.f32.xlu0 %v2051_v33 }
 0x145   : > { %v5063_v36 = vpop.f32.mrf.mxu2  ;;  %v5067_v40 = vpop.f32.mrf.mxu0 }
 0x146   : > { %8041 = vst [vmem:[#allocation24_spill] sm:$0xff] %v5063_v36  ;;  %v5065_v37 = vpop.f32.mrf.mxu3  ;;  %v5069_v41 = vpop.f32.mrf.mxu1  ;;  %v1991_v42 = vsel %vm7815_vm3, %v5063_v36, -1e+30  ;;  %v1993_v44 = vsel %vm7821_vm1, %v5067_v40, -1e+30 }
 0x147   : > { %8042 = vst [vmem:[#allocation25_spill] sm:$0xff] %v5065_v37  ;;  %v2055_v43 = vmax.f32 %v2054_v39, %v1991_v42  ;;  %v1994_v45 = vsel %vm7816_vm2, %v5069_v41, -1e+30  ;;  %v1992_v46 = vsel %vm7814_vm4, %v5065_v37, -1e+30 }
 0x148   : > { %8043 = vst [vmem:[#allocation26_spill] sm:$0xff] %v5067_v40  ;;  %1232 = vmatmul.bf16.gmra.mxu0 %v4142_v38  ;;  %v2059_v48 = vmax.f32 %v1993_v44, %v1994_v45 }
 0x149   : > { %8044 = vst [vmem:[#allocation27_spill] sm:$0xff] %v5069_v41  ;;  %1281 = vmatmul.bf16.gmra.mxu1 %v4142_v38  ;;  %v2056_v47 = vmax.f32 %v2055_v43, %v1992_v46 }
 0x14a   : > { %1330 = vmatmul.bf16.gmra.mxu2 %v4142_v38 }
 0x14b   : > { %1379 = vmatmul.bf16.gmra.mxu3 %v4142_v38  ;;  %2057 = vmax.xlane.f32.xlu0 %v2056_v47 }
 0x14d   : > { %v5083_v49 = vpop.f32.mrf.mxu2  ;;  %v5087_v51 = vpop.f32.mrf.mxu0 }
 0x14e   : > { %8045 = vst [vmem:[#allocation28_spill] sm:$0xff] %v5083_v49  ;;  %v5085_v50 = vpop.f32.mrf.mxu3  ;;  %v5089_v52 = vpop.f32.mrf.mxu1  ;;  %v1995_v53 = vsel %vm7815_vm3, %v5083_v49, -1e+30  ;;  %v1997_v57 = vsel %vm7821_vm1, %v5087_v51, -1e+30 }
 0x14f   : > { %8046 = vst [vmem:[#allocation29_spill] sm:$0xff] %v5085_v50  ;;  %v1996_v54 = vsel %vm7814_vm4, %v5085_v50, -1e+30  ;;  %v2060_v55 = vmax.f32 %v2059_v48, %v1995_v53  ;;  %v1998_v58 = vsel %vm7816_vm2, %v5089_v52, -1e+30 }
 0x150   : > { %8047 = vst [vmem:[#allocation30_spill] sm:$0xff] %v5087_v51  ;;  %v2064_v62 = vmax.f32 %v1997_v57, %v1998_v58 }
 0x151   : > { %8048 = vst [vmem:[#allocation31_spill] sm:$0xff] %v5089_v52  ;;  %v2061_v56 = vmax.f32 %v2060_v55, %v1996_v54 }
 0x153   : > { %2062 = vmax.xlane.f32.xlu1 %v2061_v56 }
 0x155   : > { %v5103_v59 = vpop.f32.mrf.mxu2  ;;  %v5107_v63 = vpop.f32.mrf.mxu0 }
 0x156   : > { %8049 = vst [vmem:[#allocation32_spill] sm:$0xff] %v5103_v59  ;;  %v5105_v60 = vpop.f32.mrf.mxu3  ;;  %v5109_v0 = vpop.f32.mrf.mxu1  ;;  %v1999_v1 = vsel %vm7815_vm3, %v5103_v59, -1e+30  ;;  %v2001_v3 = vsel %vm7821_vm1, %v5107_v63, -1e+30 }
 0x157   : > { %8050 = vst [vmem:[#allocation33_spill] sm:$0xff] %v5105_v60  ;;  %v2065_v2 = vmax.f32 %v2064_v62, %v1999_v1  ;;  %v2002_v4 = vsel %vm7816_vm2, %v5109_v0, -1e+30  ;;  %v2000_v5 = vsel %vm7814_vm4, %v5105_v60, -1e+30 }
 0x158   : > { %8051 = vst [vmem:[#allocation34_spill] sm:$0xff] %v5107_v63  ;;  %1237 = vmatmul.bf16.gmra.mxu0 %v4143_v61  ;;  %v2069_v7 = vmax.f32 %v2001_v3, %v2002_v4 }
 0x159   : > { %8052 = vst [vmem:[#allocation35_spill] sm:$0xff] %v5109_v0  ;;  %1286 = vmatmul.bf16.gmra.mxu1 %v4143_v61  ;;  %v2066_v6 = vmax.f32 %v2065_v2, %v2000_v5  ;;  %v4145_v2 = vld [vmem:[#allocation9 + $0x20] sm:$0xff] }
 0x15a   : > { %1335 = vmatmul.bf16.gmra.mxu2 %v4143_v61 }
 0x15b   : > { %1384 = vmatmul.bf16.gmra.mxu3 %v4143_v61  ;;  %2067 = vmax.xlane.f32.xlu1 %v2066_v6 }
 0x15d   : > { %v5123_v8 = vpop.f32.mrf.mxu2  ;;  %v5127_v11 = vpop.f32.mrf.mxu0 }
 0x15e   : > { %8053 = vst [vmem:[#allocation36_spill] sm:$0xff] %v5123_v8  ;;  %v5125_v9 = vpop.f32.mrf.mxu3  ;;  %v5129_v12 = vpop.f32.mrf.mxu1  ;;  %v2003_v13 = vsel %vm7815_vm3, %v5123_v8, -1e+30  ;;  %v2005_v22 = vsel %vm7821_vm1, %v5127_v11, -1e+30 }
 0x15f   : > { %8054 = vst [vmem:[#allocation37_spill] sm:$0xff] %v5125_v9  ;;  %v2004_v16 = vsel %vm7814_vm4, %v5125_v9, -1e+30  ;;  %v2070_v17 = vmax.f32 %v2069_v7, %v2003_v13  ;;  %v2006_v23 = vsel %vm7816_vm2, %v5129_v12, -1e+30 }
 0x160   : > { %8055 = vst [vmem:[#allocation38_spill] sm:$0xff] %v5127_v11  ;;  %v2074_v32 = vmax.f32 %v2005_v22, %v2006_v23 }
 0x161   : > { %8056 = vst [vmem:[#allocation39_spill] sm:$0xff] %v5129_v12  ;;  %v2071_v18 = vmax.f32 %v2070_v17, %v2004_v16 }
 0x163   : > { %2072 = vmax.xlane.f32.xlu2 %v2071_v18 }
 0x165   : > { %v5143_v25 = vpop.f32.mrf.mxu2  ;;  %v5147_v33 = vpop.f32.mrf.mxu0 }
 0x166   : > { %8057 = vst [vmem:[#allocation40_spill] sm:$0xff] %v5143_v25  ;;  %v5145_v30 = vpop.f32.mrf.mxu3  ;;  %v5149_v34 = vpop.f32.mrf.mxu1  ;;  %v2007_v35 = vsel %vm7815_vm3, %v5143_v25, -1e+30  ;;  %v2009_v39 = vsel %vm7821_vm1, %v5147_v33, -1e+30 }
 0x167   : > { %8058 = vst [vmem:[#allocation41_spill] sm:$0xff] %v5145_v30  ;;  %v2075_v38 = vmax.f32 %v2074_v32, %v2007_v35  ;;  %v2010_v42 = vsel %vm7816_vm2, %v5149_v34, -1e+30  ;;  %v2008_v43 = vsel %vm7814_vm4, %v5145_v30, -1e+30 }
 0x168   : > { %8059 = vst [vmem:[#allocation42_spill] sm:$0xff] %v5147_v33  ;;  %1242 = vmatmul.bf16.gmra.mxu0 %v4144_v31  ;;  %v2079_v45 = vmax.f32 %v2009_v39, %v2010_v42 }
 0x169   : > { %8060 = vst [vmem:[#allocation43_spill] sm:$0xff] %v5149_v34  ;;  %1291 = vmatmul.bf16.gmra.mxu1 %v4144_v31  ;;  %v2076_v44 = vmax.f32 %v2075_v38, %v2008_v43 }
 0x16a   : > { %1340 = vmatmul.bf16.gmra.mxu2 %v4144_v31 }
 0x16b   : > { %1389 = vmatmul.bf16.gmra.mxu3 %v4144_v31  ;;  %2077 = vmax.xlane.f32.xlu2 %v2076_v44 }
 0x16d   : > { %v5163_v46 = vpop.f32.mrf.mxu2  ;;  %v5170_v53 = vpop.f32.mrf.mxu0 }
 0x16e   : > { %8061 = vst [vmem:[#allocation44_spill] sm:$0xff] %v5163_v46  ;;  %v5165_v47 = vpop.f32.mrf.mxu3  ;;  %v2011_v48 = vsel %vm7815_vm3, %v5163_v46, -1e+30  ;;  %v5172_v54 = vpop.f32.mrf.mxu1  ;;  %v2013_v58 = vsel %vm7821_vm1, %v5170_v53, -1e+30 }
 0x16f   : > { %8062 = vst [vmem:[#allocation45_spill] sm:$0xff] %v5165_v47  ;;  %v2012_v55 = vsel %vm7814_vm4, %v5165_v47, -1e+30  ;;  %v2080_v56 = vmax.f32 %v2079_v45, %v2011_v48  ;;  %v2014_v61 = vsel %vm7816_vm2, %v5172_v54, -1e+30 }
 0x170   : > { %8063 = vst [vmem:[#allocation46_spill] sm:$0xff] %v5170_v53  ;;  %v2084_v3 = vmax.f32 %v2013_v58, %v2014_v61 }
 0x171   : > { %8064 = vst [vmem:[#allocation47_spill] sm:$0xff] %v5172_v54  ;;  %v2081_v57 = vmax.f32 %v2080_v56, %v2012_v55 }
 0x173   : > { %2082 = vmax.xlane.f32.xlu0 %v2081_v57  ;;  %v4146_v57 = vld [vmem:[#allocation9 + $0x28] sm:$0xff] }
 0x175   : > { %v5183_v62 = vpop.f32.mrf.mxu2  ;;  %v5187_v4 = vpop.f32.mrf.mxu0 }
 0x176   : > { %8065 = vst [vmem:[#allocation48_spill] sm:$0xff] %v5183_v62  ;;  %v5185_v1 = vpop.f32.mrf.mxu3  ;;  %v5189_v5 = vpop.f32.mrf.mxu1  ;;  %v2015_v6 = vsel %vm7815_vm3, %v5183_v62, -1e+30  ;;  %v2017_v13 = vsel %vm7821_vm1, %v5187_v4, -1e+30 }
 0x177   : > { %8066 = vst [vmem:[#allocation49_spill] sm:$0xff] %v5185_v1  ;;  %v2085_v7 = vmax.f32 %v2084_v3, %v2015_v6  ;;  %v2018_v16 = vsel %vm7816_vm2, %v5189_v5, -1e+30  ;;  %v2016_v17 = vsel %vm7814_vm4, %v5185_v1, -1e+30 }
 0x178   : > { %8067 = vst [vmem:[#allocation50_spill] sm:$0xff] %v5187_v4  ;;  %1247 = vmatmul.bf16.gmra.mxu0 %v4145_v2  ;;  %v2089_v22 = vmax.f32 %v2017_v13, %v2018_v16 }
 0x179   : > { %8068 = vst [vmem:[#allocation51_spill] sm:$0xff] %v5189_v5  ;;  %1296 = vmatmul.bf16.gmra.mxu1 %v4145_v2  ;;  %v2086_v18 = vmax.f32 %v2085_v7, %v2016_v17 }
 0x17a   : > { %1345 = vmatmul.bf16.gmra.mxu2 %v4145_v2 }
 0x17b   : > { %1394 = vmatmul.bf16.gmra.mxu3 %v4145_v2  ;;  %2087 = vmax.xlane.f32.xlu1 %v2086_v18 }
 0x17d   : > { %v5203_v23 = vpop.f32.mrf.mxu2  ;;  %v5210_v35 = vpop.f32.mrf.mxu0 }
 0x17e   : > { %8069 = vst [vmem:[#allocation52_spill] sm:$0xff] %v5203_v23  ;;  %v5205_v31 = vpop.f32.mrf.mxu3  ;;  %v2019_v32 = vsel %vm7815_vm3, %v5203_v23, -1e+30  ;;  %v5212_v38 = vpop.f32.mrf.mxu1  ;;  %v2021_v44 = vsel %vm7821_vm1, %v5210_v35, -1e+30 }
 0x17f   : > { %8070 = vst [vmem:[#allocation53_spill] sm:$0xff] %v5205_v31  ;;  %v2090_v39 = vmax.f32 %v2089_v22, %v2019_v32  ;;  %v2020_v42 = vsel %vm7814_vm4, %v5205_v31, -1e+30  ;;  %v2022_v45 = vsel %vm7816_vm2, %v5212_v38, -1e+30 }
 0x180   : > { %8071 = vst [vmem:[#allocation54_spill] sm:$0xff] %v5210_v35  ;;  %v2094_v48 = vmax.f32 %v2021_v44, %v2022_v45 }
 0x181   : > { %8072 = vst [vmem:[#allocation55_spill] sm:$0xff] %v5212_v38  ;;  %v2091_v43 = vmax.f32 %v2090_v39, %v2020_v42 }
 0x183   : > { %2092 = vmax.xlane.f32.xlu2 %v2091_v43 }
 0x185   : > { %v5223_v55 = vpop.f32.mrf.mxu2  ;;  %v5230_v61 = vpop.f32.mrf.mxu0 }
 0x186   : > { %8073 = vst [vmem:[#allocation56_spill] sm:$0xff] %v5223_v55  ;;  %v5225_v56 = vpop.f32.mrf.mxu3  ;;  %v2023_v58 = vsel %vm7815_vm3, %v5223_v55, -1e+30  ;;  %v5232_v2 = vpop.f32.mrf.mxu1  ;;  %v2025_v6 = vsel %vm7821_vm1, %v5230_v61, -1e+30 }
 0x187   : > { %8074 = vst [vmem:[#allocation57_spill] sm:$0xff] %v5225_v56  ;;  %v2095_v3 = vmax.f32 %v2094_v48, %v2023_v58  ;;  %v2026_v7 = vsel %vm7816_vm2, %v5232_v2, -1e+30  ;;  %v2024_v13 = vsel %vm7814_vm4, %v5225_v56, -1e+30 }
 0x188   : > { %8075 = vst [vmem:[#allocation58_spill] sm:$0xff] %v5230_v61  ;;  %1252 = vmatmul.bf16.gmra.mxu0 %v4146_v57  ;;  %v2099_v17 = vmax.f32 %v2025_v6, %v2026_v7  ;;  %v4147_v7 = vld [vmem:[#allocation9 + $0x30] sm:$0xff] }
 0x189   : > { %8076 = vst [vmem:[#allocation59_spill] sm:$0xff] %v5232_v2  ;;  %1301 = vmatmul.bf16.gmra.mxu1 %v4146_v57  ;;  %v2096_v16 = vmax.f32 %v2095_v3, %v2024_v13  ;;  %v5516_v2 = vld [vmem:[#allocation2 + $0x20] sm:$0xff] }
 0x18a   : > { %1350 = vmatmul.bf16.gmra.mxu2 %v4146_v57  ;;  %8119 = vst [vmem:[#allocation100_spill] sm:$0xff] %v5516_v2 }
 0x18b   : > { %1399 = vmatmul.bf16.gmra.mxu3 %v4146_v57  ;;  %2097 = vmax.xlane.f32.xlu0 %v2096_v16 }
 0x18d   : > { %v5243_v18 = vpop.f32.mrf.mxu2  ;;  %v5250_v39 = vpop.f32.mrf.mxu0 }
 0x18e   : > { %8077 = vst [vmem:[#allocation60_spill] sm:$0xff] %v5243_v18  ;;  %v5245_v22 = vpop.f32.mrf.mxu3  ;;  %v2027_v32 = vsel %vm7815_vm3, %v5243_v18, -1e+30  ;;  %v5252_v42 = vpop.f32.mrf.mxu1  ;;  %v2029_v48 = vsel %vm7821_vm1, %v5250_v39, -1e+30 }
 0x18f   : > { %8078 = vst [vmem:[#allocation61_spill] sm:$0xff] %v5245_v22  ;;  %v2100_v43 = vmax.f32 %v2099_v17, %v2027_v32  ;;  %v2028_v44 = vsel %vm7814_vm4, %v5245_v22, -1e+30  ;;  %v2030_v57 = vsel %vm7816_vm2, %v5252_v42, -1e+30 }
 0x190   : > { %8079 = vst [vmem:[#allocation62_spill] sm:$0xff] %v5250_v39  ;;  %v2104_v58 = vmax.f32 %v2029_v48, %v2030_v57 }
 0x191   : > { %8080 = vst [vmem:[#allocation63_spill] sm:$0xff] %v5252_v42  ;;  %v2101_v45 = vmax.f32 %v2100_v43, %v2028_v44 }
 0x193   : > { %2102 = vmax.xlane.f32.xlu1 %v2101_v45 }
 0x195   : > { %v5263_v3 = vpop.f32.mrf.mxu2  ;;  %v5270_v16 = vpop.f32.mrf.mxu0 }
 0x196   : > { %8081 = vst [vmem:[#allocation64_spill] sm:$0xff] %v5263_v3  ;;  %v5265_v6 = vpop.f32.mrf.mxu3  ;;  %v2031_v13 = vsel %vm7815_vm3, %v5263_v3, -1e+30  ;;  %v5272_v17 = vpop.f32.mrf.mxu1  ;;  %v2033_v43 = vsel %vm7821_vm1, %v5270_v16, -1e+30 }
 0x197   : > { %8082 = vst [vmem:[#allocation65_spill] sm:$0xff] %v5265_v6  ;;  %v2105_v32 = vmax.f32 %v2104_v58, %v2031_v13  ;;  %v2034_v44 = vsel %vm7816_vm2, %v5272_v17, -1e+30  ;;  %v2032_v45 = vsel %vm7814_vm4, %v5265_v6, -1e+30 }
 0x198   : > { %8083 = vst [vmem:[#allocation66_spill] sm:$0xff] %v5270_v16  ;;  %1257 = vmatmul.bf16.gmra.mxu0 %v4147_v7  ;;  %v2109_v57 = vmax.f32 %v2033_v43, %v2034_v44 }
 0x199   : > { %8084 = vst [vmem:[#allocation67_spill] sm:$0xff] %v5272_v17  ;;  %1306 = vmatmul.bf16.gmra.mxu1 %v4147_v7  ;;  %v2106_v48 = vmax.f32 %v2105_v32, %v2032_v45 }
 0x19a   : > { %1355 = vmatmul.bf16.gmra.mxu2 %v4147_v7 }
 0x19b   : > { %1404 = vmatmul.bf16.gmra.mxu3 %v4147_v7  ;;  %2107 = vmax.xlane.f32.xlu2 %v2106_v48 }
 0x19d   : > { %v5283_v58 = vpop.f32.mrf.mxu2  ;;  %v5290_v3 = vpop.f32.mrf.mxu0 }
 0x19e   : > { %8085 = vst [vmem:[#allocation68_spill] sm:$0xff] %v5283_v58  ;;  %v5285_v13 = vpop.f32.mrf.mxu3  ;;  %v2035_v10 = vsel %vm7815_vm3, %v5283_v58, -1e+30  ;;  %v5292_v39 = vpop.f32.mrf.mxu1  ;;  %v2037_v43 = vsel %vm7821_vm1, %v5290_v3, -1e+30 }
 0x19f   : > { %8086 = vst [vmem:[#allocation69_spill] sm:$0xff] %v5285_v13  ;;  %v2110_v6 = vmax.f32 %v2109_v57, %v2035_v10  ;;  %v2036_v32 = vsel %vm7814_vm4, %v5285_v13, -1e+30  ;;  %v2038_v44 = vsel %vm7816_vm2, %v5292_v39, -1e+30  ;;  %v4148_v10 = vld [vmem:[#allocation9 + $0x38] sm:$0xff] }
 0x1a0   : > { %8087 = vst [vmem:[#allocation70_spill] sm:$0xff] %v5290_v3  ;;  %v2114_v45 = vmax.f32 %v2037_v43, %v2038_v44  ;;  %v4726_v57 = vmov 0   ;;  %v5412_v13 = vld [vmem:[#allocation2 + $0x18] sm:$0xff] }
 0x1a1   : > { %8088 = vst [vmem:[#allocation71_spill] sm:$0xff] %v5292_v39  ;;  %v2111_v7 = vmax.f32 %v2110_v6, %v2036_v32  ;;  %4278 = vset.pattern.permute.xlu1 %v4726_v57  ;;  %4279 = vset.pattern.permute.xlu2 %v4726_v57 }
 0x1a2   : > { %4280 = vset.pattern.permute.xlu0 %v4726_v57  ;;  %8110 = vst [vmem:[#allocation92_spill] sm:$0xff] %v5412_v13 }
 0x1a3   : > { %2112 = vmax.xlane.f32.xlu0 %v2111_v7 }
 0x1a5   : > { %v5303_v48 = vpop.f32.mrf.mxu2  ;;  %v5310_v32 = vpop.f32.mrf.mxu0 }
 0x1a6   : > { %8089 = vst [vmem:[#allocation72_spill] sm:$0xff] %v5303_v48  ;;  %v5305_v42 = vpop.f32.mrf.mxu3  ;;  %v2039_v6 = vsel %vm7815_vm3, %v5303_v48, -1e+30  ;;  %v5312_v31 = vpop.f32.mrf.mxu1  ;;  %v2041_v7 = vsel %vm7821_vm1, %v5310_v32, -1e+30 }
 0x1a7   : > { %8090 = vst [vmem:[#allocation73_spill] sm:$0xff] %v5305_v42  ;;  %v2115_v23 = vmax.f32 %v2114_v45, %v2039_v6  ;;  %v2042_v43 = vsel %vm7816_vm2, %v5312_v31, -1e+30  ;;  %v2040_v44 = vsel %vm7814_vm4, %v5305_v42, -1e+30 }
 0x1a8   : > { %8091 = vst [vmem:[#allocation74_spill] sm:$0xff] %v5310_v32  ;;  %1262 = vmatmul.bf16.gmra.mxu0 %v4148_v10  ;;  %v2119_v4 = vmax.f32 %v2041_v7, %v2042_v43 }
 0x1a9   : > { %8092 = vst [vmem:[#allocation75_spill] sm:$0xff] %v5312_v31  ;;  %1311 = vmatmul.bf16.gmra.mxu1 %v4148_v10  ;;  %v2116_v5 = vmax.f32 %v2115_v23, %v2040_v44  ;;  %v5343_v44 = vld [vmem:[#allocation2] sm:$0xff] }
 0x1aa   : > { %1360 = vmatmul.bf16.gmra.mxu2 %v4148_v10  ;;  %8097 = vst [vmem:[#allocation80_spill] sm:$0xff] %v5343_v44 }
 0x1ab   : > { %1409 = vmatmul.bf16.gmra.mxu3 %v4148_v10  ;;  %2117 = vmax.xlane.f32.xlu1 %v2116_v5 }
 0x1ad   : > { %v5323_v45 = vpop.f32.mrf.mxu2  ;;  %v5330_v31 = vpop.f32.mrf.mxu0 }
 0x1ae   : > { %8093 = vst [vmem:[#allocation76_spill] sm:$0xff] %v5323_v45  ;;  %v5325_v57 = vpop.f32.mrf.mxu3  ;;  %v2043_v6 = vsel %vm7815_vm3, %v5323_v45, -1e+30  ;;  %v5332_v32 = vpop.f32.mrf.mxu1  ;;  %v2045_v23 = vsel %vm7821_vm1, %v5330_v31, -1e+30 }
 0x1af   : > { %8094 = vst [vmem:[#allocation77_spill] sm:$0xff] %v5325_v57  ;;  %v2120_v60 = vmax.f32 %v2119_v4, %v2043_v6  ;;  %v2046_v5 = vsel %vm7816_vm2, %v5332_v32, -1e+30  ;;  %v2044_v10 = vsel %vm7814_vm4, %v5325_v57, -1e+30 }
 0x1b0   : > { %8095 = vst [vmem:[#allocation78_spill] sm:$0xff] %v5330_v31  ;;  %v2124_v43 = vmax.f32 %v2045_v23, %v2046_v5 }
 0x1b1   : > { %8096 = vst [vmem:[#allocation79_spill] sm:$0xff] %v5332_v32  ;;  %v2121_v7 = vmax.f32 %v2120_v60, %v2044_v10 }
 0x1b3   : > { %2122 = vmax.xlane.f32.xlu2 %v2121_v7  ;;  %v5362_v7 = vld [vmem:[#allocation2 + $0x8] sm:$0xff] }
 0x1b4   : > { %8101 = vst [vmem:[#allocation84_spill] sm:$0xff] %v5362_v7 }
 0x1b5   : > { %v5345_v45 = vpop.f32.mrf.mxu2  ;;  %v1228_v32 = vpop.f32.mrf.mxu0 }
 0x1b6   : > { %8098 = vst [vmem:[#allocation81_spill] sm:$0xff] %v5345_v45  ;;  %v5347_v4 = vpop.f32.mrf.mxu3  ;;  %v2047_v6 = vsel %vm7815_vm3, %v5345_v45, -1e+30  ;;  %v2053_v31 = vpop.xlane.xlu0 %2052  ;;  %vm1415_vm7 = vcmp.gt.f32.partialorder %v1228_v32, 0.0 }
 0x1b7   : > { %8099 = vst [vmem:[#allocation82_spill] sm:$0xff] %v5347_v4  ;;  %v5353_v59 = vmax.f32 %v5343_v44, %v2053_v31  ;;  %v1277_v57 = vpop.f32.mrf.mxu1  ;;  %v2048_v60 = vsel %vm7814_vm4, %v5347_v4, -1e+30  ;;  %v2125_v23 = vmax.f32 %v2124_v43, %v2047_v6 }
 0x1b8   : > { %vm1416_vm8 = vcmp.gt.f32.partialorder %v1277_v57, 0.0 }
 0x1b9   : > { %8100 = vst [vmem:[#allocation83_spill] sm:$0xff] %v5353_v59  ;;  %v2126_v10 = vmax.f32 %v2125_v23, %v2048_v60  ;;  %v5380_v60 = vld [vmem:[#allocation2 + $0x10] sm:$0xff] }
 0x1ba   : > { %2690 = vst.msk [vmem:[#allocation2] sm:$0xff] %vm7990_vm5, %v5353_v59 }
 0x1bb   : > { %2127 = vmax.xlane.f32.xlu0 %v2126_v10  ;;  %8103 = vst [vmem:[#allocation86_spill] sm:$0xff] %v5380_v60 }
 0x1bd   : > { %v5364_v45 = vpop.f32.mrf.mxu2  ;;  %v5368_v52 = vpop.f32.mrf.mxu0 }
 0x1be   : > { %v5366_v31 = vpop.f32.mrf.mxu3  ;;  %v2058_v42 = vpop.xlane.xlu0 %2057  ;;  %vm1417_vm3 = vcmp.gt.f32.partialorder %v5364_v45, 0.0 }
 0x1bf   : > { %v5371_v4 = vmax.f32 %v5362_v7, %v2058_v42  ;;  %v5373_v43 = vpop.f32.mrf.mxu1  ;;  %v8104_v42 = vlaneseq  ;;  %vm1418_vm1 = vcmp.gt.f32.partialorder %v5366_v31, 0.0 }
 0x1c1   : > { %8102 = vst [vmem:[#allocation85_spill] sm:$0xff] %v5371_v4  ;;  %v5389_v51 = vshrl.u32 %v8104_v42, 7 }
 0x1c2   : > { %2691 = vst.msk [vmem:[#allocation2 + $0x8] sm:$0xff] %vm7990_vm5, %v5371_v4 }
 0x1c3   : > { %8105 = vst [vmem:[#allocation87_spill] sm:$0xff] %v5389_v51  ;;  %v5397_v7 = vadd.s32 8, %v5389_v51  ;;  %vm7813_vm6 = vcmp.ne.s32.totalorder %v5389_v51, %v5021_v14  ;;  %v5407_v42 = vadd.s32 16, %v5389_v51  ;;  %vm7812_vm9 = vcmp.ne.s32.totalorder %v5389_v51, %v5023_v15 }
 0x1c4   : > { %2227 = vperm.xlu1 %4278, %v5353_v59   ;;  %vm7884_vm10 = vcmp.ne.s32.totalorder %v5389_v51, %v5031_v21  ;;  %vm7883_vm11 = vcmp.ne.s32.totalorder %v5389_v51, %v5039_v24  ;;  %v5459_v32 = vadd.s32 40, %v5389_v51  ;;  %v5474_v57 = vadd.s32 56, %v5389_v51 }
 0x1c5   : > { %v5382_v23 = vpop.f32.mrf.mxu2  ;;  %v5386_v44 = vpop.f32.mrf.mxu0  ;;  %8107 = vst [vmem:[#allocation89_spill] sm:$0xff] %v5397_v7  ;;  %vm7831_vm12 = vcmp.ne.s32.totalorder %v5397_v7, %v5021_v14  ;;  %vm7828_vm13 = vcmp.ne.s32.totalorder %v5397_v7, %v5023_v15  ;;  %vm7882_vm14 = vcmp.ne.s32.totalorder %v5397_v7, %v5031_v21  ;;  %vm7854_vm15 = vcmp.ne.s32.totalorder %v5397_v7, %v5039_v24 }
 0x1c6   : > { %v5384_v10 = vpop.f32.mrf.mxu3  ;;  %v2063_v5 = vpop.xlane.xlu1 %2062  ;;  %8108 = vst [vmem:[#allocation90_spill] sm:$0xff] %v5407_v42  ;;  %vm1665_vm0 = vcmp.ne.s32.totalorder %v5407_v42, %v5021_v14  ;;  %v5485_v45 = vadd.s32 72, %v5389_v51 }
 0x1c7   : > { %v5392_v48 = vmax.f32 %v5380_v60, %v2063_v5  ;;  %v5394_v6 = vpop.f32.mrf.mxu1  ;;  %v5410_v5 = vadd.s32 32, %v5389_v51  ;;  %v7817_v60 = vmov 0.0   ;;  %8114 = vst [vmem:[#allocation96_spill] sm:$0xff] %v5459_v32 }
 0x1c8   : > { %v4030_v39 = vsel %vm7813_vm6, 1.0, %v7817_v60  ;;  %v3965_v17 = vsel %vm1415_vm7, 1.0, %v7817_v60  ;;  %v3966_v16 = vsel %vm1416_vm8, 1.0, %v7817_v60  ;;  %v4031_v22 = vsel %vm7812_vm9, 1.0, %v7817_v60  ;;  %8116 = vst [vmem:[#allocation98_spill] sm:$0xff] %v5474_v57 }
 0x1c9   : > { %8106 = vst [vmem:[#allocation88_spill] sm:$0xff] %v5392_v48  ;;  %vm1666_vm7 = vcmp.ne.s32.totalorder %v5407_v42, %v5023_v15  ;;  %vm7858_vm8 = vcmp.ne.s32.totalorder %v5410_v5, %v5021_v14  ;;  %vm1667_vm9 = vcmp.ne.s32.totalorder %v5407_v42, %v5031_v21  ;;  %vm7881_vm4 = vcmp.ne.s32.totalorder %v5410_v5, %v5023_v15 }
 0x1ca   : > { %2692 = vst.msk [vmem:[#allocation2 + $0x10] sm:$0xff] %vm7990_vm5, %v5392_v48  ;;  %vm7863_vm2 = vcmp.ne.s32.totalorder %v5410_v5, %v5031_v21  ;;  %v5479_v60 = vadd.s32 64, %v5389_v51  ;;  %vm7862_vm6 = vcmp.ne.s32.totalorder %v5410_v5, %v5039_v24 }
 0x1cb   : > { %2232 = vperm.xlu2 %4279, %v5371_v4   ;;  %8109 = vst [vmem:[#allocation91_spill] sm:$0xff] %v5410_v5 }
 0x1cc   : > { %8117 = vst [vmem:[#allocation99_spill] sm:$0xff] %v5485_v45 }
 0x1cd   : > { %v5422_v59 = vpop.f32.mrf.mxu2  ;;  %v5436_v58 = vpop.f32.mrf.mxu0 }
 0x1ce   : > { %v5424_v4 = vpop.f32.mrf.mxu3  ;;  %v2068_v3 = vpop.xlane.xlu1 %2067  ;;  %8111 = vst [vmem:[#allocation93_spill] sm:$0xff] %v5436_v58  ;;  %v8118_v58 = vmov 0.0  }
 0x1cf   : > { %v5447_v18 = vmax.f32 %v5412_v13, %v2068_v3  ;;  %v5449_v56 = vpop.f32.mrf.mxu1  ;;  %2237 = vperm.xlu0 %4280, %v5392_v48   ;;  %v5468_v3 = vadd.s32 48, %v5389_v51  ;;  %v1849_v13 = vmul.f32 %v4030_v39, %v3965_v17  ;;  %v1850_v48 = vmul.f32 %v4031_v22, %v3966_v16 }
 0x1d0   : > { %8113 = vst [vmem:[#allocation95_spill] sm:$0xff] %v5449_v56  ;;  %v4032_v56 = vsel %vm7884_vm10, 1.0, %v8118_v58  ;;  %v4034_v22 = vsel %vm7831_vm12, 1.0, %v8118_v58  ;;  %v3967_v39 = vsel %vm1417_vm3, 1.0, %v8118_v58  ;;  %v4035_v16 = vsel %vm7828_vm13, 1.0, %v8118_v58 }
 0x1d1   : > { %8112 = vst [vmem:[#allocation94_spill] sm:$0xff] %v5447_v18  ;;  %v5508_v17 = vsel %vm7882_vm14, 1.0, %v8118_v58  ;;  %v5514_v31 = vsel %vm7854_vm15, 1.0, %v8118_v58  ;;  %vm7880_vm3 = vcmp.ne.s32.totalorder %v5459_v32, %v5021_v14  ;;  %vm7874_vm13 = vcmp.ne.s32.totalorder %v5459_v32, %v5023_v15 }
 0x1d2   : > { %8115 = vst [vmem:[#allocation97_spill] sm:$0xff] %v5468_v3  ;;  %v3968_v61 = vsel %vm1418_vm1, 1.0, %v8118_v58  ;;  %vm1419_vm12 = vcmp.gt.f32.partialorder %v5368_v52, 0.0  ;;  %v5528_v55 = vsel %vm1665_vm0, 1.0, %v8118_v58  ;;  %v5534_v7 = vsel %vm1666_vm7, 1.0, %v8118_v58 }
 0x1d3   : > { %2693 = vst.msk [vmem:[#allocation2 + $0x18] sm:$0xff] %vm7990_vm5, %v5447_v18  ;;  %v4033_v18 = vsel %vm7883_vm11, 1.0, %v8118_v58  ;;  %v2722_v35 = vmul.f32 %v1849_v13, %v5027_v19  ;;  %v2723_v25 = vmul.f32 %v1850_v48, %v5029_v20  ;;  %vm1420_vm1 = vcmp.gt.f32.partialorder %v5373_v43, 0.0 }
 0x1d4   : > { %v4046_v51 = vsel %vm7858_vm8, 1.0, %v8118_v58  ;;  %v5547_v1 = vmul.f32 %v4032_v56, %v3967_v39  ;;  %v4047_v20 = vsel %vm7881_vm4, 1.0, %v8118_v58  ;;  %v5556_v43 = vmul.f32 %v4033_v18, %v3968_v61 }
 0x1d5   : > { %v5536_v30 = vpop.f32.mrf.mxu2  ;;  %v1238_v11 = vpop.f32.mrf.mxu0  ;;  %v3969_v19 = vsel %vm1419_vm12, 1.0, %v8118_v58  ;;  %v3970_v56 = vsel %vm1420_vm1, 1.0, %v8118_v58  ;;  %v5570_v18 = vadd.f32 %v1850_v48, %v1849_v13  ;;  %v5576_v52 = vsel %vm1667_vm9, 1.0, %v8118_v58 }
 0x1d6   : > { %8120 = vst [vmem:[#allocation101_spill] sm:$0xff] %v5536_v30  ;;  %v5538_v38 = vpop.f32.mrf.mxu3  ;;  %v2073_v12 = vpop.xlane.xlu2 %2072  ;;  %vm1431_vm15 = vcmp.gt.f32.partialorder %v1238_v11, 0.0  ;;  %vm8124_vm12 = vcmp.ne.s32.totalorder %v5407_v42, %v5039_v24  ;;  %v4048_v13 = vsel %vm7863_vm2, 1.0, %v8118_v58  ;;  %v2786_v48 = vadd.f32 %v2723_v25, %v2722_v35 }
 0x1d7   : > { %8121 = vst [vmem:[#allocation102_spill] sm:$0xff] %v5538_v38  ;;  %v5550_v50 = vmax.f32 %v5516_v2, %v2073_v12  ;;  %v1287_v38 = vpop.f32.mrf.mxu1  ;;  %v3981_v30 = vsel %vm1431_vm15, 1.0, %v8118_v58  ;;  %v2724_v11 = vmul.f32 %v5547_v1, %v5043_v26  ;;  %v1854_v2 = vmul.f32 %v4035_v16, %v3970_v56 }
 0x1d8   : > { %vm1432_vm8 = vcmp.gt.f32.partialorder %v1287_v38, 0.0  ;;  %v5567_v12 = vmul.f32 %v4046_v51, %v3981_v30  ;;  %v5582_v38 = vsel %vm8124_vm12, 1.0, %v8118_v58  ;;  %v1853_v51 = vmul.f32 %v4034_v22, %v3969_v19 }
 0x1d9   : > { %8122 = vst [vmem:[#allocation103_spill] sm:$0xff] %v5550_v50  ;;  %v3982_v61 = vsel %vm1432_vm8, 1.0, %v8118_v58  ;;  %v4049_v19 = vsel %vm7862_vm6, 1.0, %v8118_v58  ;;  %vm1681_vm15 = vcmp.ne.s32.totalorder %v5468_v3, %v5021_v14  ;;  %vm1421_vm8 = vcmp.gt.f32.partialorder %v5382_v23, 0.0 }
 0x1da   : > { %2694 = vst.msk [vmem:[#allocation2 + $0x20] sm:$0xff] %vm7990_vm5, %v5550_v50  ;;  %v5584_v39 = vmul.f32 %v4047_v20, %v3982_v61  ;;  %v2738_v30 = vmul.f32 %v5567_v12, %v5107_v63  ;;  %v5600_v20 = vld [vmem:[#allocation2 + $0x28] sm:$0xff]  ;;  %v4050_v22 = vsel %vm7880_vm3, 1.0, %v8118_v58  ;;  %v4051_v16 = vsel %vm7874_vm13, 1.0, %v8118_v58 }
 0x1db   : > { %8123 = vst [vmem:[#allocation104_spill] sm:$0xff] %v5567_v12  ;;  %v5615_v56 = vmul.f32 %v5556_v43, %v5045_v27  ;;  %vm1682_vm1 = vcmp.ne.s32.totalorder %v5468_v3, %v5023_v15  ;;  %vm1423_vm12 = vcmp.gt.f32.partialorder %v5386_v44, 0.0  ;;  %vm1426_vm4 = vcmp.gt.f32.partialorder %v5424_v4, 0.0 }
 0x1dc   : > { %8125 = vst [vmem:[#allocation105_spill] sm:$0xff] %v5584_v39  ;;  %v2739_v42 = vmul.f32 %v5584_v39, %v5109_v0 }
 0x1dd   : > { %8126 = vst [vmem:[#allocation106_spill] sm:$0xff] %v5600_v20  ;;  %v1336_v25 = vpop.f32.mrf.mxu2  ;;  %v1240_v0 = vpop.f32.mrf.mxu0 }
 0x1de   : > { %v1385_v35 = vpop.f32.mrf.mxu3  ;;  %vm1433_vm6 = vcmp.gt.f32.partialorder %v1336_v25, 0.0  ;;  %v2078_v61 = vpop.xlane.xlu2 %2077  ;;  %v2806_v63 = vadd.f32 %v2739_v42, %v2738_v30  ;;  %vm1435_vm13 = vcmp.gt.f32.partialorder %v1240_v0, 0.0  ;;  %v3971_v42 = vsel %vm1421_vm8, 1.0, %v8118_v58  ;;  %v5658_v25 = vld [vmem:[#allocation2 + $0x30] sm:$0xff] }
 0x1df   : > { %vm1434_vm2 = vcmp.gt.f32.partialorder %v1385_v35, 0.0  ;;  %v3983_v26 = vsel %vm1433_vm6, 1.0, %v8118_v58  ;;  %v5623_v50 = vmax.f32 %v5600_v20, %v2078_v61  ;;  %v1289_v27 = vpop.f32.mrf.mxu1  ;;  %v3985_v45 = vsel %vm1435_vm13, 1.0, %v8118_v58  ;;  %8128 = vst [vmem:[#allocation108_spill] sm:$0xff] %v5658_v25 }
 0x1e0   : > { %v3984_v5 = vsel %vm1434_vm2, 1.0, %v8118_v58  ;;  %v5625_v39 = vmul.f32 %v4048_v13, %v3983_v26  ;;  %vm1436_vm3 = vcmp.gt.f32.partialorder %v1289_v27, 0.0  ;;  %vm1422_vm6 = vcmp.gt.f32.partialorder %v5384_v10, 0.0 }
 0x1e1   : > { %8127 = vst [vmem:[#allocation107_spill] sm:$0xff] %v5623_v50  ;;  %v5627_v12 = vmul.f32 %v4049_v19, %v3984_v5  ;;  %vm1424_vm2 = vcmp.gt.f32.partialorder %v5394_v6, 0.0  ;;  %v3986_v0 = vsel %vm1436_vm3, 1.0, %v8118_v58  ;;  %v3973_v26 = vsel %vm1423_vm12, 1.0, %v8118_v58 }
 0x1e2   : > { %2695 = vst.msk [vmem:[#allocation2 + $0x28] sm:$0xff] %vm7990_vm5, %v5623_v50  ;;  %v2740_v27 = vmul.f32 %v5625_v39, %v5123_v8  ;;  %v5643_v5 = vmul.f32 %v4050_v22, %v3985_v45  ;;  %v5645_v23 = vmul.f32 %v4051_v16, %v3986_v0  ;;  %v2726_v30 = vmul.f32 %v1853_v51, %v5047_v28 }
 0x1e3   : > { %v2727_v6 = vmul.f32 %v1854_v2, %v5049_v29  ;;  %v2919_v13 = vadd.f32 %v1854_v2, %v1853_v51  ;;  %v2787_v19 = vadd.f32 %v2786_v48, %v2724_v11  ;;  %vm7940_vm13 = vcmp.ne.s32.totalorder %v5468_v3, %v5031_v21 }
 0x1e4   : > { %vm7891_vm3 = vcmp.ne.s32.totalorder %v5468_v3, %v5039_v24  ;;  %v3974_v44 = vsel %vm1424_vm2, 1.0, %v8118_v58  ;;  %v5656_v45 = vadd.f32 %v5645_v23, %v5643_v5  ;;  %vm7888_vm8 = vcmp.ne.s32.totalorder %v5474_v57, %v5021_v14 }
 0x1e5   : > { %vm7893_vm12 = vcmp.ne.s32.totalorder %v5474_v57, %v5023_v15  ;;  %v2741_v2 = vmul.f32 %v5627_v12, %v5125_v9  ;;  %v2807_v11 = vadd.f32 %v2806_v63, %v2740_v27  ;;  %v1855_v51 = vmul.f32 %v5508_v17, %v3971_v42  ;;  %v5671_v22 = vpop.f32.mrf.mxu2  ;;  %v1243_v17 = vpop.f32.mrf.mxu0 }
 0x1e6   : > { %v3972_v48 = vsel %vm1422_vm6, 1.0, %v8118_v58  ;;  %v1857_v35 = vmul.f32 %v5528_v55, %v3973_v26  ;;  %v5673_v16 = vpop.f32.mrf.mxu3  ;;  %v5677_v61 = vadd.f32 %v5570_v18, %v5547_v1  ;;  %vm1425_vm2 = vcmp.gt.f32.partialorder %v5422_v59, 0.0  ;;  %v2083_v63 = vpop.xlane.xlu0 %2082 }
 0x1e7   : > { %v4054_v10 = vsel %vm1681_vm15, 1.0, %v8118_v58  ;;  %v5685_v55 = vadd.f32 %v2807_v11, %v2741_v2  ;;  %v1858_v42 = vmul.f32 %v5534_v7, %v3974_v44  ;;  %v5689_v0 = vmax.f32 %v5658_v25, %v2083_v63  ;;  %v1292_v1 = vpop.f32.mrf.mxu1 }
 0x1e8   : > { %vm1439_vm6 = vcmp.gt.f32.partialorder %v1243_v17, 0.0  ;;  %v4055_v59 = vsel %vm1682_vm1, 1.0, %v8118_v58  ;;  %v1856_v4 = vmul.f32 %v5514_v31, %v3972_v48  ;;  %vm1440_vm14 = vcmp.gt.f32.partialorder %v1292_v1, 0.0 }
 0x1e9   : > { %v3989_v18 = vsel %vm1439_vm6, 1.0, %v8118_v58  ;;  %v2791_v26 = vadd.f32 %v2727_v6, %v2726_v30  ;;  %v3975_v27 = vsel %vm1425_vm2, 1.0, %v8118_v58  ;;  %v3976_v7 = vsel %vm1426_vm4, 1.0, %v8118_v58  ;;  %2696 = vst.msk [vmem:[#allocation2 + $0x30] sm:$0xff] %vm7990_vm5, %v5689_v0 }
 0x1ea   : > { %v1873_v44 = vmul.f32 %v4054_v10, %v3989_v18  ;;  %v3990_v2 = vsel %vm1440_vm14, 1.0, %v8118_v58  ;;  %v2728_v11 = vmul.f32 %v1855_v51, %v5063_v36  ;;  %v2924_v63 = vadd.f32 %v1858_v42, %v1857_v35 }
 0x1eb   : > { %v1874_v17 = vmul.f32 %v4055_v59, %v3990_v2  ;;  %v2788_v31 = vadd.f32 %v2787_v19, %v5615_v56  ;;  %v2730_v48 = vmul.f32 %v1857_v35, %v5067_v40  ;;  %v2731_v30 = vmul.f32 %v1858_v42, %v5069_v41  ;;  %v5720_v42 = vld [vmem:[#allocation2 + $0x38] sm:$0xff] }
 0x1ec   : > { %v2746_v6 = vmul.f32 %v1873_v44, %v5147_v33  ;;  %vm7910_vm4 = vcmp.ne.s32.totalorder %v5474_v57, %v5031_v21  ;;  %v2920_v1 = vadd.f32 %v2919_v13, %v1855_v51  ;;  %vm7912_vm2 = vcmp.ne.s32.totalorder %v5479_v60, %v5021_v14  ;;  %8129 = vst [vmem:[#allocation109_spill] sm:$0xff] %v5720_v42 }
 0x1ed   : > { %vm7911_vm14 = vcmp.ne.s32.totalorder %v5479_v60, %v5023_v15  ;;  %v1859_v10 = vmul.f32 %v5576_v52, %v3975_v27  ;;  %v5715_v56 = vmul.f32 %v5582_v38, %v3976_v7  ;;  %v2747_v19 = vmul.f32 %v1874_v17, %v5149_v34  ;;  %v1341_v13 = vpop.f32.mrf.mxu2  ;;  %v1245_v7 = vpop.f32.mrf.mxu0 }
 0x1ee   : > { %v5718_v35 = vadd.f32 %v1874_v17, %v1873_v44  ;;  %vm7901_vm6 = vcmp.ne.s32.totalorder %v5474_v57, %v5039_v24  ;;  %v4056_v51 = vsel %vm7940_vm13, 1.0, %v8118_v58  ;;  %v1390_v59 = vpop.f32.mrf.mxu3  ;;  %v4057_v52 = vsel %vm7891_vm3, 1.0, %v8118_v58  ;;  %v2088_v27 = vpop.xlane.xlu1 %2087  ;;  %2789 = vadd.xlane.f32.xlu1 %v2788_v31 }
 0x1ef   : > { %v4058_v38 = vsel %vm7888_vm8, 1.0, %v8118_v58  ;;  %v4059_v18 = vsel %vm7893_vm12, 1.0, %v8118_v58  ;;  %vm1441_vm11 = vcmp.gt.f32.partialorder %v1341_v13, 0.0  ;;  %vm1442_vm10 = vcmp.gt.f32.partialorder %v1390_v59, 0.0  ;;  %v1294_v8 = vpop.f32.mrf.mxu1 }
 0x1f0   : > { %v2925_v44 = vadd.f32 %v2924_v63, %v1859_v10  ;;  %v2816_v2 = vadd.f32 %v2747_v19, %v2746_v6  ;;  %v3991_v17 = vsel %vm1441_vm11, 1.0, %v8118_v58  ;;  %v3992_v20 = vsel %vm1442_vm10, 1.0, %v8118_v58 }
 0x1f1   : > { %v5743_v9 = vmax.f32 %v5720_v42, %v2088_v27  ;;  %vm1443_vm8 = vcmp.gt.f32.partialorder %v1245_v7, 0.0  ;;  %vm7920_vm3 = vcmp.ne.s32.totalorder %v5459_v32, %v5031_v21  ;;  %v5747_v25 = vmul.f32 %v4056_v51, %v3991_v17 }
 0x1f2   : > { %v5749_v13 = vmul.f32 %v4057_v52, %v3992_v20  ;;  %v3993_v31 = vsel %vm1443_vm8, 1.0, %v8118_v58  ;;  %vm1444_vm12 = vcmp.gt.f32.partialorder %v1294_v8, 0.0  ;;  %v2916_v19 = vadd.f32 %v5677_v61, %v5556_v43 }
 0x1f3   : > { %8130 = vst [vmem:[#allocation110_spill] sm:$0xff] %v5743_v9  ;;  %v5754_v63 = vmul.f32 %v4058_v38, %v3993_v31  ;;  %v3994_v6 = vsel %vm1444_vm12, 1.0, %v8118_v58  ;;  %v2921_v59 = vadd.f32 %v2920_v1, %v1856_v4  ;;  %v2748_v51 = vmul.f32 %v5747_v25, %v5163_v46  ;;  %v5774_v1 = vld [vmem:[#allocation2 + $0x40] sm:$0xff]  ;;  %v8163_v46 = vld [vmem:[#allocation103_spill] sm:$0xff] }
 0x1f4   : > { %2697 = vst.msk [vmem:[#allocation2 + $0x38] sm:$0xff] %vm7990_vm5, %v5743_v9  ;;  %v5761_v27 = vmul.f32 %v4059_v18, %v3994_v6  ;;  %v2926_v20 = vadd.f32 %v2925_v44, %v5715_v56  ;;  %v2729_v8 = vmul.f32 %v1856_v4, %v5065_v37  ;;  %v2732_v52 = vmul.f32 %v1859_v10, %v5083_v49 }
 0x1f5   : > { %v2750_v38 = vmul.f32 %v5754_v63, %v5170_v53  ;;  %v2792_v7 = vadd.f32 %v2791_v26, %v2728_v11  ;;  %v2796_v17 = vadd.f32 %v2731_v30, %v2730_v48  ;;  %2917 = vadd.xlane.f32.xlu2 %v2916_v19  ;;  %v4060_v61 = vsel %vm7910_vm4, 1.0, %v8118_v58  ;;  %8131 = vst [vmem:[#allocation111_spill] sm:$0xff] %v5774_v1  ;;  %v1343_v18 = vpop.f32.mrf.mxu2 }
 0x1f6   : > { %v2751_v43 = vmul.f32 %v5761_v27, %v5172_v54  ;;  %v2749_v4 = vmul.f32 %v5749_v13, %v5165_v47  ;;  %v2817_v10 = vadd.f32 %v2816_v2, %v2748_v51  ;;  %vm1437_vm10 = vcmp.gt.f32.partialorder %v5671_v22, 0.0  ;;  %v1392_v26 = vpop.f32.mrf.mxu3  ;;  %v2093_v44 = vpop.xlane.xlu2 %2092  ;;  %2927 = vadd.xlane.f32.xlu1 %v2926_v20 }
 0x1f7   : > { %v4061_v11 = vsel %vm7901_vm6, 1.0, %v8118_v58  ;;  %v4062_v48 = vsel %vm7912_vm2, 1.0, %v8118_v58  ;;  %v4063_v30 = vsel %vm7911_vm14, 1.0, %v8118_v58  ;;  %vm1445_vm11 = vcmp.gt.f32.partialorder %v1343_v18, 0.0  ;;  %v1248_v2 = vpop.f32.mrf.mxu0  ;;  %v1297_v54 = vpop.f32.mrf.mxu1 }
 0x1f8   : > { %vm1446_vm8 = vcmp.gt.f32.partialorder %v1392_v26, 0.0  ;;  %v5791_v31 = vadd.f32 %v2817_v10, %v2749_v4  ;;  %v2821_v6 = vadd.f32 %v2751_v43, %v2750_v38  ;;  %v3995_v19 = vsel %vm1445_vm11, 1.0, %v8118_v58  ;;  %v8133_v26 = vld [vmem:[#allocation99_spill] sm:$0xff] }
 0x1f9   : > { %v3996_v51 = vsel %vm1446_vm8, 1.0, %v8118_v58  ;;  %v5796_v42 = vmax.f32 %v5774_v1, %v2093_v44  ;;  %vm1447_vm12 = vcmp.gt.f32.partialorder %v1248_v2, 0.0  ;;  %v5798_v53 = vmul.f32 %v4060_v61, %v3995_v19  ;;  %2922 = vadd.xlane.f32.xlu0 %v2921_v59  ;;  %v8138_v44 = vld [vmem:[#allocation87_spill] sm:$0xff]  ;;  %v8140_v19 = vld [vmem:[#allocation104_spill] sm:$0xff] }
 0x1fa   : > { %v5800_v57 = vmul.f32 %v4061_v11, %v3996_v51  ;;  %v3997_v18 = vsel %vm1447_vm12, 1.0, %v8118_v58  ;;  %vm1448_vm6 = vcmp.gt.f32.partialorder %v1297_v54, 0.0  ;;  %v3987_v20 = vsel %vm1437_vm10, 1.0, %v8118_v58  ;;  %v8134_v11 = vld [vmem:[#allocation29_spill] sm:$0xff] }
 0x1fb   : > { %8132 = vst [vmem:[#allocation112_spill] sm:$0xff] %v5796_v42  ;;  %v4052_v38 = vsel %vm7920_vm3, 1.0, %v8118_v58  ;;  %v3998_v43 = vsel %vm1448_vm6, 1.0, %v8118_v58  ;;  %v2793_v61 = vadd.f32 %v2792_v7, %v2729_v8  ;;  %v2752_v4 = vmul.f32 %v5798_v53, %v5183_v62  ;;  %v8141_v51 = vld [vmem:[#allocation105_spill] sm:$0xff] }
 0x1fc   : > { %2698 = vst.msk [vmem:[#allocation2 + $0x40] sm:$0xff] %vm7990_vm5, %v5796_v42  ;;  %v5815_v54 = vmul.f32 %v4062_v48, %v3997_v18  ;;  %v5817_v10 = vmul.f32 %v4063_v30, %v3998_v43  ;;  %v2797_v22 = vadd.f32 %v2796_v17, %v2732_v52  ;;  %vm7938_vm10 = vcmp.ne.s32.totalorder %v8133_v26, %v5021_v14  ;;  %v5833_v52 = vld [vmem:[#allocation2 + $0x48] sm:$0xff]  ;;  %v8137_v17 = vld [vmem:[#allocation49_spill] sm:$0xff]  ;;  %v8142_v43 = vld [vmem:[#allocation38_spill] sm:$0xff] }
 0x1fd   : > { %vm7937_vm11 = vcmp.ne.s32.totalorder %v8133_v26, %v5023_v15  ;;  %vm7914_vm8 = vcmp.ne.s32.totalorder %v5459_v32, %v5039_v24  ;;  %v2733_v59 = vmul.f32 %v5715_v56, %v8134_v11  ;;  %v5827_v8 = vmul.f32 %v4052_v38, %v3987_v20  ;;  %2794 = vadd.xlane.f32.xlu2 %v2793_v61  ;;  %v5847_v20 = vpop.f32.mrf.mxu2  ;;  %v6077_v11 = vld [vmem:[#allocation2 + $0x68] sm:$0xff] }
 0x1fe   : > { %v5831_v7 = vadd.f32 %v5817_v10, %v5815_v54  ;;  %8136 = vst [vmem:[#allocation114_spill] sm:$0xff] %v5833_v52  ;;  %v2753_v48 = vmul.f32 %v5800_v57, %v8137_v17  ;;  %v2822_v30 = vadd.f32 %v2821_v6, %v2752_v4  ;;  %v5838_v2 = vadd.s32 80, %v8138_v44  ;;  %v5849_v38 = vpop.f32.mrf.mxu3  ;;  %v2098_v61 = vpop.xlane.xlu0 %2097  ;;  %v8144_v17 = vld [vmem:[#allocation39_spill] sm:$0xff] }
 0x1ff   : > { %v2934_v18 = vadd.f32 %v8141_v51, %v8140_v19  ;;  %vm1438_vm6 = vcmp.gt.f32.partialorder %v5673_v16, 0.0  ;;  %v4053_v56 = vsel %vm7914_vm8, 1.0, %v8118_v58  ;;  %v2742_v6 = vmul.f32 %v5643_v5, %v8142_v43  ;;  %v1250_v4 = vpop.f32.mrf.mxu0  ;;  %v1299_v36 = vpop.f32.mrf.mxu1  ;;  %v8146_v43 = vld [vmem:[#allocation40_spill] sm:$0xff]  ;;  %8179 = vst [vmem:[#allocation130_spill] sm:$0xff] %v6077_v11 }
 0x200   : > { %8135 = vst [vmem:[#allocation113_spill] sm:$0xff] %v5831_v7  ;;  %v4066_v19 = vsel %vm7938_vm10, 1.0, %v8118_v58  ;;  %v2798_v51 = vadd.f32 %v2797_v22, %v2733_v59  ;;  %v5857_v1 = vadd.f32 %v2822_v30, %v2753_v48  ;;  %v2743_v62 = vmul.f32 %v5645_v23, %v8144_v17  ;;  %v6128_v7 = vld [vmem:[#allocation2 + $0x70] sm:$0xff] }
 0x201   : > { %8139 = vst [vmem:[#allocation87_spill] sm:$0xff] %v5838_v2  ;;  %v5862_v37 = vmax.f32 %v5833_v52, %v2098_v61  ;;  %vm1451_vm12 = vcmp.gt.f32.partialorder %v1250_v4, 0.0  ;;  %v4067_v5 = vsel %vm7937_vm11, 1.0, %v8118_v58  ;;  %v2744_v29 = vmul.f32 %v5827_v8, %v8146_v43  ;;  %v8148_v4 = vld [vmem:[#allocation54_spill] sm:$0xff] }
 0x202   : > { %8143 = vst [vmem:[#allocation104_spill] sm:$0xff] %v5857_v1  ;;  %v3988_v22 = vsel %vm1438_vm6, 1.0, %v8118_v58  ;;  %v4001_v59 = vsel %vm1451_vm12, 1.0, %v8118_v58  ;;  %vm1452_vm4 = vcmp.gt.f32.partialorder %v1299_v36, 0.0  ;;  %2799 = vadd.xlane.f32.xlu0 %v2798_v51  ;;  %v2935_v61 = vadd.f32 %v2934_v18, %v5625_v39  ;;  %v8149_v18 = vld [vmem:[#allocation55_spill] sm:$0xff] }
 0x203   : > { %8145 = vst [vmem:[#allocation105_spill] sm:$0xff] %v5862_v37  ;;  %v1885_v48 = vmul.f32 %v4066_v19, %v4001_v59  ;;  %v4002_v30 = vsel %vm1452_vm4, 1.0, %v8118_v58  ;;  %vm7936_vm14 = vcmp.ne.s32.totalorder %v8133_v26, %v5031_v21  ;;  %vm7935_vm6 = vcmp.ne.s32.totalorder %v8133_v26, %v5039_v24 }
 0x204   : > { %2699 = vst.msk [vmem:[#allocation2 + $0x48] sm:$0xff] %vm7990_vm5, %v5862_v37  ;;  %vm7919_vm12 = vcmp.ne.s32.totalorder %v5838_v2, %v5021_v14  ;;  %v1886_v36 = vmul.f32 %v4067_v5, %v4002_v30  ;;  %vm7925_vm2 = vcmp.ne.s32.totalorder %v5838_v2, %v5023_v15  ;;  %v5889_v16 = vadd.s32 88, %v8138_v44  ;;  %v5901_v30 = vld [vmem:[#allocation2 + $0x50] sm:$0xff] }
 0x205   : > { %v2758_v19 = vmul.f32 %v1885_v48, %v8148_v4  ;;  %v2811_v51 = vadd.f32 %v2743_v62, %v2742_v6  ;;  %v5892_v39 = vmul.f32 %v4053_v56, %v3988_v22  ;;  %v4068_v5 = vsel %vm7936_vm14, 1.0, %v8118_v58  ;;  %8151 = vst [vmem:[#allocation117_spill] sm:$0xff] %v5901_v30  ;;  %v1348_v52 = vpop.f32.mrf.mxu2 }
 0x206   : > { %8147 = vst [vmem:[#allocation115_spill] sm:$0xff] %v5889_v16  ;;  %v2759_v59 = vmul.f32 %v1886_v36, %v8149_v18  ;;  %v5895_v23 = vadd.f32 %v1886_v36, %v1885_v48  ;;  %v1397_v43 = vpop.f32.mrf.mxu3  ;;  %v4069_v62 = vsel %vm7935_vm6, 1.0, %v8118_v58  ;;  %v4070_v56 = vsel %vm7919_vm12, 1.0, %v8118_v58  ;;  %v2103_v48 = vpop.xlane.xlu1 %2102 }
 0x207   : > { %v2936_v6 = vadd.f32 %v2935_v61, %v5627_v12  ;;  %v2812_v22 = vadd.f32 %v2811_v51, %v2744_v29  ;;  %vm1453_vm4 = vcmp.gt.f32.partialorder %v1348_v52, 0.0  ;;  %vm1454_vm8 = vcmp.gt.f32.partialorder %v1397_v43, 0.0  ;;  %v1253_v36 = vpop.f32.mrf.mxu0  ;;  %v1302_v12 = vpop.f32.mrf.mxu1  ;;  %v8155_v51 = vld [vmem:[#allocation41_spill] sm:$0xff] }
 0x208   : > { %8150 = vst [vmem:[#allocation116_spill] sm:$0xff] %v5895_v23  ;;  %v4071_v17 = vsel %vm7925_vm2, 1.0, %v8118_v58  ;;  %v2831_v28 = vadd.f32 %v2759_v59, %v2758_v19  ;;  %v4003_v32 = vsel %vm1453_vm4, 1.0, %v8118_v58  ;;  %v4004_v47 = vsel %vm1454_vm8, 1.0, %v8118_v58 }
 0x209   : > { %v5919_v18 = vmax.f32 %v5901_v30, %v2103_v48  ;;  %vm1455_vm12 = vcmp.gt.f32.partialorder %v1253_v36, 0.0  ;;  %v5921_v29 = vmul.f32 %v4068_v5, %v4003_v32  ;;  %v5923_v52 = vmul.f32 %v4069_v62, %v4004_v47  ;;  %v8156_v47 = vld [vmem:[#allocation56_spill] sm:$0xff]  ;;  %v8157_v62 = vld [vmem:[#allocation58_spill] sm:$0xff]  ;;  %v8158_v48 = vld [vmem:[#allocation59_spill] sm:$0xff] }
 0x20a   : > { %v4005_v43 = vsel %vm1455_vm12, 1.0, %v8118_v58  ;;  %vm1456_vm3 = vcmp.gt.f32.partialorder %v1302_v12, 0.0  ;;  %2937 = vadd.xlane.f32.xlu0 %v2936_v6  ;;  %v2745_v59 = vmul.f32 %v5892_v39, %v8155_v51  ;;  %vm7924_vm8 = vcmp.ne.s32.totalorder %v5838_v2, %v5031_v21 }
 0x20b   : > { %8152 = vst [vmem:[#allocation118_spill] sm:$0xff] %v5919_v18  ;;  %v5928_v61 = vmul.f32 %v4070_v56, %v4005_v43  ;;  %v4006_v19 = vsel %vm1456_vm3, 1.0, %v8118_v58  ;;  %vm7929_vm4 = vcmp.ne.s32.totalorder %v5838_v2, %v5039_v24  ;;  %v2760_v32 = vmul.f32 %v5921_v29, %v8156_v47  ;;  %v8160_v43 = vld [vmem:[#allocation57_spill] sm:$0xff] }
 0x20c   : > { %8153 = vst [vmem:[#allocation119_spill] sm:$0xff] %v5921_v29  ;;  %v5939_v5 = vmul.f32 %v4071_v17, %v4006_v19  ;;  %vm7933_vm12 = vcmp.ne.s32.totalorder %v5889_v16, %v5021_v14  ;;  %vm7931_vm3 = vcmp.ne.s32.totalorder %v5889_v16, %v5023_v15  ;;  %v2813_v6 = vadd.f32 %v2812_v22, %v2745_v59  ;;  %v5953_v17 = vld [vmem:[#allocation2 + $0x58] sm:$0xff] }
 0x20d   : > { %8154 = vst [vmem:[#allocation120_spill] sm:$0xff] %v5923_v52  ;;  %v2762_v56 = vmul.f32 %v5928_v61, %v8157_v62  ;;  %v4072_v12 = vsel %vm7924_vm8, 1.0, %v8118_v58  ;;  %v2761_v19 = vmul.f32 %v5923_v52, %v8160_v43  ;;  %v2832_v30 = vadd.f32 %v2831_v28, %v2760_v32  ;;  %v8188_v52 = vld [vmem:[#allocation69_spill] sm:$0xff] }
 0x20e   : > { %2700 = vst.msk [vmem:[#allocation2 + $0x50] sm:$0xff] %vm7990_vm5, %v5919_v18  ;;  %v2763_v36 = vmul.f32 %v5939_v5, %v8158_v48  ;;  %v2949_v51 = vadd.f32 %v5761_v27, %v5754_v63  ;;  %v1351_v18 = vpop.f32.mrf.mxu2  ;;  %v1400_v62 = vpop.f32.mrf.mxu3  ;;  %v4073_v22 = vsel %vm7929_vm4, 1.0, %v8118_v58  ;;  %v4075_v59 = vsel %vm7931_vm3, 1.0, %v8118_v58 }
 0x20f   : > { %8159 = vst [vmem:[#allocation121_spill] sm:$0xff] %v5953_v17  ;;  %v4074_v28 = vsel %vm7933_vm12, 1.0, %v8118_v58  ;;  %vm1457_vm8 = vcmp.gt.f32.partialorder %v1351_v18, 0.0  ;;  %vm1458_vm2 = vcmp.gt.f32.partialorder %v1400_v62, 0.0  ;;  %v2108_v63 = vpop.xlane.xlu2 %2107  ;;  %v1255_v27 = vpop.f32.mrf.mxu0  ;;  %v5971_v32 = vadd.f32 %v2832_v30, %v2761_v19  ;;  %2247 = vperm.xlu1 %4278, %v8163_v46   ;;  %v8165_v19 = vld [vmem:[#allocation60_spill] sm:$0xff] }
 0x210   : > { %v2836_v48 = vadd.f32 %v2763_v36, %v2762_v56  ;;  %v4007_v2 = vsel %vm1457_vm8, 1.0, %v8118_v58  ;;  %v4008_v43 = vsel %vm1458_vm2, 1.0, %v8118_v58  ;;  %v5976_v47 = vmax.f32 %v5953_v17, %v2108_v63  ;;  %v1304_v4 = vpop.f32.mrf.mxu1  ;;  %v8168_v63 = vld [vmem:[#allocation94_spill] sm:$0xff] }
 0x211   : > { %8161 = vst [vmem:[#allocation122_spill] sm:$0xff] %v5971_v32  ;;  %vm1459_vm4 = vcmp.gt.f32.partialorder %v1255_v27, 0.0  ;;  %v5979_v26 = vmul.f32 %v4072_v12, %v4007_v2  ;;  %v5981_v18 = vmul.f32 %v4073_v22, %v4008_v43  ;;  %vm1460_vm3 = vcmp.gt.f32.partialorder %v1304_v4, 0.0  ;;  %v6005_v27 = vld [vmem:[#allocation2 + $0x60] sm:$0xff]  ;;  %v8180_v32 = vld [vmem:[#allocation101_spill] sm:$0xff] }
 0x212   : > { %8162 = vst [vmem:[#allocation123_spill] sm:$0xff] %v5976_v47  ;;  %v4009_v30 = vsel %vm1459_vm4, 1.0, %v8118_v58  ;;  %v5985_v62 = vadd.s32 96, %v8138_v44  ;;  %v4010_v56 = vsel %vm1460_vm3, 1.0, %v8118_v58  ;;  %2814 = vadd.xlane.f32.xlu0 %v2813_v6  ;;  %v2950_v36 = vadd.f32 %v2949_v51, %v5798_v53  ;;  %v8170_v6 = vld [vmem:[#allocation61_spill] sm:$0xff] }
 0x213   : > { %2701 = vst.msk [vmem:[#allocation2 + $0x58] sm:$0xff] %vm7990_vm5, %v5976_v47  ;;  %v2764_v2 = vmul.f32 %v5979_v26, %v8165_v19  ;;  %v5993_v12 = vmul.f32 %v4075_v59, %v4010_v56  ;;  %v5995_v43 = vmul.f32 %v4074_v28, %v4009_v30  ;;  %v5998_v4 = vadd.s32 24, %v8138_v44 }
 0x214   : > { %8164 = vst [vmem:[#allocation124_spill] sm:$0xff] %v5985_v62  ;;  %v2765_v53 = vmul.f32 %v5981_v18, %v8170_v6  ;;  %vm7934_vm2 = vcmp.ne.s32.totalorder %v5985_v62, %v5021_v14  ;;  %v2951_v30 = vadd.f32 %v2950_v36, %v5800_v57  ;;  %vm7939_vm8 = vcmp.ne.s32.totalorder %v5985_v62, %v5023_v15 }
 0x215   : > { %8166 = vst [vmem:[#allocation125_spill] sm:$0xff] %v5998_v4  ;;  %v6002_v22 = vadd.f32 %v5993_v12, %v5995_v43  ;;  %2242 = vperm.xlu2 %4279, %v8168_v63   ;;  %v2837_v51 = vadd.f32 %v2836_v48, %v2764_v2  ;;  %v6019_v56 = vadd.s32 104, %v8138_v44  ;;  %v4078_v48 = vsel %vm7934_vm2, 1.0, %v8118_v58 }
 0x216   : > { %8169 = vst [vmem:[#allocation127_spill] sm:$0xff] %v6005_v27  ;;  %v6011_v59 = vpop.f32.mrf.mxu2  ;;  %v6013_v28 = vpop.f32.mrf.mxu3  ;;  %vm7952_vm4 = vcmp.ne.s32.totalorder %v5998_v4, %v5023_v15  ;;  %v4079_v63 = vsel %vm7939_vm8, 1.0, %v8118_v58  ;;  %vm1707_vm12 = vcmp.ne.s32.totalorder %v5985_v62, %v5031_v21  ;;  %vm7944_vm2 = vcmp.ne.s32.totalorder %v5998_v4, %v5021_v14 }
 0x217   : > { %8167 = vst [vmem:[#allocation126_spill] sm:$0xff] %v6002_v22  ;;  %v2113_v17 = vpop.xlane.xlu0 %2112  ;;  %v1258_v46 = vpop.f32.mrf.mxu0  ;;  %v6025_v2 = vadd.f32 %v2837_v51, %v2765_v53  ;;  %v8173_v51 = vld [vmem:[#allocation95_spill] sm:$0xff]  ;;  %vm7989_vm10 = vcmp.ne.s32.totalorder %v5998_v4, %v5031_v21  ;;  %vm1708_vm8 = vcmp.ne.s32.totalorder %v5985_v62, %v5039_v24  ;;  %vm7955_vm13 = vcmp.ne.s32.totalorder %v6019_v56, %v5023_v15 }
 0x218   : > { %8171 = vst [vmem:[#allocation128_spill] sm:$0xff] %v6019_v56  ;;  %v6030_v57 = vmax.f32 %v6005_v27, %v2113_v17  ;;  %vm1463_vm3 = vcmp.gt.f32.partialorder %v1258_v46, 0.0  ;;  %v1307_v36 = vpop.f32.mrf.mxu1  ;;  %vm1428_vm14 = vcmp.gt.f32.partialorder %v8173_v51, 0.0  ;;  %v8174_v17 = vld [vmem:[#allocation93_spill] sm:$0xff]  ;;  %v6055_v19 = vadd.s32 112, %v8138_v44 }
 0x219   : > { %8172 = vst [vmem:[#allocation129_spill] sm:$0xff] %v6025_v2  ;;  %v4013_v53 = vsel %vm1463_vm3, 1.0, %v8118_v58  ;;  %vm1464_vm6 = vcmp.gt.f32.partialorder %v1307_v36, 0.0  ;;  %vm1427_vm11 = vcmp.gt.f32.partialorder %v8174_v17, 0.0  ;;  %vm7954_vm3 = vcmp.ne.s32.totalorder %v6019_v56, %v5021_v14  ;;  %v8177_v2 = vld [vmem:[#allocation67_spill] sm:$0xff] }
 0x21a   : > { %2702 = vst.msk [vmem:[#allocation2 + $0x60] sm:$0xff] %vm7990_vm5, %v6030_v57  ;;  %v1897_v46 = vmul.f32 %v4078_v48, %v4013_v53  ;;  %v4014_v6 = vsel %vm1464_vm6, 1.0, %v8118_v58  ;;  %2952 = vadd.xlane.f32.xlu0 %v2951_v30  ;;  %v4043_v48 = vsel %vm7952_vm4, 1.0, %v8118_v58  ;;  %v4042_v30 = vsel %vm7944_vm2, 1.0, %v8118_v58  ;;  %v8176_v53 = vld [vmem:[#allocation66_spill] sm:$0xff] }
 0x21b   : > { %v1898_v36 = vmul.f32 %v4079_v63, %v4014_v6  ;;  %8175 = vst [vmem:[#allocation95_spill] sm:$0xff] %v6055_v19  ;;  %vm7975_vm6 = vcmp.ne.s32.totalorder %v6019_v56, %v5031_v21  ;;  %v3978_v63 = vsel %vm1428_vm14, 1.0, %v8118_v58  ;;  %v3977_v6 = vsel %vm1427_vm11, 1.0, %v8118_v58 }
 0x21c   : > { %v2770_v27 = vmul.f32 %v1897_v46, %v8176_v53  ;;  %vm1429_vm2 = vcmp.gt.f32.partialorder %v8180_v32, 0.0  ;;  %v4080_v34 = vsel %vm1707_vm12, 1.0, %v8118_v58  ;;  %v4081_v17 = vsel %vm1708_vm8, 1.0, %v8118_v58 }
 0x21d   : > { %v2771_v22 = vmul.f32 %v1898_v36, %v8177_v2  ;;  %v6075_v47 = vadd.f32 %v1898_v36, %v1897_v46  ;;  %v4082_v46 = vsel %vm7954_vm3, 1.0, %v8118_v58  ;;  %v4083_v2 = vsel %vm7955_vm13, 1.0, %v8118_v58 }
 0x21e   : > { %v1356_v53 = vpop.f32.mrf.mxu2  ;;  %v1405_v51 = vpop.f32.mrf.mxu3  ;;  %vm7974_vm13 = vcmp.ne.s32.totalorder %v6019_v56, %v5039_v24 }
 0x21f   : > { %8178 = vst [vmem:[#allocation93_spill] sm:$0xff] %v6075_v47  ;;  %vm1465_vm14 = vcmp.gt.f32.partialorder %v1356_v53, 0.0  ;;  %vm1466_vm11 = vcmp.gt.f32.partialorder %v1405_v51, 0.0  ;;  %v2118_v36 = vpop.xlane.xlu1 %2117  ;;  %v1260_v47 = vpop.f32.mrf.mxu0  ;;  %v2846_v33 = vadd.f32 %v2771_v22, %v2770_v27  ;;  %v1862_v27 = vmul.f32 %v4043_v48, %v3978_v63 }
 0x220   : > { %v4015_v49 = vsel %vm1465_vm14, 1.0, %v8118_v58  ;;  %v4016_v62 = vsel %vm1466_vm11, 1.0, %v8118_v58  ;;  %v6099_v3 = vmax.f32 %v6077_v11, %v2118_v36  ;;  %vm1467_vm4 = vcmp.gt.f32.partialorder %v1260_v47, 0.0  ;;  %v1309_v1 = vpop.f32.mrf.mxu1  ;;  %v8185_v36 = vld [vmem:[#allocation70_spill] sm:$0xff]  ;;  %v8186_v11 = vld [vmem:[#allocation71_spill] sm:$0xff] }
 0x221   : > { %v6101_v41 = vmul.f32 %v4080_v34, %v4015_v49  ;;  %v6103_v53 = vmul.f32 %v4081_v17, %v4016_v62  ;;  %v4017_v51 = vsel %vm1467_vm4, 1.0, %v8118_v58  ;;  %vm1468_vm3 = vcmp.gt.f32.partialorder %v1309_v1, 0.0  ;;  %v8184_v34 = vld [vmem:[#allocation68_spill] sm:$0xff] }
 0x222   : > { %8181 = vst [vmem:[#allocation101_spill] sm:$0xff] %v6099_v3  ;;  %vm7968_vm14 = vcmp.ne.s32.totalorder %v6055_v19, %v5021_v14  ;;  %v1901_v22 = vmul.f32 %v4082_v46, %v4017_v51  ;;  %v4018_v47 = vsel %vm1468_vm3, 1.0, %v8118_v58  ;;  %vm7966_vm11 = vcmp.ne.s32.totalorder %v6055_v19, %v5023_v15 }
 0x223   : > { %8182 = vst [vmem:[#allocation131_spill] sm:$0xff] %v6101_v41  ;;  %v4044_v49 = vsel %vm7989_vm10, 1.0, %v8118_v58  ;;  %v2772_v1 = vmul.f32 %v6101_v41, %v8184_v34  ;;  %v1902_v62 = vmul.f32 %v4083_v2, %v4018_v47  ;;  %v1861_v17 = vmul.f32 %v4042_v30, %v3977_v6 }
 0x224   : > { %8183 = vst [vmem:[#allocation132_spill] sm:$0xff] %v6103_v53  ;;  %v3979_v46 = vsel %vm1429_vm2, 1.0, %v8118_v58  ;;  %v2774_v51 = vmul.f32 %v1901_v22, %v8185_v36  ;;  %v2773_v23 = vmul.f32 %v6103_v53, %v8188_v52  ;;  %v4084_v2 = vsel %vm7975_vm6, 1.0, %v8118_v58 }
 0x225   : > { %2703 = vst.msk [vmem:[#allocation2 + $0x68] sm:$0xff] %vm7990_vm5, %v6099_v3  ;;  %v2775_v3 = vmul.f32 %v1902_v62, %v8186_v11  ;;  %v6126_v40 = vadd.f32 %v1902_v62, %v1901_v22  ;;  %v2847_v29 = vadd.f32 %v2846_v33, %v2772_v1  ;;  %v4085_v48 = vsel %vm7974_vm13, 1.0, %v8118_v58 }
 0x226   : > { %8187 = vst [vmem:[#allocation68_spill] sm:$0xff] %v6128_v7  ;;  %v1358_v41 = vpop.f32.mrf.mxu2  ;;  %v1407_v32 = vpop.f32.mrf.mxu3  ;;  %v4086_v30 = vsel %vm7968_vm14, 1.0, %v8118_v58  ;;  %v4087_v33 = vsel %vm7966_vm11, 1.0, %v8118_v58  ;;  %vm1450_vm13 = vcmp.gt.f32.partialorder %v5849_v38, 0.0  ;;  %vm7976_vm6 = vcmp.ne.s32.totalorder %v5479_v60, %v5039_v24 }
 0x227   : > { %vm1469_vm2 = vcmp.gt.f32.partialorder %v1358_v41, 0.0  ;;  %vm1470_vm4 = vcmp.gt.f32.partialorder %v1407_v32, 0.0  ;;  %v2123_v63 = vpop.xlane.xlu2 %2122  ;;  %v1263_v6 = vpop.f32.mrf.mxu0  ;;  %v6148_v22 = vadd.f32 %v2847_v29, %v2773_v23  ;;  %v2851_v47 = vadd.f32 %v2775_v3, %v2774_v51  ;;  %v8190_v23 = vld [vmem:[#allocation102_spill] sm:$0xff]  ;;  %v8191_v29 = vld [vmem:[#allocation72_spill] sm:$0xff] }
 0x228   : > { %v4019_v1 = vsel %vm1469_vm2, 1.0, %v8118_v58  ;;  %v4020_v62 = vsel %vm1470_vm4, 1.0, %v8118_v58  ;;  %v6153_v11 = vmax.f32 %v6128_v7, %v2123_v63  ;;  %vm1471_vm3 = vcmp.gt.f32.partialorder %v1263_v6, 0.0  ;;  %v1312_v36 = vpop.f32.mrf.mxu1  ;;  %v8195_v7 = vld [vmem:[#allocation73_spill] sm:$0xff] }
 0x229   : > { %v6155_v56 = vmul.f32 %v4084_v2, %v4019_v1  ;;  %v6157_v53 = vmul.f32 %v4085_v48, %v4020_v62  ;;  %v4021_v41 = vsel %vm1471_vm3, 1.0, %v8118_v58  ;;  %vm1472_vm11 = vcmp.gt.f32.partialorder %v1312_v36, 0.0  ;;  %v8192_v48 = vld [vmem:[#allocation30_spill] sm:$0xff]  ;;  %v8193_v1 = vld [vmem:[#allocation31_spill] sm:$0xff] }
 0x22a   : > { %8189 = vst [vmem:[#allocation69_spill] sm:$0xff] %v6153_v11  ;;  %v4022_v3 = vsel %vm1472_vm11, 1.0, %v8118_v58  ;;  %vm1430_vm2 = vcmp.gt.f32.partialorder %v8190_v23, 0.0  ;;  %v6166_v32 = vmul.f32 %v4086_v30, %v4021_v41  ;;  %v6171_v2 = vadd.s32 120, %v8138_v44 }
 0x22b   : > { %2704 = vst.msk [vmem:[#allocation2 + $0x70] sm:$0xff] %vm7990_vm5, %v6153_v11  ;;  %v2776_v51 = vmul.f32 %v6155_v56, %v8191_v29  ;;  %v6168_v63 = vmul.f32 %v4087_v33, %v4022_v3  ;;  %v2734_v6 = vmul.f32 %v1861_v17, %v8192_v48  ;;  %v1863_v36 = vmul.f32 %v4044_v49, %v3979_v46  ;;  %v8197_v29 = vld [vmem:[#allocation32_spill] sm:$0xff] }
 0x22c   : > { %vm7980_vm4 = vcmp.ne.s32.totalorder %v5998_v4, %v5039_v24  ;;  %v2735_v62 = vmul.f32 %v1862_v27, %v8193_v1  ;;  %v2777_v30 = vmul.f32 %v6157_v53, %v8195_v7  ;;  %v3980_v41 = vsel %vm1430_vm2, 1.0, %v8118_v58 }
 0x22d   : > { %v6179_v23 = vadd.f32 %v6168_v63, %v6166_v32  ;;  %v2852_v33 = vadd.f32 %v2851_v47, %v2776_v51  ;;  %v4045_v49 = vsel %vm7980_vm4, 1.0, %v8118_v58  ;;  %v2736_v48 = vmul.f32 %v1863_v36, %v8197_v29  ;;  %v6196_v51 = vld [vmem:[#allocation2 + $0x78] sm:$0xff] }
 0x22e   : > { %2272 = vperm.xlu0 %4280, %v5862_v37   ;;  %vm1717_vm11 = vcmp.ne.s32.totalorder %v6171_v2, %v5021_v14  ;;  %vm1718_vm3 = vcmp.ne.s32.totalorder %v6171_v2, %v5023_v15  ;;  %v1864_v47 = vmul.f32 %v4045_v49, %v3980_v41  ;;  %8198 = vst [vmem:[#allocation134_spill] sm:$0xff] %v6196_v51 }
 0x22f   : > { %8194 = vst [vmem:[#allocation102_spill] sm:$0xff] %v6179_v23  ;;  %v1265_v46 = vpop.f32.mrf.mxu0  ;;  %v6189_v3 = vadd.f32 %v2852_v33, %v2777_v30  ;;  %v2801_v23 = vadd.f32 %v2735_v62, %v2734_v6  ;;  %v4090_v30 = vsel %vm1717_vm11, 1.0, %v8118_v58  ;;  %v4091_v33 = vsel %vm1718_vm3, 1.0, %v8118_v58 }
 0x230   : > { %v1314_v1 = vpop.f32.mrf.mxu1  ;;  %vm1475_vm2 = vcmp.gt.f32.partialorder %v1265_v46, 0.0  ;;  %v2929_v37 = vadd.f32 %v1862_v27, %v1861_v17 }
 0x231   : > { %8196 = vst [vmem:[#allocation133_spill] sm:$0xff] %v6189_v3  ;;  %vm1476_vm14 = vcmp.gt.f32.partialorder %v1314_v1, 0.0  ;;  %v4025_v7 = vsel %vm1475_vm2, 1.0, %v8118_v58  ;;  %v2128_v3 = vpop.xlane.xlu0 %2127  ;;  %v2802_v62 = vadd.f32 %v2801_v23, %v2736_v48  ;;  %v8200_v1 = vld [vmem:[#allocation33_spill] sm:$0xff]  ;;  %vm7977_vm2 = vcmp.ne.s32.totalorder %v5479_v60, %v5031_v21 }
 0x232   : > { %v4026_v41 = vsel %vm1476_vm14, 1.0, %v8118_v58  ;;  %v6209_v6 = vmax.f32 %v6196_v51, %v2128_v3  ;;  %v6211_v49 = vmul.f32 %v4090_v30, %v4025_v7  ;;  %v2737_v29 = vmul.f32 %v1864_v47, %v8200_v1  ;;  %v8382_v51 = vld [vmem:[#allocation20_spill] sm:$0xff]  ;;  %v8437_v1 = vld [vmem:[#allocation86_spill] sm:$0xff] }
 0x233   : > { %v6213_v46 = vmul.f32 %v4091_v33, %v4026_v41  ;;  %v2930_v17 = vadd.f32 %v2929_v37, %v1863_v36  ;;  %vm1449_vm14 = vcmp.gt.f32.partialorder %v5847_v20, 0.0  ;;  %v4064_v48 = vsel %vm7977_vm2, 1.0, %v8118_v58  ;;  %v8202_v37 = vld [vmem:[#allocation50_spill] sm:$0xff]  ;;  %v8203_v20 = vld [vmem:[#allocation51_spill] sm:$0xff] }
 0x234   : > { %8199 = vst [vmem:[#allocation135_spill] sm:$0xff] %v6209_v6  ;;  %v2803_v27 = vadd.f32 %v2802_v62, %v2737_v29  ;;  %v3999_v7 = vsel %vm1449_vm14, 1.0, %v8118_v58  ;;  %v2755_v29 = vmul.f32 %v5817_v10, %v8203_v20  ;;  %v4000_v36 = vsel %vm1450_vm13, 1.0, %v8118_v58  ;;  %v8205_v10 = vld [vmem:[#allocation53_spill] sm:$0xff] }
 0x235   : > { %2705 = vst.msk [vmem:[#allocation2 + $0x78] sm:$0xff] %vm7990_vm5, %v6209_v6  ;;  %v6220_v4 = vadd.f32 %v6213_v46, %v6211_v49  ;;  %v2931_v11 = vadd.f32 %v2930_v17, %v1864_v47  ;;  %v6230_v23 = vmul.f32 %v4064_v48, %v3999_v7  ;;  %v4065_v3 = vsel %vm7976_vm6, 1.0, %v8118_v58  ;;  %v8204_v47 = vld [vmem:[#allocation52_spill] sm:$0xff] }
 0x236   : > { %v6246_v38 = vmul.f32 %v4065_v3, %v4000_v36  ;;  %v6255_v7 = vpop.permute.xlu1 %2227  ;;  %vm1461_vm13 = vcmp.gt.f32.partialorder %v6011_v59, 0.0  ;;  %vm7979_vm14 = vcmp.ne.s32.totalorder %v5889_v16, %v5031_v21  ;;  %vm1462_vm6 = vcmp.gt.f32.partialorder %v6013_v28, 0.0 }
 0x237   : > { %8201 = vst [vmem:[#allocation136_spill] sm:$0xff] %v6220_v4  ;;  %v2756_v30 = vmul.f32 %v6230_v23, %v8204_v47  ;;  %vm7978_vm2 = vcmp.ne.s32.totalorder %v5889_v16, %v5039_v24  ;;  %v8445_v16 = vld [vmem:[#allocation46_spill] sm:$0xff] }
 0x238   : > { %v2757_v62 = vmul.f32 %v6246_v38, %v8205_v10 }
 0x239   : > { %2804 = vadd.xlane.f32.xlu1 %v2803_v27 }
 0x23e   : > { %2932 = vadd.xlane.f32.xlu2 %v2931_v11  ;;  %v2754_v11 = vmul.f32 %v5815_v54, %v8202_v37  ;;  %v2964_v54 = vadd.f32 %v5939_v5, %v5928_v61  ;;  %v2945_v61 = vadd.f32 %v5718_v35, %v5747_v25  ;;  %v2707_v35 = vld [vmem:[#allocation4 + $0x8] sm:$0xff]  ;;  %v8466_v37 = vld [vmem:[#allocation48_spill] sm:$0xff] }
 0x240   : > { %v2826_v33 = vadd.f32 %v2755_v29, %v2754_v11  ;;  %v2965_v17 = vadd.f32 %v2964_v54, %v5979_v26  ;;  %v6258_v11 = vpop.permute.xlu2 %2232  ;;  %v2706_v29 = vld [vmem:[#allocation4] sm:$0xff]  ;;  %v6266_v26 = vadd.f32 %v2945_v61, %v5749_v13  ;;  %v2708_v13 = vld [vmem:[#allocation4 + $0x10] sm:$0xff]  ;;  %v2940_v61 = vadd.f32 %v5656_v45, %v5827_v8  ;;  %v2905_v45 = vld [vmem:[#allocation5 + $0x38] sm:$0xff] }
 0x241   : > { %v6262_v5 = vpop.permute.xlu0 %2237  ;;  %v4011_v8 = vsel %vm1461_vm13, 1.0, %v8118_v58 }
 0x242   : > { %v2827_v41 = vadd.f32 %v2826_v33, %v2756_v30  ;;  %v2966_v48 = vadd.f32 %v2965_v17, %v5981_v18  ;;  %v2898_v30 = vld [vmem:[#allocation5] sm:$0xff] }
 0x244   : > { %v2828_v27 = vadd.f32 %v2827_v41, %v2757_v62  ;;  %v2900_v41 = vld [vmem:[#allocation5 + $0x10] sm:$0xff] }
 0x252   : > { %2257 = vperm.xlu1 %4278, %v5689_v0  }
 0x256   : > { %2252 = vperm.xlu2 %4279, %v5623_v50   ;;  %v8242_v50 = vld [vmem:[#allocation76_spill] sm:$0xff] }
 0x258   : > { %2829 = vadd.xlane.f32.xlu0 %v2828_v27  ;;  %v2899_v27 = vld [vmem:[#allocation5 + $0x8] sm:$0xff] }
 0x260   : > { %2967 = vadd.xlane.f32.xlu0 %v2966_v48 }
 0x261   : > { %v2790_v36 = vpop.xlane.xlu1 %2789 }
 0x262   : > { %v2866_v3 = vadd.f32 %v2790_v36, %v2706_v29 }
 0x264   : > { %2882 = vst.msk [vmem:[#allocation4] sm:$0xff] %vm7990_vm5, %v2866_v3 }
 0x268   : > { %v2918_v33 = vpop.xlane.xlu2 %2917 }
 0x269   : > { %v2994_v18 = vadd.f32 %v2918_v33, %v2898_v30  ;;  %v2928_v54 = vpop.xlane.xlu1 %2927  ;;  %v2902_v30 = vld [vmem:[#allocation5 + $0x20] sm:$0xff]  ;;  %v2941_v33 = vadd.f32 %v2940_v61, %v5892_v39 }
 0x26a   : > { %v2996_v62 = vadd.f32 %v2928_v54, %v2900_v41  ;;  %v2711_v54 = vld [vmem:[#allocation4 + $0x28] sm:$0xff] }
 0x26b   : > { %3010 = vst.msk [vmem:[#allocation5] sm:$0xff] %vm7990_vm5, %v2994_v18 }
 0x26c   : > { %3012 = vst.msk [vmem:[#allocation5 + $0x10] sm:$0xff] %vm7990_vm5, %v2996_v62  ;;  %v2923_v17 = vpop.xlane.xlu0 %2922 }
 0x26d   : > { %v2995_v25 = vadd.f32 %v2923_v17, %v2899_v27 }
 0x26f   : > { %3011 = vst.msk [vmem:[#allocation5 + $0x8] sm:$0xff] %vm7990_vm5, %v2995_v25 }
 0x270   : > { %v2795_v48 = vpop.xlane.xlu2 %2794 }
 0x271   : > { %v2867_v29 = vadd.f32 %v2795_v48, %v2707_v35  ;;  %v8207_v35 = vld [vmem:[#allocation62_spill] sm:$0xff] }
 0x272   : > { %v2766_v48 = vmul.f32 %v5995_v43, %v8207_v35  ;;  %v2715_v35 = vld [vmem:[#allocation4 + $0x48] sm:$0xff] }
 0x273   : > { %2883 = vst.msk [vmem:[#allocation4 + $0x8] sm:$0xff] %vm7990_vm5, %v2867_v29  ;;  %v4012_v29 = vsel %vm1462_vm6, 1.0, %v8118_v58  ;;  %vm8215_vm6 = vcmp.lt.s32.totalorder %v5021_v14, 640 }
 0x274   : > { %2287 = vperm.xlu0 %4280, %v6030_v57   ;;  %vm1929_vm13 = vmand %vm8215_vm6, %vm1665_vm0  ;;  %vm8220_vm0 = vcmp.lt.s32.totalorder %v5031_v21, 640 }
 0x275   : > { %v2800_v36 = vpop.xlane.xlu0 %2799 }
 0x276   : > { %v2868_v3 = vadd.f32 %v2800_v36, %v2708_v13  ;;  %v4077_v13 = vsel %vm7978_vm2, 1.0, %v8118_v58  ;;  %v8208_v36 = vld [vmem:[#allocation64_spill] sm:$0xff]  ;;  %vm8216_vm2 = vcmp.lt.s32.totalorder %v5023_v15, 640 }
 0x278   : > { %2884 = vst.msk [vmem:[#allocation4 + $0x10] sm:$0xff] %vm7990_vm5, %v2868_v3  ;;  %v6306_v3 = vmul.f32 %v4077_v13, %v4012_v29  ;;  %v8213_v13 = vld [vmem:[#allocation113_spill] sm:$0xff] }
 0x27c   : > { %2942 = vadd.xlane.f32.xlu1 %v2941_v33 }
 0x27d   : > { %v2938_v41 = vpop.xlane.xlu0 %2937 }
 0x27e   : > { %v2998_v18 = vadd.f32 %v2938_v41, %v2902_v30 }
 0x27f   : > { %2809 = vadd.xlane.f32.xlu2 %v5685_v55  ;;  %v4076_v55 = vsel %vm7979_vm14, 1.0, %v8118_v58  ;;  %vm1930_vm14 = vmand %vm8216_vm2, %vm1666_vm7  ;;  %vm7986_vm2 = vcmp.ne.s32.totalorder %v6055_v19, %v5031_v21 }
 0x280   : > { %3014 = vst.msk [vmem:[#allocation5 + $0x20] sm:$0xff] %vm7990_vm5, %v2998_v18  ;;  %v6289_v25 = vmul.f32 %v4076_v55, %v4011_v8  ;;  %v8210_v18 = vld [vmem:[#allocation119_spill] sm:$0xff]  ;;  %v2709_v55 = vld [vmem:[#allocation4 + $0x18] sm:$0xff]  ;;  %vm6350_vm7 = vmand %vm8220_vm0, %vm1667_vm9  ;;  %vm8227_vm9 = vcmp.lt.s32.totalorder %v5023_v15, 640 }
 0x281   : > { %v6312_v41 = vpop.permute.xlu1 %2247 }
 0x282   : > { %v2768_v28 = vmul.f32 %v6289_v25, %v8208_v36  ;;  %v8414_v36 = vld [vmem:[#allocation35_spill] sm:$0xff] }
 0x284   : > { %2819 = vadd.xlane.f32.xlu1 %v5791_v31  ;;  %v8206_v31 = vld [vmem:[#allocation63_spill] sm:$0xff] }
 0x285   : > { %v2815_v62 = vpop.xlane.xlu0 %2814  ;;  %v2767_v59 = vmul.f32 %v5993_v12, %v8206_v31  ;;  %v8209_v12 = vld [vmem:[#allocation65_spill] sm:$0xff] }
 0x286   : > { %v2871_v27 = vadd.f32 %v2815_v62, %v2711_v54  ;;  %v2769_v33 = vmul.f32 %v6306_v3, %v8209_v12  ;;  %v8211_v54 = vld [vmem:[#allocation116_spill] sm:$0xff]  ;;  %v8409_v12 = vld [vmem:[#allocation98_spill] sm:$0xff] }
 0x287   : > { %v2841_v61 = vadd.f32 %v2767_v59, %v2766_v48  ;;  %v2960_v62 = vadd.f32 %v8211_v54, %v8210_v18  ;;  %v2901_v59 = vld [vmem:[#allocation5 + $0x18] sm:$0xff] }
 0x288   : > { %2887 = vst.msk [vmem:[#allocation4 + $0x28] sm:$0xff] %vm7990_vm5, %v2871_v27  ;;  %v6316_v27 = vpop.permute.xlu2 %2242 }
 0x289   : > { %v2842_v30 = vadd.f32 %v2841_v61, %v2768_v28  ;;  %v2955_v28 = vadd.f32 %v8213_v13, %v6230_v23  ;;  %v8218_v23 = vld [vmem:[#allocation27_spill] sm:$0xff]  ;;  %v1410_v13 = vpop.f32.mrf.mxu3 }
 0x28a   : > { %v2170_v54 = vsel %vm1930_vm14, %v8218_v23, -1e+30  ;;  %vm8224_vm14 = vmmov %vm8215_vm6 }
 0x28b   : > { %v2843_v43 = vadd.f32 %v2842_v30, %v2769_v33  ;;  %v8214_v30 = vld [vmem:[#allocation90_spill] sm:$0xff]  ;;  %v1361_v33 = vpop.f32.mrf.mxu2  ;;  %vm6361_vm6 = vmand %vm8224_vm14, %vm1681_vm15  ;;  %vm1474_vm15 = vcmp.gt.f32.partialorder %v1410_v13, 0.0  ;;  %v8239_v13 = vld [vmem:[#allocation75_spill] sm:$0xff] }
 0x28c   : > { %vm1473_vm4 = vcmp.gt.f32.partialorder %v1361_v33, 0.0 }
 0x28d   : > { %v2953_v39 = vpop.xlane.xlu0 %2952 }
 0x28e   : > { %v3001_v17 = vadd.f32 %v2953_v39, %v2905_v45  ;;  %v8212_v45 = vld [vmem:[#allocation120_spill] sm:$0xff] }
 0x28f   : > { %v6319_v8 = vadd.f32 %v2960_v62, %v8212_v45  ;;  %v8219_v45 = vld [vmem:[#allocation104_spill] sm:$0xff] }
 0x290   : > { %3017 = vst.msk [vmem:[#allocation5 + $0x38] sm:$0xff] %vm7990_vm5, %v3001_v17 }
 0x297   : > { %2262 = vperm.xlu2 %4279, %v5743_v9  }
 0x29d   : > { %2267 = vperm.xlu1 %4278, %v5796_v42  }
 0x29e   : > { %2844 = vadd.xlane.f32.xlu0 %v2843_v43  ;;  %v8217_v43 = vld [vmem:[#allocation26_spill] sm:$0xff] }
 0x29f   : > { %v2169_v18 = vsel %vm1929_vm13, %v8217_v43, -1e+30  ;;  %vm6375_vm13 = vmand %vm8227_vm9, %vm1682_vm1  ;;  %vm8233_vm1 = vcmp.lt.s32.totalorder %v5039_v24, 640 }
 0x2a0   : > { %v6327_v61 = vpop.permute.xlu0 %2272  ;;  %v2313_v62 = vsub.f32 %v2169_v18, %v6262_v5 }
 0x2ac   : > { %v2805_v39 = vpop.xlane.xlu1 %2804 }
 0x2ad   : > { %v2869_v17 = vadd.f32 %v2805_v39, %v2709_v55  ;;  %v2314_v55 = vsub.f32 %v2170_v54, %v6262_v5  ;;  %v2714_v39 = vld [vmem:[#allocation4 + $0x40] sm:$0xff]  ;;  %v8230_v54 = vld [vmem:[#allocation28_spill] sm:$0xff] }
 0x2af   : > { %2885 = vst.msk [vmem:[#allocation4 + $0x18] sm:$0xff] %vm7990_vm5, %v2869_v17  ;;  %v8223_v17 = vld [vmem:[#allocation97_spill] sm:$0xff]  ;;  %v2387_v18 = vmul.f32 1.442695, %v2314_v55 }
 0x2b0   : > { %vm8243_vm14 = vcmp.ne.s32.totalorder %v8223_v17, %v5031_v21 }
 0x2b1   : > { %v2933_v48 = vpop.xlane.xlu2 %2932 }
 0x2b2   : > { %v2997_v29 = vadd.f32 %v2933_v48, %v2901_v59  ;;  %2302 = vperm.xlu0 %4280, %v6209_v6   ;;  %v4023_v48 = vsel %vm1473_vm4, 1.0, %v8118_v58  ;;  %vm8232_vm4 = vcmp.ne.s32.totalorder %v8214_v30, %v5039_v24  ;;  %v8238_v30 = vld [vmem:[#allocation74_spill] sm:$0xff]  ;;  %v4024_v59 = vsel %vm1474_vm15, 1.0, %v8118_v58 }
 0x2b3   : > { %vm6390_vm0 = vmand %vm8233_vm1, %vm8232_vm4  ;;  %vm8249_vm15 = vcmp.lt.s32.totalorder %v5021_v14, 640  ;;  %v8407_v6 = vld [vmem:[#allocation30_spill] sm:$0xff] }
 0x2b4   : > { %3013 = vst.msk [vmem:[#allocation5 + $0x18] sm:$0xff] %vm7990_vm5, %v2997_v29  ;;  %v4088_v29 = vsel %vm7986_vm2, 1.0, %v8118_v58 }
 0x2b5   : > { %v6382_v42 = vmul.f32 %v4088_v29, %v4023_v48  ;;  %v2778_v29 = vmul.f32 %v6166_v32, %v8238_v30  ;;  %v8257_v30 = vld [vmem:[#allocation44_spill] sm:$0xff] }
 0x2b7   : > { %8231 = vst [vmem:[#allocation51_spill] sm:$0xff] %v6382_v42 }
 0x2c0   : > { %2947 = vadd.xlane.f32.xlu2 %v6266_v26  ;;  %v2956_v26 = vadd.f32 %v2955_v28, %v6246_v38 }
 0x2c4   : > { %v2258_v23 = vpop.permute.xlu1 %2257 }
 0x2c7   : > { %2957 = vadd.xlane.f32.xlu1 %v2956_v26  ;;  %v2385_v26 = vmul.f32 1.442695, %v2313_v62  ;;  %v8236_v62 = vld [vmem:[#allocation42_spill] sm:$0xff] }
 0x2c8   : > { %2824 = vadd.xlane.f32.xlu2 %v8219_v45  ;;  %v2171_v45 = vsel %vm6350_vm7, %v8230_v54, -1e+30  ;;  %v2185_v55 = vsel %vm6361_vm6, %v8236_v62, -1e+30  ;;  %vm7985_vm7 = vcmp.ne.s32.totalorder %v6055_v19, %v5039_v24  ;;  %v8240_v54 = vld [vmem:[#allocation122_spill] sm:$0xff]  ;;  %vm8244_vm6 = vcmp.lt.s32.totalorder %v5031_v21, 640 }
 0x2c9   : > { %v2315_v48 = vsub.f32 %v2171_v45, %v6262_v5  ;;  %4281 = vpow2.f32 %v2385_v26  ;;  %v4089_v33 = vsel %vm7985_vm7, 1.0, %v8118_v58  ;;  %v2908_v45 = vld [vmem:[#allocation5 + $0x50] sm:$0xff]  ;;  %vm6423_vm9 = vmand %vm8244_vm6, %vm8243_vm14  ;;  %vm8258_vm6 = vcmp.ne.s32.totalorder %v8223_v17, %v5039_v24  ;;  %v8264_v17 = vld [vmem:[#allocation77_spill] sm:$0xff] }
 0x2ca   : > { %4283 = vpow2.f32 %v2387_v18 }
 0x2cb   : > { %v2830_v28 = vpop.xlane.xlu0 %2829 }
 0x2cc   : > { %v2874_v43 = vadd.f32 %v2830_v28, %v2714_v39  ;;  %v8237_v39 = vld [vmem:[#allocation43_spill] sm:$0xff]  ;;  %v2779_v28 = vmul.f32 %v6168_v63, %v8239_v13  ;;  %v2780_v63 = vmul.f32 %v6382_v42, %v8242_v50  ;;  %v2187_v42 = vsel %vm6423_vm9, %v8257_v30, -1e+30 }
 0x2cd   : > { %v2186_v38 = vsel %vm6375_vm13, %v8237_v39, -1e+30  ;;  %v8241_v39 = vld [vmem:[#allocation29_spill] sm:$0xff]  ;;  %v2331_v30 = vsub.f32 %v2187_v42, %v2258_v23 }
 0x2ce   : > { %2890 = vst.msk [vmem:[#allocation4 + $0x40] sm:$0xff] %vm7990_vm5, %v2874_v43  ;;  %v2329_v43 = vsub.f32 %v2185_v55, %v2258_v23  ;;  %v2330_v62 = vsub.f32 %v2186_v38, %v2258_v23  ;;  %v2172_v32 = vsel %vm6390_vm0, %v8241_v39, -1e+30  ;;  %v2389_v55 = vmul.f32 1.442695, %v2315_v48 }
 0x2cf   : > { %2834 = vadd.xlane.f32.xlu1 %v8240_v54  ;;  %v2316_v18 = vsub.f32 %v2172_v32, %v6262_v5  ;;  %v8247_v54 = vld [vmem:[#allocation99_spill] sm:$0xff]  ;;  %v6437_v39 = vmul.f32 %v4089_v33, %v4024_v59  ;;  %v2856_v50 = vadd.f32 %v2779_v28, %v2778_v29  ;;  %vm8254_vm0 = vcmp.lt.s32.totalorder %v5023_v15, 640  ;;  %v4282_v32 = vpop.eup %4281  ;;  %v8271_v28 = vld [vmem:[#allocation118_spill] sm:$0xff] }
 0x2d0   : > { %vm8248_vm13 = vcmp.ne.s32.totalorder %v8247_v54, %v5021_v14  ;;  %v2417_v4 = vmul.f32 1.442695, %v2329_v43  ;;  %vm8253_vm1 = vcmp.ne.s32.totalorder %v8247_v54, %v5023_v15  ;;  %v2419_v48 = vmul.f32 1.442695, %v2330_v62  ;;  %v4284_v29 = vpop.eup %4283  ;;  %v8262_v43 = vld [vmem:[#allocation54_spill] sm:$0xff] }
 0x2d1   : > { %vm6433_vm4 = vmand %vm8249_vm15, %vm8248_vm13  ;;  %8252 = vst [vmem:[#allocation119_spill] sm:$0xff] %v6437_v39  ;;  %v2857_v59 = vadd.f32 %v2856_v50, %v2780_v63  ;;  %vm8259_vm13 = vcmp.lt.s32.totalorder %v5039_v24, 640  ;;  %4285 = vpow2.f32 %v2389_v55  ;;  %v2391_v62 = vmul.f32 1.442695, %v2316_v18  ;;  %v8263_v50 = vld [vmem:[#allocation55_spill] sm:$0xff] }
 0x2d2   : > { %vm6444_vm14 = vmand %vm8254_vm0, %vm8253_vm1  ;;  %v2197_v33 = vsel %vm6433_vm4, %v8262_v43, -1e+30  ;;  %4287 = vpow2.f32 %v2417_v4  ;;  %v2781_v63 = vmul.f32 %v6437_v39, %v8264_v17  ;;  %v2587_v18 = vadd.f32 %v4284_v29, %v4282_v32  ;;  %v8375_v17 = vld [vmem:[#allocation96_spill] sm:$0xff] }
 0x2d3   : > { %v2968_v38 = vpop.xlane.xlu0 %2967  ;;  %vm6457_vm15 = vmand %vm8259_vm13, %vm8258_vm6  ;;  %4289 = vpow2.f32 %v2419_v48  ;;  %vm8266_vm9 = vcmp.ne.s32.totalorder %v8247_v54, %v5031_v21  ;;  %vm8267_vm4 = vcmp.lt.s32.totalorder %v5031_v21, 640  ;;  %v2421_v4 = vmul.f32 1.442695, %v2331_v30  ;;  %v8272_v30 = vld [vmem:[#allocation57_spill] sm:$0xff] }
 0x2d4   : > { %v3004_v13 = vadd.f32 %v2968_v38, %v2908_v45  ;;  %v2341_v45 = vsub.f32 %v2197_v33, %v6327_v61  ;;  %v8265_v38 = vld [vmem:[#allocation45_spill] sm:$0xff]  ;;  %v2858_v55 = vadd.f32 %v2857_v59, %v2781_v63  ;;  %vm1959_vm1 = vmand %vm8267_vm4, %vm8266_vm9  ;;  %4291 = vpow2.f32 %v2391_v62  ;;  %v8273_v63 = vld [vmem:[#allocation124_spill] sm:$0xff] }
 0x2d5   : > { %v2188_v9 = vsel %vm6457_vm15, %v8265_v38, -1e+30  ;;  %vm8269_vm0 = vcmp.ne.s32.totalorder %v8247_v54, %v5039_v24  ;;  %4293 = vpow2.f32 %v2421_v4  ;;  %vm8275_vm15 = vcmp.lt.s32.totalorder %v5021_v14, 640 }
 0x2d6   : > { %3020 = vst.msk [vmem:[#allocation5 + $0x50] sm:$0xff] %vm7990_vm5, %v3004_v13  ;;  %v2198_v13 = vsel %vm6444_vm14, %v8263_v50, -1e+30  ;;  %v2332_v42 = vsub.f32 %v2188_v9, %v2258_v23  ;;  %v2441_v5 = vmul.f32 1.442695, %v2341_v45  ;;  %v8268_v50 = vld [vmem:[#allocation56_spill] sm:$0xff]  ;;  %vm8270_vm14 = vmmov %vm8259_vm13  ;;  %vm8274_vm13 = vcmp.ne.s32.totalorder %v8273_v63, %v5021_v14 }
 0x2d7   : > { %v2342_v26 = vsub.f32 %v2198_v13, %v6327_v61  ;;  %v4286_v43 = vpop.eup %4285  ;;  %v2199_v13 = vsel %vm1959_vm1, %v8268_v50, -1e+30  ;;  %vm1960_vm6 = vmand %vm8270_vm14, %vm8269_vm0  ;;  %vm8278_vm4 = vcmp.ne.s32.totalorder %v8273_v63, %v5023_v15  ;;  %vm8279_vm1 = vcmp.lt.s32.totalorder %v5023_v15, 640 }
 0x2d8   : > { %v4288_v48 = vpop.eup %4287  ;;  %v2588_v32 = vadd.f32 %v4286_v43, %v2587_v18  ;;  %v2343_v29 = vsub.f32 %v2199_v13, %v6327_v61  ;;  %v2423_v23 = vmul.f32 1.442695, %v2332_v42  ;;  %4295 = vpow2.f32 %v2441_v5  ;;  %vm6493_vm9 = vmand %vm8275_vm15, %vm8274_vm13  ;;  %v8285_v5 = vld [vmem:[#allocation66_spill] sm:$0xff] }
 0x2d9   : > { %v2443_v33 = vmul.f32 1.442695, %v2342_v26  ;;  %v4290_v59 = vpop.eup %4289  ;;  %v2200_v45 = vsel %vm1960_vm6, %v8272_v30, -1e+30  ;;  %vm6502_vm0 = vmand %vm8279_vm1, %vm8278_vm4  ;;  %vm8282_vm14 = vcmp.lt.s32.totalorder %v5031_v21, 640  ;;  %vm7987_vm4 = vcmp.ne.s32.totalorder %v6171_v2, %v5039_v24 }
 0x2da   : > { %v4292_v62 = vpop.eup %4291  ;;  %v2344_v38 = vsub.f32 %v2200_v45, %v6327_v61  ;;  %vm6512_vm6 = vmand %vm8282_vm14, %vm1707_vm12  ;;  %v2445_v42 = vmul.f32 1.442695, %v2343_v29  ;;  %v2209_v43 = vsel %vm6493_vm9, %v8285_v5, -1e+30  ;;  %vm8287_vm12 = vcmp.lt.s32.totalorder %v5039_v24, 640  ;;  %v2903_v5 = vld [vmem:[#allocation5 + $0x28] sm:$0xff] }
 0x2db   : > { %4297 = vpow2.f32 %v2443_v33  ;;  %v2589_v9 = vadd.f32 %v4292_v62, %v2588_v32  ;;  %v4294_v4 = vpop.eup %4293  ;;  %v8286_v33 = vld [vmem:[#allocation67_spill] sm:$0xff]  ;;  %v2211_v50 = vsel %vm6512_vm6, %v8184_v34, -1e+30  ;;  %vm1972_vm13 = vmand %vm8287_vm12, %vm1708_vm8  ;;  %vm7988_vm8 = vcmp.ne.s32.totalorder %v6171_v2, %v5031_v21 }
 0x2dc   : > { %2859 = vadd.xlane.f32.xlu0 %v2858_v55  ;;  %v2607_v55 = vadd.f32 %v4290_v59, %v4288_v48  ;;  %4299 = vpow2.f32 %v2423_v23  ;;  %v2210_v48 = vsel %vm6502_vm0, %v8286_v33, -1e+30  ;;  %v2447_v13 = vmul.f32 1.442695, %v2344_v38  ;;  %v6532_v38 = vpop.permute.xlu2 %2252  ;;  %vm1981_vm9 = vmand %vm8275_vm15, %vm1717_vm11 }
 0x2dd   : > { %4301 = vpow2.f32 %v2445_v42  ;;  %v2212_v34 = vsel %vm1972_vm13, %v8188_v52, -1e+30  ;;  %8289 = vst [vmem:[#allocation116_spill] sm:$0xff] %v6532_v38  ;;  %vm1982_vm0 = vmand %vm8279_vm1, %vm1718_vm3  ;;  %vm8303_vm3 = vcmp.ne.s32.totalorder %v8138_v44, %v5021_v14  ;;  %v8378_v39 = vmov 0 }
 0x2de   : > { %v4296_v61 = vpop.eup %4295  ;;  %v2608_v59 = vadd.f32 %v4294_v4, %v2607_v55  ;;  %4303 = vpow2.f32 %v2447_v13  ;;  %vm1983_vm6 = vmand %vm8282_vm14, %vm7988_vm8  ;;  %vm8310_vm14 = vcmp.ne.s32.totalorder %v8138_v44, %v5031_v21 }
 0x2df   : > { %vm8296_vm11 = vmmov %vm8287_vm12 }
 0x2e0   : > { %2277 = vperm.xlu2 %4279, %v8271_v28   ;;  %vm1984_vm12 = vmand %vm8296_vm11, %vm7987_vm4  ;;  %vm8334_vm4 = vcmp.lt.s32.totalorder %v5039_v24, 640 }
 0x2e1   : > { %v4298_v29 = vpop.eup %4297  ;;  %vm8304_vm13 = vmmov %vm8275_vm15 }
 0x2e2   : > { %v4300_v45 = vpop.eup %4299  ;;  %v2622_v18 = vadd.f32 %v4298_v29, %v4296_v61  ;;  %v2712_v29 = vld [vmem:[#allocation4 + $0x30] sm:$0xff]  ;;  %vm6590_vm15 = vmand %vm8304_vm13, %vm8303_vm3  ;;  %vm8316_vm3 = vcmp.lt.s32.totalorder %v5039_v24, 640 }
 0x2e3   : > { %v2609_v55 = vadd.f32 %v4300_v45, %v2608_v59  ;;  %v4302_v42 = vpop.eup %4301 }
 0x2e4   : > { %2590 = vadd.xlane.f32.xlu0 %v2589_v9  ;;  %v8288_v9 = vld [vmem:[#allocation123_spill] sm:$0xff] }
 0x2e6   : > { %v2288_v32 = vpop.permute.xlu0 %2287 }
 0x2e7   : > { %v2353_v23 = vsub.f32 %v2209_v43, %v2288_v32  ;;  %v2354_v62 = vsub.f32 %v2210_v48, %v2288_v32  ;;  %v2355_v30 = vsub.f32 %v2211_v50, %v2288_v32  ;;  %v2356_v63 = vsub.f32 %v2212_v34, %v2288_v32  ;;  %v4304_v48 = vpop.eup %4303 }
 0x2e8   : > { %2282 = vperm.xlu1 %4278, %v8288_v9   ;;  %v2623_v43 = vadd.f32 %v4302_v42, %v2622_v18  ;;  %v8290_v18 = vld [vmem:[#allocation131_spill] sm:$0xff] }
 0x2e9   : > { %v2465_v54 = vmul.f32 1.442695, %v2353_v23  ;;  %v2467_v26 = vmul.f32 1.442695, %v2354_v62  ;;  %v2469_v4 = vmul.f32 1.442695, %v2355_v30 }
 0x2ea   : > { %v2471_v33 = vmul.f32 1.442695, %v2356_v63  ;;  %v2710_v23 = vld [vmem:[#allocation4 + $0x20] sm:$0xff]  ;;  %v2624_v28 = vadd.f32 %v4304_v48, %v2623_v43  ;;  %v8291_v63 = vld [vmem:[#allocation93_spill] sm:$0xff] }
 0x2eb   : > { %4305 = vpow2.f32 %v2465_v54  ;;  %v8295_v48 = vld [vmem:[#allocation129_spill] sm:$0xff] }
 0x2ec   : > { %4307 = vpow2.f32 %v2467_v26  ;;  %2610 = vadd.xlane.f32.xlu0 %v2609_v55  ;;  %v2980_v55 = vadd.f32 %v6126_v40, %v6155_v56 }
 0x2ed   : > { %4309 = vpow2.f32 %v2469_v4  ;;  %v2975_v4 = vadd.f32 %v8291_v63, %v8290_v18 }
 0x2ee   : > { %4311 = vpow2.f32 %v2471_v33  ;;  %v2717_v33 = vld [vmem:[#allocation4 + $0x58] sm:$0xff] }
 0x2ef   : > { %v2943_v50 = vpop.xlane.xlu1 %2942 }
 0x2f0   : > { %v2999_v52 = vadd.f32 %v2943_v50, %v2903_v5  ;;  %v8294_v5 = vld [vmem:[#allocation126_spill] sm:$0xff] }
 0x2f1   : > { %v4306_v62 = vpop.eup %4305  ;;  %v2970_v43 = vadd.f32 %v8294_v5, %v6289_v25  ;;  %v8298_v25 = vld [vmem:[#allocation79_spill] sm:$0xff] }
 0x2f2   : > { %v4308_v13 = vpop.eup %4307  ;;  %v2810_v9 = vpop.xlane.xlu2 %2809  ;;  %3015 = vst.msk [vmem:[#allocation5 + $0x28] sm:$0xff] %vm7990_vm5, %v2999_v52  ;;  %v8300_v52 = vld [vmem:[#allocation82_spill] sm:$0xff] }
 0x2f3   : > { %v2870_v61 = vadd.f32 %v2810_v9, %v2710_v23  ;;  %v2637_v32 = vadd.f32 %v4308_v13, %v4306_v62  ;;  %v4310_v59 = vpop.eup %4309  ;;  %v8292_v9 = vld [vmem:[#allocation132_spill] sm:$0xff]  ;;  %v2971_v56 = vadd.f32 %v2970_v43, %v6306_v3  ;;  %v2222_v3 = vsel %vm1982_vm0, %v8298_v25, -1e+30 }
 0x2f4   : > { %2625 = vadd.xlane.f32.xlu0 %v2624_v28  ;;  %v4312_v54 = vpop.eup %4311  ;;  %v6542_v28 = vadd.f32 %v2980_v55, %v6157_v53  ;;  %v6545_v42 = vadd.f32 %v2975_v4, %v8292_v9  ;;  %v8297_v53 = vld [vmem:[#allocation78_spill] sm:$0xff]  ;;  %v2224_v13 = vsel %vm1984_vm12, %v8300_v52, -1e+30  ;;  %v2904_v4 = vld [vmem:[#allocation5 + $0x30] sm:$0xff]  ;;  %vm8315_vm12 = vcmp.ne.s32.totalorder %v8138_v44, %v5039_v24 }
 0x2f5   : > { %2886 = vst.msk [vmem:[#allocation4 + $0x20] sm:$0xff] %vm7990_vm5, %v2870_v61  ;;  %v2638_v30 = vadd.f32 %v4310_v59, %v2637_v32  ;;  %vm6619_vm13 = vmand %vm8316_vm3, %vm8315_vm12  ;;  %vm8326_vm12 = vcmp.lt.s32.totalorder %v5023_v15, 640  ;;  %v8511_v43 = vld [vmem:[#allocation60_spill] sm:$0xff] }
 0x2f6   : > { %8293 = vst [vmem:[#allocation120_spill] sm:$0xff] %v6545_v42 }
 0x2f7   : > { %v2820_v45 = vpop.xlane.xlu1 %2819  ;;  %v2639_v34 = vadd.f32 %v4312_v54, %v2638_v30 }
 0x2f8   : > { %v2872_v26 = vadd.f32 %v2820_v45, %v2712_v29 }
 0x2fa   : > { %2888 = vst.msk [vmem:[#allocation4 + $0x30] sm:$0xff] %vm7990_vm5, %v2872_v26  ;;  %v8301_v26 = vld [vmem:[#allocation101_spill] sm:$0xff]  ;;  %v6583_v55 = vpop.permute.xlu2 %2262 }
 0x2fb   : > { %8302 = vst [vmem:[#allocation113_spill] sm:$0xff] %v6583_v55  ;;  %v8443_v55 = vmov 0 }
 0x2fc   : > { %2640 = vadd.xlane.f32.xlu0 %v2639_v34 }
 0x309   : > { %2962 = vadd.xlane.f32.xlu2 %v6319_v8  ;;  %v8299_v8 = vld [vmem:[#allocation81_spill] sm:$0xff] }
 0x30a   : > { %v2223_v23 = vsel %vm1983_vm6, %v8299_v8, -1e+30  ;;  %vm8311_vm6 = vcmp.lt.s32.totalorder %v5031_v21, 640 }
 0x30b   : > { %vm6608_vm11 = vmand %vm8311_vm6, %vm8310_vm14 }
 0x311   : > { %2839 = vadd.xlane.f32.xlu2 %v8295_v48  ;;  %v2845_v40 = vpop.xlane.xlu0 %2844  ;;  %v8312_v48 = vmov 0 }
 0x312   : > { %v2877_v50 = vadd.f32 %v2845_v40, %v2717_v33  ;;  %2972 = vadd.xlane.f32.xlu1 %v2971_v56  ;;  %v8313_v48 = vsel %vm6608_vm11, 4294967295, %v8312_v48  ;;  %v6612_v40 = vpop.permute.xlu1 %2267  ;;  %v8396_v33 = vld [vmem:[#allocation24_spill] sm:$0xff] }
 0x313   : > { %8314 = vst [vmem:[#allocation90_spill] sm:$0xff] %v6612_v40  ;;  %v8435_v40 = vld [vmem:[#allocation40_spill] sm:$0xff] }
 0x314   : > { %2893 = vst.msk [vmem:[#allocation4 + $0x58] sm:$0xff] %vm7990_vm5, %v2877_v50 }
 0x31a   : > { %2849 = vadd.xlane.f32.xlu1 %v6148_v22  ;;  %v2221_v22 = vsel %vm1981_vm9, %v8297_v53, -1e+30  ;;  %vm8307_vm9 = vcmp.ne.s32.totalorder %v8138_v44, %v5023_v15  ;;  %v8433_v44 = vld [vmem:[#allocation38_spill] sm:$0xff] }
 0x31b   : > { %vm6599_vm0 = vmand %vm8279_vm1, %vm8307_vm9  ;;  %vm8321_vm1 = vcmp.lt.s32.totalorder %v5021_v14, 640 }
 0x324   : > { %v2303_v62 = vpop.permute.xlu0 %2302 }
 0x325   : > { %v2365_v61 = vsub.f32 %v2221_v22, %v2303_v62  ;;  %v2366_v32 = vsub.f32 %v2222_v3, %v2303_v62  ;;  %v2367_v59 = vsub.f32 %v2223_v23, %v2303_v62  ;;  %v2368_v29 = vsub.f32 %v2224_v13, %v2303_v62  ;;  %v8319_v23 = vld [vmem:[#allocation89_spill] sm:$0xff] }
 0x326   : > { %vm8320_vm9 = vcmp.ne.s32.totalorder %v8319_v23, %v5021_v14  ;;  %vm8325_vm6 = vcmp.ne.s32.totalorder %v8319_v23, %v5023_v15  ;;  %vm8329_vm7 = vcmp.ne.s32.totalorder %v8319_v23, %v5031_v21  ;;  %vm8333_vm2 = vcmp.ne.s32.totalorder %v8319_v23, %v5039_v24 }
 0x327   : > { %v2489_v30 = vmul.f32 1.442695, %v2365_v61  ;;  %v2491_v45 = vmul.f32 1.442695, %v2366_v32  ;;  %v2493_v54 = vmul.f32 1.442695, %v2367_v59  ;;  %vm6628_vm14 = vmand %vm8321_vm1, %vm8320_vm9  ;;  %v2782_v3 = vmul.f32 %v6211_v49, %v8297_v53 }
 0x328   : > { %v2495_v34 = vmul.f32 1.442695, %v2368_v29  ;;  %v8324_v61 = vld [vmem:[#allocation69_spill] sm:$0xff]  ;;  %vm6638_vm3 = vmand %vm8326_vm12, %vm8325_vm6  ;;  %vm8330_vm9 = vcmp.lt.s32.totalorder %v5031_v21, 640  ;;  %v8335_v59 = vmov 0 }
 0x329   : > { %4313 = vpow2.f32 %v2489_v30  ;;  %2292 = vperm.xlu2 %4279, %v8301_v26   ;;  %vm6647_vm1 = vmand %vm8330_vm9, %vm8329_vm7  ;;  %v8337_v30 = vld [vmem:[#allocation125_spill] sm:$0xff]  ;;  %vm8342_vm9 = vcmp.lt.s32.totalorder %v5021_v14, 640 }
 0x32a   : > { %4315 = vpow2.f32 %v2491_v45  ;;  %vm6656_vm8 = vmand %vm8334_vm4, %vm8333_vm2  ;;  %vm8338_vm6 = vcmp.ne.s32.totalorder %v8337_v30, %v5023_v15  ;;  %v8339_v45 = vmov 0  ;;  %vm8341_vm7 = vcmp.ne.s32.totalorder %v8337_v30, %v5021_v14 }
 0x32b   : > { %4317 = vpow2.f32 %v2493_v54  ;;  %v8336_v59 = vsel %vm6656_vm8, 4294967295, %v8335_v59  ;;  %vm6665_vm10 = vmand %vm8326_vm12, %vm8338_vm6  ;;  %v8343_v54 = vmov 0  ;;  %vm8345_vm2 = vcmask 7168  }
 0x32c   : > { %4319 = vpow2.f32 %v2495_v34  ;;  %v8340_v45 = vsel %vm6665_vm10, 4294967295, %v8339_v45  ;;  %vm6674_vm5 = vmand %vm8342_vm9, %vm8341_vm7  ;;  %vm8346_vm4 = vcmp.ne.s32.totalorder %v8337_v30, %v5031_v21  ;;  %vm8347_vm8 = vcmp.lt.s32.totalorder %v5031_v21, 640 }
 0x32d   : > { %v8344_v54 = vsel %vm6674_vm5, 4294967295, %v8343_v54  ;;  %vm6684_vm6 = vmand %vm8347_vm8, %vm8346_vm4  ;;  %v8348_v34 = vmov 0  ;;  %vm8356_vm5 = vcmp.lt.s32.totalorder %v5023_v15, 640  ;;  %vm8359_vm8 = vcmp.ne.s32.totalorder %v8337_v30, %v5039_v24 }
 0x32e   : > { %v8349_v34 = vsel %vm6684_vm6, 4294967295, %v8348_v34  ;;  %vm8352_vm7 = vmmov %vm8342_vm9  ;;  %vm8360_vm4 = vcmp.lt.s32.totalorder %v5039_v24, 640  ;;  %vm8365_vm6 = vcmp.lt.s32.totalorder %v5031_v21, 640 }
 0x32f   : > { %v4314_v18 = vpop.eup %4313 }
 0x330   : > { %v4316_v63 = vpop.eup %4315 }
 0x331   : > { %v2652_v9 = vadd.f32 %v4316_v63, %v4314_v18  ;;  %v4318_v5 = vpop.eup %4317  ;;  %v8350_v18 = vld [vmem:[#allocation91_spill] sm:$0xff]  ;;  %v8353_v63 = vmov 0 }
 0x332   : > { %v4320_v22 = vpop.eup %4319  ;;  %vm8351_vm12 = vcmp.ne.s32.totalorder %v8350_v18, %v5021_v14 }
 0x333   : > { %v2948_v56 = vpop.xlane.xlu2 %2947  ;;  %v2653_v50 = vadd.f32 %v4318_v5, %v2652_v9  ;;  %2297 = vperm.xlu1 %4278, %v8324_v61   ;;  %vm6693_vm9 = vmand %vm8352_vm7, %vm8351_vm12  ;;  %v2713_v9 = vld [vmem:[#allocation4 + $0x38] sm:$0xff]  ;;  %v2906_v5 = vld [vmem:[#allocation5 + $0x40] sm:$0xff]  ;;  %vm8364_vm7 = vcmp.ne.s32.totalorder %v8350_v18, %v5031_v21 }
 0x334   : > { %v3000_v13 = vadd.f32 %v2948_v56, %v2904_v4  ;;  %v8354_v63 = vsel %vm6693_vm9, 4294967295, %v8353_v63  ;;  %v8357_v4 = vmov 0  ;;  %vm6711_vm12 = vmand %vm8360_vm4, %vm8359_vm8  ;;  %v8361_v56 = vmov 0  ;;  %v8374_v61 = vld [vmem:[#allocation18_spill] sm:$0xff] }
 0x335   : > { %v2654_v29 = vadd.f32 %v4320_v22, %v2653_v50  ;;  %v8362_v56 = vsel %vm6711_vm12, 4294967295, %v8361_v56  ;;  %v8366_v50 = vmov 0  ;;  %v2161_v26 = vsel %vm6590_vm15, %v8374_v61, -1e+30  ;;  %v8388_v61 = vld [vmem:[#allocation21_spill] sm:$0xff] }
 0x336   : > { %3016 = vst.msk [vmem:[#allocation5 + $0x30] sm:$0xff] %vm8345_vm2, %v3000_v13  ;;  %vm8355_vm2 = vcmp.ne.s32.totalorder %v8350_v18, %v5023_v15  ;;  %v8371_v13 = vmov 0  ;;  %vm8384_vm15 = vcmp.lt.s32.totalorder %v5023_v15, 640  ;;  %vm8420_vm9 = vcmp.lt.s32.totalorder %v5023_v15, 640 }
 0x337   : > { %2655 = vadd.xlane.f32.xlu0 %v2654_v29  ;;  %vm6702_vm10 = vmand %vm8356_vm5, %vm8355_vm2  ;;  %8363 = vst [vmem:[#allocation26_spill] sm:$0xff] %v8362_v56  ;;  %vm8369_vm2 = vcmp.ne.s32.totalorder %v8350_v18, %v5039_v24  ;;  %v8381_v18 = vld [vmem:[#allocation19_spill] sm:$0xff]  ;;  %v8438_v56 = vld [vmem:[#allocation88_spill] sm:$0xff] }
 0x338   : > { %v8358_v4 = vsel %vm6702_vm10, 4294967295, %v8357_v4  ;;  %vm6720_vm5 = vmand %vm8365_vm6, %vm8364_vm7  ;;  %vm8376_vm6 = vcmp.ne.s32.totalorder %v8375_v17, %v5021_v14  ;;  %v2162_v19 = vsel %vm6599_vm0, %v8381_v18, -1e+30  ;;  %vm8390_vm0 = vcmp.ne.s32.totalorder %v8375_v17, %v5031_v21 }
 0x339   : > { %v8367_v50 = vsel %vm6720_vm5, 4294967295, %v8366_v50  ;;  %vm8370_vm10 = vmmov %vm8360_vm4  ;;  %vm8377_vm4 = vcmp.lt.s32.totalorder %v5021_v14, 640  ;;  %v8439_v8 = vsub.f32 %v8437_v1, %v8438_v56  ;;  %v8458_v56 = vld [vmem:[#allocation105_spill] sm:$0xff] }
 0x33a   : > { %8368 = vst [vmem:[#allocation27_spill] sm:$0xff] %v8367_v50  ;;  %v2958_v23 = vpop.xlane.xlu1 %2957  ;;  %vm6729_vm8 = vmand %vm8370_vm10, %vm8369_vm2  ;;  %vm8383_vm10 = vcmp.ne.s32.totalorder %v8375_v17, %v5023_v15  ;;  %v8436_v50 = vld [vmem:[#allocation127_spill] sm:$0xff] }
 0x33b   : > { %v2825_v22 = vpop.xlane.xlu2 %2824  ;;  %v8372_v13 = vsel %vm6729_vm8, 4294967295, %v8371_v13  ;;  %v3002_v30 = vadd.f32 %v2958_v23, %v2906_v5  ;;  %vm6741_vm7 = vmand %vm8377_vm4, %vm8376_vm6  ;;  %vm8387_vm6 = vcmask 7168   ;;  %v8389_v5 = vld [vmem:[#allocation22_spill] sm:$0xff]  ;;  %vm8391_vm4 = vcmp.lt.s32.totalorder %v5031_v21, 640 }
 0x33c   : > { %8373 = vst [vmem:[#allocation104_spill] sm:$0xff] %v8372_v13  ;;  %v2873_v29 = vadd.f32 %v2825_v22, %v2713_v9  ;;  %v8379_v39 = vsel %vm6741_vm7, 4294967295, %v8378_v39  ;;  %vm6756_vm2 = vmand %vm8384_vm15, %vm8383_vm10  ;;  %v2165_v22 = vsel %vm6628_vm14, %v8389_v5, -1e+30  ;;  %v8392_v23 = vmov 0  ;;  %v8397_v5 = vld [vmem:[#allocation25_spill] sm:$0xff] }
 0x33d   : > { %8380 = vst [vmem:[#allocation97_spill] sm:$0xff] %v8379_v39  ;;  %vm6772_vm11 = vmand %vm8391_vm4, %vm8390_vm0  ;;  %vm8399_vm15 = vcmp.ne.s32.totalorder %v8375_v17, %v5039_v24  ;;  %vm8408_vm4 = vnez %v8344_v54  ;;  %v8418_v54 = vld [vmem:[#allocation108_spill] sm:$0xff]  ;;  %v8434_v13 = vld [vmem:[#allocation39_spill] sm:$0xff]  ;;  %v2525_v38 = vsub.f32 %v8436_v50, %v6030_v57  ;;  %v2533_v42 = vmul.f32 1.442695, %v8439_v8 }
 0x33e   : > { %2889 = vst.msk [vmem:[#allocation4 + $0x38] sm:$0xff] %vm8387_vm6, %v2873_v29  ;;  %v8393_v23 = vsel %vm6772_vm11, 4294967295, %v8392_v23  ;;  %vm8394_vm10 = vmmov %vm8387_vm6  ;;  %v8395_v29 = vld [vmem:[#allocation23_spill] sm:$0xff]  ;;  %vm8400_vm6 = vcmp.lt.s32.totalorder %v5039_v24, 640  ;;  %v2173_v9 = vsel %vm8408_vm4, %v8407_v6, -1e+30  ;;  %v2519_v6 = vsub.f32 %v8418_v54, %v5689_v0 }
 0x33f   : > { %3018 = vst.msk [vmem:[#allocation5 + $0x40] sm:$0xff] %vm8394_vm10, %v3002_v30  ;;  %2982 = vadd.xlane.f32.xlu0 %v6542_v28  ;;  %v2166_v18 = vsel %vm6638_vm3, %v8395_v29, -1e+30  ;;  %vm6792_vm0 = vmand %vm8400_vm6, %vm8399_vm15  ;;  %v8401_v30 = vmov 0  ;;  %v8404_v28 = vld [vmem:[#allocation34_spill] sm:$0xff]  ;;  %v8405_v29 = vld [vmem:[#allocation31_spill] sm:$0xff]  ;;  %vm8406_vm3 = vnez %v8340_v45  ;;  %vm8410_vm10 = vcmp.ne.s32.totalorder %v8409_v12, %v5021_v14 }
 0x340   : > { %v8402_v30 = vsel %vm6792_vm0, 4294967295, %v8401_v30  ;;  %v2174_v62 = vsel %vm8406_vm3, %v8405_v29, -1e+30  ;;  %vm8411_vm15 = vcmp.lt.s32.totalorder %v5021_v14, 640  ;;  %vm8419_vm4 = vcmp.ne.s32.totalorder %v8409_v12, %v5023_v15  ;;  %v8446_v8 = vld [vmem:[#allocation47_spill] sm:$0xff] }
 0x341   : > { %8403 = vst [vmem:[#allocation28_spill] sm:$0xff] %v8402_v30  ;;  %vm6810_vm6 = vmand %vm8411_vm15, %vm8410_vm10  ;;  %v8421_v29 = vmov 0  ;;  %vm8425_vm15 = vcmp.ne.s32.totalorder %v5479_v60, %v5021_v14  ;;  %vm8426_vm3 = vcmp.lt.s32.totalorder %v5021_v14, 640  ;;  %v8427_v0 = vmov 0 }
 0x342   : > { %vm6827_vm10 = vmand %vm8420_vm9, %vm8419_vm4  ;;  %v2835_v52 = vpop.xlane.xlu1 %2834  ;;  %vm8429_vm9 = vcmp.ne.s32.totalorder %v5479_v60, %v5023_v15  ;;  %vm8430_vm4 = vcmp.lt.s32.totalorder %v5023_v15, 640  ;;  %v8431_v45 = vmov 0  ;;  %v2309_v54 = vsub.f32 %v2165_v22, %v6258_v11  ;;  %v1363_v22 = vpop.f32.mrf.mxu2 }
 0x343   : > { %v8422_v29 = vsel %vm6827_vm10, 4294967295, %v8421_v29  ;;  %vm6842_vm14 = vmand %vm8426_vm3, %vm8425_vm15  ;;  %vm8441_vm3 = vcmp.ne.s32.totalorder %v8409_v12, %v5031_v21  ;;  %vm8442_vm15 = vcmp.lt.s32.totalorder %v5031_v21, 640  ;;  %v2875_v57 = vadd.f32 %v2835_v52, %v2715_v35 }
 0x344   : > { %v8428_v0 = vsel %vm6842_vm14, 4294967295, %v8427_v0  ;;  %vm6854_vm8 = vmand %vm8430_vm4, %vm8429_vm9  ;;  %v2541_v50 = vmul.f32 1.442695, %v2519_v6  ;;  %vm8447_vm4 = vcmp.ne.s32.totalorder %v8409_v12, %v5039_v24  ;;  %v8449_v39 = vmov 0  ;;  %v8457_v6 = vld [vmem:[#allocation114_spill] sm:$0xff] }
 0x345   : > { %v8432_v45 = vsel %vm6854_vm8, 4294967295, %v8431_v45  ;;  %vm6880_vm9 = vmand %vm8442_vm15, %vm8441_vm3  ;;  %vm8448_vm3 = vcmp.lt.s32.totalorder %v5039_v24, 640  ;;  %v2305_v35 = vsub.f32 %v2161_v26, %v6255_v7  ;;  %vm8452_vm0 = vcmp.ne.s32.totalorder %v5479_v60, %v5031_v21 }
 0x346   : > { %v8444_v55 = vsel %vm6880_vm9, 4294967295, %v8443_v55  ;;  %vm6896_vm15 = vmand %vm8448_vm3, %vm8447_vm4  ;;  %vm8453_vm11 = vcmp.lt.s32.totalorder %v5031_v21, 640  ;;  %v8454_v12 = vmov 0  ;;  %v8459_v1 = vsub.f32 %v8457_v6, %v8458_v56  ;;  %v8467_v56 = vld [vmem:[#allocation87_spill] sm:$0xff] }
 0x347   : > { %v8450_v39 = vsel %vm6896_vm15, 4294967295, %v8449_v39  ;;  %vm6909_vm10 = vmand %vm8453_vm11, %vm8452_vm0  ;;  %v2306_v30 = vsub.f32 %v2162_v19, %v6255_v7  ;;  %vm8460_vm4 = vcmask 7168   ;;  %vm8461_vm3 = vcmp.ne.s32.totalorder %v5479_v60, %v5039_v24  ;;  %v8472_v60 = vld [vmem:[#allocation49_spill] sm:$0xff] }
 0x348   : > { %8451 = vst [vmem:[#allocation42_spill] sm:$0xff] %v8450_v39  ;;  %v8455_v12 = vsel %vm6909_vm10, 4294967295, %v8454_v12  ;;  %v2547_v31 = vmul.f32 1.442695, %v8459_v1  ;;  %vm8462_vm11 = vcmp.lt.s32.totalorder %v5039_v24, 640  ;;  %v8463_v52 = vmov 0 }
 0x349   : > { %8456 = vst [vmem:[#allocation43_spill] sm:$0xff] %v8455_v12  ;;  %vm6926_vm0 = vmand %vm8462_vm11, %vm8461_vm3  ;;  %v2553_v19 = vmul.f32 1.442695, %v2525_v38  ;;  %vm8469_vm14 = vcmp.lt.s32.totalorder %v5021_v14, 640  ;;  %4321 = vpow2.f32 %v2533_v42  ;;  %v2377_v26 = vmul.f32 1.442695, %v2309_v54 }
 0x34a   : > { %2891 = vst.msk [vmem:[#allocation4 + $0x48] sm:$0xff] %vm8460_vm4, %v2875_v57  ;;  %v8464_v52 = vsel %vm6926_vm0, 4294967295, %v8463_v52  ;;  %vm8468_vm4 = vcmp.ne.s32.totalorder %v8467_v56, %v5021_v14  ;;  %vm1477_vm3 = vcmp.gt.f32.partialorder %v1363_v22, 0.0  ;;  %vm8473_vm11 = vcmp.ne.s32.totalorder %v8467_v56, %v5023_v15  ;;  %v2720_v54 = vld [vmem:[#allocation4 + $0x70] sm:$0xff] }
 0x34b   : > { %8465 = vst [vmem:[#allocation122_spill] sm:$0xff] %v8464_v52  ;;  %vm6938_vm8 = vmand %vm8469_vm14, %vm8468_vm4  ;;  %vm8474_vm9 = vcmp.lt.s32.totalorder %v5023_v15, 640  ;;  %4323 = vpow2.f32 %v2541_v50  ;;  %v2310_v42 = vsub.f32 %v2166_v18, %v6258_v11  ;;  %v2369_v39 = vmul.f32 1.442695, %v2305_v35  ;;  %v8478_v18 = vld [vmem:[#allocation58_spill] sm:$0xff]  ;;  %v8479_v52 = vld [vmem:[#allocation59_spill] sm:$0xff] }
 0x34c   : > { %vm6953_vm14 = vmand %vm8474_vm9, %vm8473_vm11  ;;  %4325 = vpow2.f32 %v2547_v31  ;;  %v2371_v22 = vmul.f32 1.442695, %v2306_v30  ;;  %v2317_v38 = vsub.f32 %v2173_v9, %v6316_v27  ;;  %v4027_v6 = vsel %vm1477_vm3, 1.0, %v8118_v58  ;;  %v1412_v9 = vpop.f32.mrf.mxu3  ;;  %v8554_v1 = vld [vmem:[#allocation52_spill] sm:$0xff] }
 0x34d   : > { %4327 = vpow2.f32 %v2553_v19  ;;  %vm8477_vm9 = vcmp.ne.s32.totalorder %v6171_v2, %v5031_v21  ;;  %v2318_v50 = vsub.f32 %v2174_v62, %v6316_v27  ;;  %vm8480_vm4 = vnez %v8313_v48 }
 0x34e   : > { %v4092_v47 = vsel %vm8477_vm9, 1.0, %v8118_v58  ;;  %4329 = vpow2.f32 %v2377_v26  ;;  %v8481_v30 = vsel %vm8480_vm4, %v8382_v51, -1e+30  ;;  %v8482_v62 = vsel %vm6647_vm1, %v8396_v33, -1e+30 }
 0x34f   : > { %v2307_v19 = vsub.f32 %v8481_v30, %v6255_v7  ;;  %v2311_v10 = vsub.f32 %v8482_v62, %v6258_v11  ;;  %v2379_v35 = vmul.f32 1.442695, %v2310_v42  ;;  %vm8483_vm3 = vcmp.ne.s32.totalorder %v6171_v2, %v5039_v24  ;;  %v4322_v31 = vpop.eup %4321  ;;  %v2860_v33 = vpop.xlane.xlu0 %2859 }
 0x350   : > { %v4093_v26 = vsel %vm8483_vm3, 1.0, %v8118_v58  ;;  %4331 = vpow2.f32 %v2369_v39  ;;  %v6988_v12 = vmul.f32 %v4092_v47, %v4027_v6  ;;  %v8484_v51 = vsel %vm6619_vm13, %v8388_v61, -1e+30 }
 0x351   : > { %v2308_v48 = vsub.f32 %v8484_v51, %v6255_v7  ;;  %4333 = vpow2.f32 %v2371_v22  ;;  %v2393_v32 = vmul.f32 1.442695, %v2317_v38  ;;  %v6995_v30 = vpop.eup %4323  ;;  %vm1478_vm1 = vcmp.gt.f32.partialorder %v1412_v9, 0.0 }
 0x352   : > { %v2395_v42 = vmul.f32 1.442695, %v2318_v50  ;;  %vm8485_vm11 = vnez %v8354_v63  ;;  %v2880_v39 = vadd.f32 %v2860_v33, %v2720_v54  ;;  %v7002_v6 = vpop.eup %4325  ;;  %v2783_v7 = vmul.f32 %v6213_v46, %v8298_v25  ;;  %v2499_v63 = vld [vmem:[#allocation3 + $0x10] sm:$0xff] }
 0x353   : > { %v8486_v2 = vsel %vm8485_vm11, %v8404_v28, -1e+30  ;;  %v2373_v61 = vmul.f32 1.442695, %v2307_v19  ;;  %vm8487_vm13 = vnez %v8358_v4  ;;  %v7013_v50 = vpop.eup %4327  ;;  %vm8489_vm9 = vnez %v8336_v59  ;;  %v8492_v46 = vld [vmem:[#allocation32_spill] sm:$0xff]  ;;  %v8496_v19 = vld [vmem:[#allocation81_spill] sm:$0xff] }
 0x354   : > { %v2321_v47 = vsub.f32 %v8486_v2, %v6312_v41  ;;  %v8488_v38 = vsel %vm8487_vm13, %v8414_v36, -1e+30  ;;  %v8490_v28 = vsel %vm8489_vm9, %v8397_v5, -1e+30  ;;  %4335 = vpow2.f32 %v2379_v35  ;;  %v8495_v36 = vld [vmem:[#allocation120_spill] sm:$0xff]  ;;  %v4330_v4 = vpop.eup %4329 }
 0x355   : > { %v2322_v22 = vsub.f32 %v8488_v38, %v6312_v41  ;;  %v2312_v54 = vsub.f32 %v8490_v28, %v6258_v11  ;;  %v2381_v49 = vmul.f32 1.442695, %v2311_v10  ;;  %vm8491_vm4 = vnez %v8349_v34  ;;  %2977 = vadd.xlane.f32.xlu2 %v8495_v36  ;;  %v8498_v34 = vld [vmem:[#allocation33_spill] sm:$0xff]  ;;  %v8500_v28 = vld [vmem:[#allocation116_spill] sm:$0xff] }
 0x356   : > { %v8493_v53 = vsel %vm8491_vm4, %v8492_v46, -1e+30  ;;  %vm8494_vm3 = vcmask 7168   ;;  %v2784_v62 = vmul.f32 %v6988_v12, %v8496_v19  ;;  %v4028_v59 = vsel %vm1478_vm1, 1.0, %v8118_v58  ;;  %v4332_v10 = vpop.eup %4331 }
 0x357   : > { %v2319_v25 = vsub.f32 %v8493_v53, %v6316_v27  ;;  %2896 = vst.msk [vmem:[#allocation4 + $0x70] sm:$0xff] %vm8494_vm3, %v2880_v39  ;;  %v2375_v11 = vmul.f32 1.442695, %v2308_v48  ;;  %4337 = vpow2.f32 %v2393_v32  ;;  %v8499_v35 = vsel %vm6711_vm12, %v8498_v34, -1e+30  ;;  %v4334_v39 = vpop.eup %4333 }
 0x358   : > { %v2320_v51 = vsub.f32 %v8499_v35, %v6316_v27  ;;  %4339 = vpow2.f32 %v2395_v42  ;;  %v2401_v33 = vmul.f32 1.442695, %v2321_v47  ;;  %v2563_v2 = vmul.f32 %v4322_v31, %v2499_v63  ;;  %v2591_v63 = vpop.xlane.xlu0 %2590 }
 0x359   : > { %4341 = vpow2.f32 %v2373_v61  ;;  %v2403_v38 = vmul.f32 1.442695, %v2322_v22  ;;  %v8502_v58 = vsel %vm6741_vm7, %v8433_v44, -1e+30  ;;  %v2861_v48 = vadd.f32 %v2783_v7, %v2782_v3  ;;  %v8509_v7 = vld [vmem:[#allocation36_spill] sm:$0xff]  ;;  %vm8516_vm7 = vmmov %vm8494_vm3 }
 0x35a   : > { %v2325_v9 = vsub.f32 %v8502_v58, %v8500_v28  ;;  %vm8503_vm1 = vcmp.ne.s32.totalorder %v8467_v56, %v5031_v21  ;;  %vm8504_vm11 = vcmp.lt.s32.totalorder %v5031_v21, 640  ;;  %4343 = vpow2.f32 %v2381_v49  ;;  %v4336_v49 = vpop.eup %4335  ;;  %v8525_v3 = vld [vmem:[#allocation28_spill] sm:$0xff] }
 0x35b   : > { %vm7046_vm12 = vmand %vm8504_vm11, %vm8503_vm1  ;;  %v7050_v31 = vmul.f32 %v4093_v26, %v4028_v59  ;;  %v2397_v32 = vmul.f32 1.442695, %v2319_v25  ;;  %v8507_v44 = vsel %vm6756_vm2, %v8434_v13, -1e+30  ;;  %v2383_v47 = vmul.f32 1.442695, %v2312_v54 }
 0x35c   : > { %v2326_v42 = vsub.f32 %v8507_v44, %v8500_v28  ;;  %4345 = vpow2.f32 %v2375_v11  ;;  %v8510_v61 = vsel %vm6720_vm5, %v8509_v7, -1e+30  ;;  %v2862_v53 = vadd.f32 %v2861_v48, %v2784_v62  ;;  %v8512_v59 = vld [vmem:[#allocation113_spill] sm:$0xff] }
 0x35d   : > { %v2323_v22 = vsub.f32 %v8510_v61, %v6312_v41  ;;  %v2399_v26 = vmul.f32 1.442695, %v2320_v51  ;;  %4347 = vpow2.f32 %v2401_v33  ;;  %v2659_v25 = vadd.f32 %v2591_v63, %v2563_v2  ;;  %v4338_v19 = vpop.eup %4337  ;;  %v8517_v51 = vld [vmem:[#allocation133_spill] sm:$0xff]  ;;  %v8518_v33 = vld [vmem:[#allocation82_spill] sm:$0xff] }
 0x35e   : > { %v2577_v36 = vadd.f32 %v4334_v39, %v4332_v10  ;;  %v2203_v13 = vsel %vm7046_vm12, %v8511_v43, -1e+30  ;;  %4349 = vpow2.f32 %v2403_v38  ;;  %v2409_v54 = vmul.f32 1.442695, %v2325_v9  ;;  %v4340_v34 = vpop.eup %4339  ;;  %2854 = vadd.xlane.f32.xlu2 %v8517_v51  ;;  %v8521_v39 = vld [vmem:[#allocation37_spill] sm:$0xff] }
 0x35f   : > { %v8513_v11 = vsel %vm6810_vm6, %v8445_v16, -1e+30  ;;  %4351 = vpow2.f32 %v2397_v32  ;;  %v2411_v62 = vmul.f32 1.442695, %v2326_v42  ;;  %vm8514_vm5 = vnez %v8422_v29  ;;  %2676 = vst.msk [vmem:[#allocation3 + $0x10] sm:$0xff] %vm8516_vm7, %v2659_v25  ;;  %v4342_v17 = vpop.eup %4341  ;;  %v8519_v16 = vld [vmem:[#allocation104_spill] sm:$0xff] }
 0x360   : > { %v2333_v5 = vsub.f32 %v8513_v11, %v8512_v59  ;;  %v8515_v10 = vsel %vm8514_vm5, %v8446_v8, -1e+30  ;;  %v2785_v2 = vmul.f32 %v7050_v31, %v8518_v33  ;;  %4353 = vpow2.f32 %v2383_v47  ;;  %v2503_v29 = vld [vmem:[#allocation3 + $0x30] sm:$0xff]  ;;  %v4344_v8 = vpop.eup %4343  ;;  %v8527_v7 = vld [vmem:[#allocation41_spill] sm:$0xff] }
 0x361   : > { %v2334_v35 = vsub.f32 %v8515_v10, %v8512_v59  ;;  %vm8520_vm2 = vnez %v8519_v16  ;;  %v2405_v58 = vmul.f32 1.442695, %v2323_v22  ;;  %v2582_v9 = vadd.f32 %v4336_v49, %v4330_v4  ;;  %v8529_v49 = vld [vmem:[#allocation115_spill] sm:$0xff]  ;;  %v8588_v43 = vld [vmem:[#allocation73_spill] sm:$0xff] }
 0x362   : > { %v8522_v38 = vsel %vm8520_vm2, %v8521_v39, -1e+30  ;;  %4355 = vpow2.f32 %v2399_v26  ;;  %vm8523_vm6 = vnez %v8393_v23  ;;  %v2863_v44 = vadd.f32 %v2862_v53, %v2785_v2  ;;  %v4346_v47 = vpop.eup %4345  ;;  %v8534_v53 = vld [vmem:[#allocation90_spill] sm:$0xff] }
 0x363   : > { %v2324_v46 = vsub.f32 %v8522_v38, %v6312_v41  ;;  %v8524_v48 = vsel %vm8523_vm6, %v8435_v40, -1e+30  ;;  %v2578_v42 = vadd.f32 %v4342_v17, %v2577_v36  ;;  %vm8526_vm13 = vnez %v8525_v3  ;;  %v4348_v63 = vpop.eup %4347  ;;  %v8536_v26 = vld [vmem:[#allocation50_spill] sm:$0xff] }
 0x364   : > { %v2327_v32 = vsub.f32 %v8524_v48, %v8500_v28  ;;  %v8528_v61 = vsel %vm8526_vm13, %v8527_v7, -1e+30  ;;  %4357 = vpow2.f32 %v2409_v54  ;;  %v2425_v22 = vmul.f32 1.442695, %v2333_v5  ;;  %2864 = vadd.xlane.f32.xlu1 %v2863_v44  ;;  %v8546_v17 = vld [vmem:[#allocation62_spill] sm:$0xff]  ;;  %v8549_v48 = vld [vmem:[#allocation63_spill] sm:$0xff] }
 0x365   : > { %v2328_v41 = vsub.f32 %v8528_v61, %v8500_v28  ;;  %v2592_v4 = vadd.f32 %v4340_v34, %v4338_v19  ;;  %vm8530_vm9 = vcmp.ne.s32.totalorder %v8529_v49, %v5021_v14  ;;  %vm8531_vm4 = vcmp.lt.s32.totalorder %v5021_v14, 640  ;;  %v4350_v19 = vpop.eup %4349  ;;  %v7114_v34 = vpop.permute.xlu2 %2277 }
 0x366   : > { %vm7099_vm3 = vmand %vm8531_vm4, %vm8530_vm9  ;;  %4359 = vpow2.f32 %v2411_v62  ;;  %v2427_v23 = vmul.f32 1.442695, %v2334_v35  ;;  %vm8535_vm1 = vnez %v8428_v0  ;;  %v2567_v36 = vmul.f32 %v6995_v30, %v2503_v29  ;;  %v2611_v62 = vpop.xlane.xlu0 %2610  ;;  %v4352_v0 = vpop.eup %4351  ;;  %v2506_v29 = vld [vmem:[#allocation3 + $0x48] sm:$0xff] }
 0x367   : > { %v8537_v28 = vsel %vm8535_vm1, %v8536_v26, -1e+30  ;;  %4361 = vpow2.f32 %v2405_v58  ;;  %v2407_v54 = vmul.f32 1.442695, %v2324_v46  ;;  %vm8538_vm11 = vnez %v8432_v45  ;;  %v4354_v2 = vpop.eup %4353 }
 0x368   : > { %v2337_v25 = vsub.f32 %v8537_v28, %v8534_v53  ;;  %v8539_v11 = vsel %vm8538_vm11, %v8203_v20, -1e+30  ;;  %v2583_v10 = vadd.f32 %v4344_v8, %v2582_v9  ;;  %vm8540_vm5 = vcmp.ne.s32.totalorder %v8529_v49, %v5023_v15  ;;  %v4356_v46 = vpop.eup %4355 }
 0x369   : > { %v2338_v5 = vsub.f32 %v8539_v11, %v8534_v53  ;;  %vm8541_vm7 = vcmp.lt.s32.totalorder %v5023_v15, 640  ;;  %v2413_v35 = vmul.f32 1.442695, %v2327_v32  ;;  %vm8544_vm6 = vnez %v8444_v55 }
 0x36a   : > { %vm7121_vm2 = vmand %vm8541_vm7, %vm8540_vm5  ;;  %v8545_v20 = vsel %vm8544_vm6, %v8466_v37, -1e+30  ;;  %v2663_v51 = vadd.f32 %v2611_v62, %v2567_v36  ;;  %v2579_v33 = vadd.f32 %v4346_v47, %v2578_v42  ;;  %v2205_v16 = vsel %vm7099_vm3, %v8546_v17, -1e+30  ;;  %v4358_v8 = vpop.eup %4357 }
 0x36b   : > { %v2335_v45 = vsub.f32 %v8545_v20, %v8512_v59  ;;  %v2415_v39 = vmul.f32 1.442695, %v2328_v41  ;;  %4363 = vpow2.f32 %v2425_v22  ;;  %v2593_v38 = vadd.f32 %v4352_v0, %v2592_v4  ;;  %v8565_v0 = vld [vmem:[#allocation53_spill] sm:$0xff] }
 0x36c   : > { %4365 = vpow2.f32 %v2427_v23  ;;  %v2433_v58 = vmul.f32 1.442695, %v2337_v25  ;;  %v8547_v55 = vsel %vm6938_vm8, %v8478_v18, -1e+30  ;;  %vm8548_vm13 = vcmask 7168   ;;  %2580 = vadd.xlane.f32.xlu2 %v2579_v33  ;;  %v7147_v18 = vpop.permute.xlu1 %2282  ;;  %v4360_v47 = vpop.eup %4359 }
 0x36d   : > { %v2345_v37 = vsub.f32 %v8547_v55, %v7114_v34  ;;  %2680 = vst.msk [vmem:[#allocation3 + $0x30] sm:$0xff] %vm8548_vm13, %v2663_v51  ;;  %v2597_v9 = vadd.f32 %v4350_v19, %v4348_v63  ;;  %v2206_v32 = vsel %vm7121_vm2, %v8549_v48, -1e+30  ;;  %4367 = vpow2.f32 %v2407_v54  ;;  %v4362_v4 = vpop.eup %4361  ;;  %v8567_v51 = vld [vmem:[#allocation61_spill] sm:$0xff]  ;;  %v2509_v55 = vld [vmem:[#allocation3 + $0x60] sm:$0xff] }
 0x36e   : > { %v2435_v44 = vmul.f32 1.442695, %v2338_v5  ;;  %v8550_v57 = vsel %vm6953_vm14, %v8479_v52, -1e+30  ;;  %4369 = vpow2.f32 %v2413_v35  ;;  %v8552_v7 = vsel %vm6896_vm15, %v8472_v60, -1e+30  ;;  %v2626_v54 = vpop.xlane.xlu0 %2625 }
 0x36f   : > { %v2346_v42 = vsub.f32 %v8550_v57, %v7114_v34  ;;  %v2336_v61 = vsub.f32 %v8552_v7, %v8512_v59  ;;  %v2429_v41 = vmul.f32 1.442695, %v2335_v45  ;;  %v2584_v22 = vadd.f32 %v4354_v2, %v2583_v10 }
 0x370   : > { %4371 = vpow2.f32 %v2415_v39  ;;  %v8555_v52 = vsel %vm6909_vm10, %v8554_v1, -1e+30  ;;  %v2570_v23 = vmul.f32 %v7002_v6, %v2506_v29  ;;  %v2594_v26 = vadd.f32 %v4356_v46, %v2593_v38  ;;  %v8568_v39 = vld [vmem:[#allocation64_spill] sm:$0xff] }
 0x371   : > { %v2339_v40 = vsub.f32 %v8555_v52, %v8534_v53  ;;  %vm8556_vm8 = vcmp.ne.s32.totalorder %v8467_v56, %v5039_v24  ;;  %vm8557_vm14 = vcmp.lt.s32.totalorder %v5039_v24, 640  ;;  %4373 = vpow2.f32 %v2433_v58  ;;  %2585 = vadd.xlane.f32.xlu1 %v2584_v22  ;;  %v4364_v36 = vpop.eup %4363 }
 0x372   : > { %vm7165_vm15 = vmand %vm8557_vm14, %vm8556_vm8  ;;  %v2449_v59 = vmul.f32 1.442695, %v2345_v37  ;;  %v2349_v28 = vsub.f32 %v2205_v16, %v7147_v18  ;;  %v2598_v25 = vadd.f32 %v4362_v4, %v2597_v9  ;;  %vm8560_vm10 = vcmp.ne.s32.totalorder %v8529_v49, %v5031_v21  ;;  %v4366_v5 = vpop.eup %4365 }
 0x373   : > { %vm8561_vm9 = vcmp.lt.s32.totalorder %v5031_v21, 640  ;;  %4375 = vpow2.f32 %v2435_v44  ;;  %v2451_v6 = vmul.f32 1.442695, %v2346_v42  ;;  %v2350_v19 = vsub.f32 %v2206_v32, %v7147_v18  ;;  %v4368_v45 = vpop.eup %4367  ;;  %vm8571_vm3 = vmmov %vm8557_vm14  ;;  %v8574_v42 = vld [vmem:[#allocation65_spill] sm:$0xff] }
 0x374   : > { %vm7175_vm4 = vmand %vm8561_vm9, %vm8560_vm10  ;;  %v2602_v11 = vadd.f32 %v4360_v47, %v4358_v8  ;;  %4377 = vpow2.f32 %v2429_v41  ;;  %v2431_v62 = vmul.f32 1.442695, %v2336_v61  ;;  %v8566_v30 = vsel %vm6926_vm0, %v8565_v0, -1e+30  ;;  %v4370_v16 = vpop.eup %4369  ;;  %2595 = vadd.xlane.f32.xlu2 %v2594_v26 }
 0x375   : > { %v2340_v35 = vsub.f32 %v8566_v30, %v8534_v53  ;;  %v2666_v20 = vadd.f32 %v2626_v54, %v2570_v23  ;;  %v2204_v33 = vsel %vm7165_vm15, %v8567_v51, -1e+30  ;;  %v2437_v2 = vmul.f32 1.442695, %v2339_v40  ;;  %vm8569_vm0 = vmmov %vm8548_vm13 }
 0x376   : > { %v2347_v17 = vsub.f32 %v2203_v13, %v7114_v34  ;;  %v2207_v38 = vsel %vm7175_vm4, %v8568_v39, -1e+30  ;;  %4379 = vpow2.f32 %v2449_v59  ;;  %v2457_v53 = vmul.f32 1.442695, %v2349_v28  ;;  %v4372_v46 = vpop.eup %4371  ;;  %v2641_v3 = vpop.xlane.xlu0 %2640  ;;  %vm8575_vm11 = vmmov %vm8569_vm0 }
 0x377   : > { %2683 = vst.msk [vmem:[#allocation3 + $0x48] sm:$0xff] %vm8569_vm0, %v2666_v20  ;;  %4381 = vpow2.f32 %v2451_v6  ;;  %v2459_v58 = vmul.f32 1.442695, %v2350_v19  ;;  %v2603_v37 = vadd.f32 %v4370_v16, %v2602_v11  ;;  %v2612_v29 = vadd.f32 %v4366_v5, %v4364_v36  ;;  %v4374_v27 = vpop.eup %4373  ;;  %v2907_v11 = vld [vmem:[#allocation5 + $0x48] sm:$0xff]  ;;  %vm8576_vm5 = vmmov %vm8569_vm0  ;;  %v8577_v16 = vld [vmem:[#allocation128_spill] sm:$0xff] }
 0x378   : > { %vm8570_vm12 = vcmp.ne.s32.totalorder %v8529_v49, %v5039_v24  ;;  %4383 = vpow2.f32 %v2431_v62  ;;  %v2439_v13 = vmul.f32 1.442695, %v2340_v35  ;;  %v2348_v9 = vsub.f32 %v2204_v33, %v7114_v34  ;;  %v2909_v33 = vld [vmem:[#allocation5 + $0x58] sm:$0xff]  ;;  %vm8580_vm13 = vmmov %vm8569_vm0 }
 0x379   : > { %vm7202_vm1 = vmand %vm8571_vm3, %vm8570_vm12  ;;  %v2599_v8 = vadd.f32 %v4368_v45, %v2598_v25  ;;  %v4376_v48 = vpop.eup %4375  ;;  %4385 = vpow2.f32 %v2437_v2  ;;  %v2453_v32 = vmul.f32 1.442695, %v2347_v17  ;;  %v2351_v44 = vsub.f32 %v2207_v38, %v7147_v18  ;;  %v2716_v45 = vld [vmem:[#allocation4 + $0x50] sm:$0xff]  ;;  %v8585_v38 = vld [vmem:[#allocation70_spill] sm:$0xff] }
 0x37a   : > { %v4378_v57 = vpop.eup %4377  ;;  %4387 = vpow2.f32 %v2457_v53  ;;  %v2573_v49 = vmul.f32 %v7013_v50, %v2509_v55  ;;  %v2208_v47 = vsel %vm7202_vm1, %v8574_v42, -1e+30  ;;  %v2604_v7 = vadd.f32 %v4372_v46, %v2603_v37  ;;  %v8586_v46 = vld [vmem:[#allocation71_spill] sm:$0xff]  ;;  %v8587_v55 = vld [vmem:[#allocation72_spill] sm:$0xff] }
 0x37b   : > { %2600 = vadd.xlane.f32.xlu1 %v2599_v8  ;;  %4389 = vpow2.f32 %v2459_v58  ;;  %v2613_v61 = vadd.f32 %v4378_v57, %v2612_v29  ;;  %v2455_v41 = vmul.f32 1.442695, %v2348_v9  ;;  %v2617_v4 = vadd.f32 %v4376_v48, %v4374_v27  ;;  %v2718_v27 = vld [vmem:[#allocation4 + $0x60] sm:$0xff] }
 0x37c   : > { %v4380_v34 = vpop.eup %4379  ;;  %4391 = vpow2.f32 %v2439_v13  ;;  %v2669_v22 = vadd.f32 %v2641_v3, %v2573_v49  ;;  %v2352_v1 = vsub.f32 %v2208_v47, %v7147_v18  ;;  %v2461_v52 = vmul.f32 1.442695, %v2351_v44  ;;  %2605 = vadd.xlane.f32.xlu2 %v2604_v7  ;;  %v2963_v62 = vpop.xlane.xlu2 %2962 }
 0x37d   : > { %v4382_v63 = vpop.eup %4381  ;;  %4393 = vpow2.f32 %v2453_v32  ;;  %v3003_v30 = vadd.f32 %v2963_v62, %v2907_v11  ;;  %vm8578_vm7 = vcmp.ne.s32.totalorder %v8577_v16, %v5021_v14  ;;  %vm8579_vm2 = vcmp.lt.s32.totalorder %v5021_v14, 640  ;;  %v2512_v11 = vld [vmem:[#allocation3 + $0x78] sm:$0xff] }
 0x37e   : > { %v4384_v40 = vpop.eup %4383  ;;  %2686 = vst.msk [vmem:[#allocation3 + $0x60] sm:$0xff] %vm8575_vm11, %v2669_v22  ;;  %4395 = vpow2.f32 %v2455_v41  ;;  %v2627_v59 = vadd.f32 %v4382_v63, %v4380_v34  ;;  %v2463_v25 = vmul.f32 1.442695, %v2352_v1  ;;  %vm1973_vm6 = vmand %vm8579_vm2, %vm8578_vm7  ;;  %vm8581_vm8 = vcmp.ne.s32.totalorder %v8577_v16, %v5023_v15  ;;  %v8590_v34 = vld [vmem:[#allocation135_spill] sm:$0xff]  ;;  %v8591_v41 = vld [vmem:[#allocation134_spill] sm:$0xff] }
 0x37f   : > { %v4386_v50 = vpop.eup %4385  ;;  %v2614_v26 = vadd.f32 %v4384_v40, %v2613_v61  ;;  %4397 = vpow2.f32 %v2461_v52  ;;  %3019 = vst.msk [vmem:[#allocation5 + $0x48] sm:$0xff] %vm8576_vm5, %v3003_v30  ;;  %vm8582_vm14 = vcmp.lt.s32.totalorder %v5023_v15, 640  ;;  %vm8583_vm10 = vcmp.ne.s32.totalorder %v8577_v16, %v5031_v21  ;;  %vm8589_vm11 = vmmov %vm8569_vm0 }
 0x380   : > { %v4388_v23 = vpop.eup %4387  ;;  %v2618_v60 = vadd.f32 %v4386_v50, %v2617_v4  ;;  %4399 = vpow2.f32 %v2463_v25  ;;  %vm1974_vm15 = vmand %vm8582_vm14, %vm8581_vm8  ;;  %vm8584_vm12 = vcmp.ne.s32.totalorder %v8577_v16, %v5039_v24  ;;  %v2213_v53 = vsel %vm1973_vm6, %v8585_v38, -1e+30  ;;  %v8604_v25 = vld [vmem:[#allocation119_spill] sm:$0xff] }
 0x381   : > { %v4390_v28 = vpop.eup %4389  ;;  %vm1975_vm4 = vmand %vm8561_vm9, %vm8583_vm10  ;;  %v2214_v58 = vsel %vm1974_vm15, %v8586_v46, -1e+30  ;;  %v2528_v22 = vsub.f32 %v8591_v41, %v8590_v34  ;;  %v8619_v34 = vld [vmem:[#allocation92_spill] sm:$0xff]  ;;  %v2719_v41 = vld [vmem:[#allocation4 + $0x68] sm:$0xff] }
 0x382   : > { %v4392_v36 = vpop.eup %4391  ;;  %v2632_v18 = vadd.f32 %v4390_v28, %v4388_v23  ;;  %vm1976_vm1 = vmand %vm8571_vm3, %vm8584_vm12  ;;  %v2215_v37 = vsel %vm1975_vm4, %v8587_v55, -1e+30  ;;  %v8592_v23 = vld [vmem:[#allocation95_spill] sm:$0xff] }
 0x383   : > { %2615 = vadd.xlane.f32.xlu1 %v2614_v26  ;;  %v4394_v56 = vpop.eup %4393  ;;  %v2619_v6 = vadd.f32 %v4392_v36, %v2618_v60  ;;  %v2216_v13 = vsel %vm1976_vm1, %v8588_v43, -1e+30  ;;  %v2559_v40 = vmul.f32 1.442695, %v2528_v22  ;;  %vm8593_vm5 = vcmp.ne.s32.totalorder %v8592_v23, %v5021_v14  ;;  %vm8594_vm7 = vmmov %vm8579_vm2  ;;  %v8595_v26 = vld [vmem:[#allocation51_spill] sm:$0xff]  ;;  %v8596_v60 = vld [vmem:[#allocation102_spill] sm:$0xff] }
 0x384   : > { %v2628_v19 = vadd.f32 %v4394_v56, %v2627_v59  ;;  %v4396_v54 = vpop.eup %4395  ;;  %v2840_v51 = vpop.xlane.xlu2 %2839  ;;  %vm1977_vm2 = vmand %vm8594_vm7, %vm8593_vm5  ;;  %v2985_v59 = vadd.f32 %v8596_v60, %v8595_v26  ;;  %vm8597_vm6 = vcmp.ne.s32.totalorder %v8592_v23, %v5023_v15  ;;  %v8603_v14 = vld [vmem:[#allocation74_spill] sm:$0xff]  ;;  %v8622_v26 = vld [vmem:[#allocation103_spill] sm:$0xff] }
 0x385   : > { %2620 = vadd.xlane.f32.xlu2 %v2619_v6  ;;  %v4398_v5 = vpop.eup %4397  ;;  %v2876_v2 = vadd.f32 %v2840_v51, %v2716_v45  ;;  %v2973_v17 = vpop.xlane.xlu1 %2972  ;;  %vm8600_vm15 = vmmov %vm8561_vm9  ;;  %vm8601_vm9 = vcmp.ne.s32.totalorder %v8592_v23, %v5039_v24  ;;  %v2217_v28 = vsel %vm1977_vm2, %v8603_v14, -1e+30  ;;  %v8605_v6 = vld [vmem:[#allocation75_spill] sm:$0xff] }
 0x386   : > { %v2629_v10 = vadd.f32 %v4396_v54, %v2628_v19  ;;  %v2633_v0 = vadd.f32 %v4398_v5, %v2632_v18  ;;  %v4400_v35 = vpop.eup %4399  ;;  %v3005_v39 = vadd.f32 %v2973_v17, %v2909_v33  ;;  %vm8602_vm4 = vmmov %vm8571_vm3  ;;  %v2986_v36 = vadd.f32 %v2985_v59, %v8604_v25  ;;  %v8606_v19 = vld [vmem:[#allocation76_spill] sm:$0xff]  ;;  %v8607_v5 = vld [vmem:[#allocation77_spill] sm:$0xff] }
 0x387   : > { %2892 = vst.msk [vmem:[#allocation4 + $0x50] sm:$0xff] %vm8580_vm13, %v2876_v2  ;;  %vm8598_vm13 = vmmov %vm8582_vm14  ;;  %vm8599_vm14 = vcmp.ne.s32.totalorder %v8592_v23, %v5031_v21  ;;  %v2911_v17 = vld [vmem:[#allocation5 + $0x68] sm:$0xff]  ;;  %v8621_v23 = vld [vmem:[#allocation100_spill] sm:$0xff] }
 0x388   : > { %v2634_v20 = vadd.f32 %v4400_v35, %v2633_v0  ;;  %3021 = vst.msk [vmem:[#allocation5 + $0x58] sm:$0xff] %vm8569_vm0, %v3005_v39  ;;  %vm1978_vm8 = vmand %vm8598_vm13, %vm8597_vm6  ;;  %v8623_v60 = vsub.f32 %v8621_v23, %v8622_v26  ;;  %v8624_v14 = vld [vmem:[#allocation107_spill] sm:$0xff] }
 0x389   : > { %vm1979_vm10 = vmand %vm8600_vm15, %vm8599_vm14  ;;  %v2218_v15 = vsel %vm1978_vm8, %v8605_v6, -1e+30 }
 0x38a   : > { %vm1980_vm0 = vmand %vm8602_vm4, %vm8601_vm9  ;;  %v2219_v18 = vsel %vm1979_vm10, %v8606_v19, -1e+30  ;;  %v2537_v59 = vmul.f32 1.442695, %v8623_v60 }
 0x38b   : > { %2630 = vadd.xlane.f32.xlu1 %v2629_v10  ;;  %v2220_v21 = vsel %vm1980_vm0, %v8607_v5, -1e+30  ;;  %vm8608_vm12 = vmmov %vm8589_vm11 }
 0x38c   : > { %v2293_v29 = vpop.permute.xlu2 %2292  ;;  %vm8609_vm3 = vmmov %vm8589_vm11 }
 0x38d   : > { %2635 = vadd.xlane.f32.xlu2 %v2634_v20  ;;  %v2357_v9 = vsub.f32 %v2213_v53, %v2293_v29  ;;  %v2358_v8 = vsub.f32 %v2214_v58, %v2293_v29  ;;  %v2359_v48 = vsub.f32 %v2215_v37, %v2293_v29  ;;  %v2360_v32 = vsub.f32 %v2216_v13, %v2293_v29  ;;  %v2850_v44 = vpop.xlane.xlu1 %2849  ;;  %vm8614_vm1 = vmmov %vm8609_vm3 }
 0x38e   : > { %v2878_v42 = vadd.f32 %v2850_v44, %v2718_v27  ;;  %v8610_v27 = vld [vmem:[#allocation136_spill] sm:$0xff]  ;;  %v8612_v44 = vld [vmem:[#allocation83_spill] sm:$0xff]  ;;  %vm8626_vm5 = vmmov %vm8614_vm1 }
 0x38f   : > { %v2473_v57 = vmul.f32 1.442695, %v2357_v9  ;;  %v2475_v49 = vmul.f32 1.442695, %v2358_v8  ;;  %v2477_v47 = vmul.f32 1.442695, %v2359_v48  ;;  %v2990_v43 = vadd.f32 %v8610_v27, %v6988_v12  ;;  %vm8629_vm7 = vmmov %vm8614_vm1 }
 0x390   : > { %2894 = vst.msk [vmem:[#allocation4 + $0x60] sm:$0xff] %vm8589_vm11, %v2878_v42  ;;  %v2479_v3 = vmul.f32 1.442695, %v2360_v32  ;;  %v2910_v9 = vld [vmem:[#allocation5 + $0x60] sm:$0xff]  ;;  %v8611_v32 = vld [vmem:[#allocation80_spill] sm:$0xff]  ;;  %vm8620_vm11 = vmmov %vm8614_vm1 }
 0x391   : > { %4401 = vpow2.f32 %v2473_v57  ;;  %v2991_v13 = vadd.f32 %v2990_v43, %v7050_v31  ;;  %v8613_v57 = vsub.f32 %v8611_v32, %v8612_v44  ;;  %v8615_v42 = vld [vmem:[#allocation84_spill] sm:$0xff]  ;;  %vm8632_vm2 = vmmov %vm8614_vm1 }
 0x392   : > { %4403 = vpow2.f32 %v2475_v49  ;;  %vm8635_vm6 = vmmov %vm8614_vm1 }
 0x393   : > { %4405 = vpow2.f32 %v2477_v47  ;;  %v2529_v49 = vmul.f32 1.442695, %v8613_v57  ;;  %v8616_v47 = vld [vmem:[#allocation85_spill] sm:$0xff]  ;;  %vm8638_vm13 = vmmov %vm8614_vm1 }
 0x394   : > { %4407 = vpow2.f32 %v2479_v3  ;;  %v8617_v3 = vsub.f32 %v8615_v42, %v8616_v47  ;;  %v2504_v57 = vld [vmem:[#allocation3 + $0x38] sm:$0xff]  ;;  %vm8639_vm8 = vmmov %vm8614_vm1 }
 0x395   : > { %4409 = vpow2.f32 %v2559_v40  ;;  %v2497_v40 = vld [vmem:[#allocation3] sm:$0xff]  ;;  %vm8640_vm14 = vmmov %vm8614_vm1 }
 0x396   : > { %vm8641_vm15 = vmmov %vm8614_vm1 }
 0x397   : > { %v4402_v7 = vpop.eup %4401  ;;  %vm8642_vm10 = vmmov %vm8614_vm1 }
 0x398   : > { %v4404_v61 = vpop.eup %4403  ;;  %vm8643_vm9 = vmmov %vm8614_vm1 }
 0x399   : > { %v2642_v4 = vadd.f32 %v4404_v61, %v4402_v7  ;;  %v4406_v63 = vpop.eup %4405  ;;  %v2531_v7 = vmul.f32 1.442695, %v8617_v3  ;;  %v8618_v61 = vld [vmem:[#allocation94_spill] sm:$0xff]  ;;  %vm8646_vm4 = vmmov %vm8614_vm1 }
 0x39a   : > { %v4408_v52 = vpop.eup %4407  ;;  %v2516_v12 = vsub.f32 %v8619_v34, %v8618_v61  ;;  %v2505_v61 = vld [vmem:[#allocation3 + $0x40] sm:$0xff]  ;;  %vm8649_vm0 = vmmov %vm8614_vm1 }
 0x39b   : > { %v2643_v1 = vadd.f32 %v4406_v63, %v2642_v4  ;;  %v4410_v56 = vpop.eup %4409  ;;  %v2721_v63 = vld [vmem:[#allocation4 + $0x78] sm:$0xff] }
 0x39c   : > { %v2576_v20 = vmul.f32 %v4410_v56, %v2512_v11  ;;  %v2535_v4 = vmul.f32 1.442695, %v2516_v12  ;;  %v8628_v11 = vld [vmem:[#allocation109_spill] sm:$0xff] }
 0x39d   : > { %v2644_v50 = vadd.f32 %v4408_v52, %v2643_v1 }
 0x39f   : > { %2645 = vadd.xlane.f32.xlu1 %v2644_v50 }
 0x3a5   : > { %v2298_v54 = vpop.permute.xlu1 %2297 }
 0x3a6   : > { %v2361_v62 = vsub.f32 %v2217_v28, %v2298_v54  ;;  %v2362_v10 = vsub.f32 %v2218_v15, %v2298_v54  ;;  %v2363_v0 = vsub.f32 %v2219_v18, %v2298_v54  ;;  %v2364_v30 = vsub.f32 %v2220_v21, %v2298_v54  ;;  %v8625_v28 = vld [vmem:[#allocation106_spill] sm:$0xff]  ;;  %v2498_v15 = vld [vmem:[#allocation3 + $0x8] sm:$0xff] }
 0x3a7   : > { %2987 = vadd.xlane.f32.xlu1 %v2986_v36  ;;  %v2518_v25 = vsub.f32 %v8625_v28, %v8624_v14  ;;  %v8627_v54 = vld [vmem:[#allocation110_spill] sm:$0xff] }
 0x3a8   : > { %v2481_v24 = vmul.f32 1.442695, %v2361_v62  ;;  %v2483_v35 = vmul.f32 1.442695, %v2362_v10  ;;  %v2485_v45 = vmul.f32 1.442695, %v2363_v0  ;;  %v2520_v5 = vsub.f32 %v8628_v11, %v8627_v54 }
 0x3a9   : > { %v2487_v2 = vmul.f32 1.442695, %v2364_v30  ;;  %v2539_v18 = vmul.f32 1.442695, %v2518_v25  ;;  %v2500_v0 = vld [vmem:[#allocation3 + $0x18] sm:$0xff]  ;;  %v8645_v14 = vld [vmem:[#allocation130_spill] sm:$0xff] }
 0x3aa   : > { %v2656_v51 = vpop.xlane.xlu0 %2655  ;;  %4411 = vpow2.f32 %v2481_v24  ;;  %v2543_v24 = vmul.f32 1.442695, %v2520_v5  ;;  %v8647_v54 = vld [vmem:[#allocation69_spill] sm:$0xff]  ;;  %v8648_v11 = vld [vmem:[#allocation68_spill] sm:$0xff] }
 0x3ab   : > { %v2672_v33 = vadd.f32 %v2656_v51, %v2576_v20  ;;  %4413 = vpow2.f32 %v2483_v35  ;;  %v8630_v35 = vld [vmem:[#allocation112_spill] sm:$0xff]  ;;  %v8631_v20 = vld [vmem:[#allocation111_spill] sm:$0xff]  ;;  %v2527_v5 = vsub.f32 %v8648_v11, %v8647_v54 }
 0x3ac   : > { %4415 = vpow2.f32 %v2485_v45  ;;  %v2521_v45 = vsub.f32 %v8631_v20, %v8630_v35 }
 0x3ad   : > { %2689 = vst.msk [vmem:[#allocation3 + $0x78] sm:$0xff] %vm8608_vm12, %v2672_v33  ;;  %4417 = vpow2.f32 %v2487_v2  ;;  %vm8650_vm12 = vmmov %vm8649_vm0 }
 0x3ae   : > { %4419 = vpow2.f32 %v2529_v49 }
 0x3af   : > { %4421 = vpow2.f32 %v2531_v7 }
 0x3b0   : > { %v4412_v16 = vpop.eup %4411  ;;  %4423 = vpow2.f32 %v2535_v4 }
 0x3b1   : > { %v4414_v39 = vpop.eup %4413  ;;  %4425 = vpow2.f32 %v2537_v59  ;;  %v8644_v59 = vld [vmem:[#allocation101_spill] sm:$0xff] }
 0x3b2   : > { %v2983_v38 = vpop.xlane.xlu0 %2982  ;;  %v2647_v46 = vadd.f32 %v4414_v39, %v4412_v16  ;;  %v4416_v58 = vpop.eup %4415  ;;  %4427 = vpow2.f32 %v2539_v18  ;;  %v2545_v39 = vmul.f32 1.442695, %v2521_v45  ;;  %v2526_v28 = vsub.f32 %v8645_v14, %v8644_v59  ;;  %v2912_v18 = vld [vmem:[#allocation5 + $0x70] sm:$0xff]  ;;  %v2913_v45 = vld [vmem:[#allocation5 + $0x78] sm:$0xff] }
 0x3b3   : > { %v3007_v53 = vadd.f32 %v2983_v38, %v2911_v17  ;;  %v4418_v37 = vpop.eup %4417  ;;  %v2501_v17 = vld [vmem:[#allocation3 + $0x20] sm:$0xff]  ;;  %4429 = vpow2.f32 %v2543_v24 }
 0x3b4   : > { %v2648_v55 = vadd.f32 %v4416_v58, %v2647_v46  ;;  %v4420_v1 = vpop.eup %4419  ;;  %v8633_v38 = vld [vmem:[#allocation118_spill] sm:$0xff]  ;;  %4431 = vpow2.f32 %v2545_v39  ;;  %v2555_v25 = vmul.f32 1.442695, %v2526_v28 }
 0x3b5   : > { %3023 = vst.msk [vmem:[#allocation5 + $0x68] sm:$0xff] %vm8609_vm3, %v3007_v53  ;;  %v2561_v36 = vmul.f32 %v4420_v1, %v2497_v40  ;;  %v4422_v56 = vpop.eup %4421  ;;  %v8634_v53 = vld [vmem:[#allocation117_spill] sm:$0xff]  ;;  %vm8651_vm3 = vmmov %vm8649_vm0 }
 0x3b6   : > { %v2649_v29 = vadd.f32 %v4418_v37, %v2648_v55  ;;  %v2562_v21 = vmul.f32 %v4422_v56, %v2498_v15  ;;  %v4424_v62 = vpop.eup %4423  ;;  %v2523_v46 = vsub.f32 %v8634_v53, %v8633_v38  ;;  %v2508_v40 = vld [vmem:[#allocation3 + $0x58] sm:$0xff]  ;;  %v2510_v56 = vld [vmem:[#allocation3 + $0x68] sm:$0xff] }
 0x3b7   : > { %v2564_v51 = vmul.f32 %v4424_v62, %v2500_v0  ;;  %v4426_v33 = vpop.eup %4425 }
 0x3b8   : > { %2650 = vadd.xlane.f32.xlu2 %v2649_v29  ;;  %v2565_v58 = vmul.f32 %v4426_v33, %v2501_v17  ;;  %v4428_v55 = vpop.eup %4427  ;;  %v2502_v29 = vld [vmem:[#allocation3 + $0x28] sm:$0xff]  ;;  %v2549_v43 = vmul.f32 1.442695, %v2523_v46 }
 0x3b9   : > { %v4430_v32 = vpop.eup %4429 }
 0x3ba   : > { %4433 = vpow2.f32 %v2549_v43  ;;  %v2568_v47 = vmul.f32 %v4430_v32, %v2504_v57  ;;  %v4432_v3 = vpop.eup %4431 }
 0x3bb   : > { %v2569_v12 = vmul.f32 %v4432_v3, %v2505_v61 }
 0x3c0   : > { %2992 = vadd.xlane.f32.xlu2 %v2991_v13  ;;  %v8636_v13 = vld [vmem:[#allocation123_spill] sm:$0xff] }
 0x3c8   : > { %v2978_v8 = vpop.xlane.xlu2 %2977 }
 0x3c9   : > { %v3006_v48 = vadd.f32 %v2978_v8, %v2910_v9  ;;  %v8637_v9 = vld [vmem:[#allocation121_spill] sm:$0xff] }
 0x3ca   : > { %v2524_v8 = vsub.f32 %v8637_v9, %v8636_v13 }
 0x3cb   : > { %3022 = vst.msk [vmem:[#allocation5 + $0x60] sm:$0xff] %vm8614_vm1, %v3006_v48  ;;  %v2566_v48 = vmul.f32 %v4428_v55, %v2502_v29 }
 0x3cc   : > { %v2551_v42 = vmul.f32 1.442695, %v2524_v8 }
 0x3ce   : > { %4435 = vpow2.f32 %v2551_v42 }
 0x3cf   : > { %4437 = vpow2.f32 %v2555_v25 }
 0x3d1   : > { %v2855_v31 = vpop.xlane.xlu2 %2854 }
 0x3d2   : > { %v2879_v22 = vadd.f32 %v2855_v31, %v2719_v41  ;;  %v4434_v41 = vpop.eup %4433 }
 0x3d4   : > { %2895 = vst.msk [vmem:[#allocation4 + $0x68] sm:$0xff] %vm8620_vm11, %v2879_v22  ;;  %v2507_v22 = vld [vmem:[#allocation3 + $0x50] sm:$0xff]  ;;  %v4436_v1 = vpop.eup %4435 }
 0x3d5   : > { %v2572_v23 = vmul.f32 %v4436_v1, %v2508_v40 }
 0x3d7   : > { %v2865_v52 = vpop.xlane.xlu1 %2864 }
 0x3d8   : > { %v2881_v50 = vadd.f32 %v2865_v52, %v2721_v63  ;;  %v2571_v63 = vmul.f32 %v4434_v41, %v2507_v22 }
 0x3da   : > { %2897 = vst.msk [vmem:[#allocation4 + $0x78] sm:$0xff] %vm8626_vm5, %v2881_v50 }
 0x3df   : > { %v2581_v6 = vpop.xlane.xlu2 %2580 }
 0x3e0   : > { %v2657_v19 = vadd.f32 %v2581_v6, %v2561_v36  ;;  %v4438_v36 = vpop.eup %4437 }
 0x3e1   : > { %v2574_v6 = vmul.f32 %v4438_v36, %v2510_v56 }
 0x3e2   : > { %2674 = vst.msk [vmem:[#allocation3] sm:$0xff] %vm8629_vm7, %v2657_v19 }
 0x3e4   : > { %v2586_v10 = vpop.xlane.xlu1 %2585 }
 0x3e5   : > { %v2658_v30 = vadd.f32 %v2586_v10, %v2562_v21  ;;  %v2557_v10 = vmul.f32 1.442695, %v2527_v5 }
 0x3e7   : > { %2675 = vst.msk [vmem:[#allocation3 + $0x8] sm:$0xff] %vm8632_vm2, %v2658_v30  ;;  %v2596_v2 = vpop.xlane.xlu2 %2595  ;;  %4439 = vpow2.f32 %v2557_v10  ;;  %v2511_v30 = vld [vmem:[#allocation3 + $0x70] sm:$0xff] }
 0x3e8   : > { %v2660_v16 = vadd.f32 %v2596_v2, %v2564_v51 }
 0x3ea   : > { %2677 = vst.msk [vmem:[#allocation3 + $0x18] sm:$0xff] %vm8635_vm6, %v2660_v16 }
 0x3ed   : > { %v4440_v0 = vpop.eup %4439 }
 0x3ee   : > { %v2601_v37 = vpop.xlane.xlu1 %2600  ;;  %v2575_v24 = vmul.f32 %v4440_v0, %v2511_v30 }
 0x3ef   : > { %v2661_v27 = vadd.f32 %v2601_v37, %v2565_v58  ;;  %v2606_v44 = vpop.xlane.xlu2 %2605 }
 0x3f0   : > { %v2662_v49 = vadd.f32 %v2606_v44, %v2566_v48 }
 0x3f1   : > { %2678 = vst.msk [vmem:[#allocation3 + $0x20] sm:$0xff] %vm8638_vm13, %v2661_v27 }
 0x3f2   : > { %2679 = vst.msk [vmem:[#allocation3 + $0x28] sm:$0xff] %vm8639_vm8, %v2662_v49 }
 0x3f6   : > { %v2616_v7 = vpop.xlane.xlu1 %2615 }
 0x3f7   : > { %v2664_v34 = vadd.f32 %v2616_v7, %v2568_v47 }
 0x3f8   : > { %v2621_v31 = vpop.xlane.xlu2 %2620 }
 0x3f9   : > { %2681 = vst.msk [vmem:[#allocation3 + $0x38] sm:$0xff] %vm8640_vm14, %v2664_v34  ;;  %v2665_v4 = vadd.f32 %v2621_v31, %v2569_v12 }
 0x3fb   : > { %2682 = vst.msk [vmem:[#allocation3 + $0x40] sm:$0xff] %vm8641_vm15, %v2665_v4 }
 0x3fe   : > { %v2631_v52 = vpop.xlane.xlu1 %2630 }
 0x3ff   : > { %v2667_v50 = vadd.f32 %v2631_v52, %v2571_v63 }
 0x400   : > { %v2636_v26 = vpop.xlane.xlu2 %2635 }
 0x401   : > { %2684 = vst.msk [vmem:[#allocation3 + $0x50] sm:$0xff] %vm8642_vm10, %v2667_v50  ;;  %v2668_v60 = vadd.f32 %v2636_v26, %v2572_v23 }
 0x403   : > { %2685 = vst.msk [vmem:[#allocation3 + $0x58] sm:$0xff] %vm8643_vm9, %v2668_v60 }
 0x412   : > { %v2646_v15 = vpop.xlane.xlu1 %2645 }
 0x413   : > { %v2670_v19 = vadd.f32 %v2646_v15, %v2574_v6 }
 0x415   : > { %2687 = vst.msk [vmem:[#allocation3 + $0x68] sm:$0xff] %vm8646_vm4, %v2670_v19 }
 0x41a   : > { %v2988_v21 = vpop.xlane.xlu1 %2987 }
 0x41b   : > { %v3008_v62 = vadd.f32 %v2988_v21, %v2912_v18 }
 0x41d   : > { %3024 = vst.msk [vmem:[#allocation5 + $0x70] sm:$0xff] %vm8649_vm0, %v3008_v62 }
 0x42b   : > { %v2651_v35 = vpop.xlane.xlu2 %2650 }
 0x42c   : > { %v2671_v20 = vadd.f32 %v2651_v35, %v2575_v24 }
 0x42e   : > { %2688 = vst.msk [vmem:[#allocation3 + $0x70] sm:$0xff] %vm8650_vm12, %v2671_v20 }
 0x432   : > { %3029 = sbr.rel (%p4094_p1) target bundleno = 1287 (0x507), region = 60 }
 0x433   : > { %v2993_v51 = vpop.xlane.xlu2 %2992 }
 0x434   : > { %v3009_v33 = vadd.f32 %v2993_v51, %v2913_v45 }
 0x436   : > { %3025 = vst.msk [vmem:[#allocation5 + $0x78] sm:$0xff] %vm8651_vm3, %v3009_v33 }
 0x437   : > { %v7318_v2 = vld [vmem:[#allocation5 + $0x20] sm:$0xff]  ;;  %v4728_v17 = vmov 0   ;;  %v7321_v39 = vld [vmem:[#allocation5 + $0x10] sm:$0xff]  ;;  %v7330_v27 = vld [vmem:[#allocation5 + $0x28] sm:$0xff] }
 0x438   : > { %4443 = vset.pattern.permute.xlu2 %v4728_v17  ;;  %4442 = vset.pattern.permute.xlu1 %v4728_v17  ;;  %4444 = vrcp.f32 %v7318_v2  ;;  %v3338_v16 = vld [vmem:[#allocation3 + $0x20] sm:$0xff]  ;;  %v3336_v38 = vld [vmem:[#allocation3 + $0x10] sm:$0xff]  ;;  %v3131_v53 = vand.u32 2147483647, %v7318_v2  ;;  %v3133_v46 = vand.u32 2147483648, %v7318_v2  ;;  %v3103_v58 = vand.u32 2147483648, %v7321_v39 }
 0x439   : > { %4441 = vset.pattern.permute.xlu0 %v4728_v17  ;;  %4446 = vlog2.f32 %v3338_v16  ;;  %v7327_v55 = vld [vmem:[#allocation5] sm:$0xff]  ;;  %v3101_v29 = vand.u32 2147483647, %v7321_v39  ;;  %vm3127_vm1 = vweird.f32 %v7318_v2  ;;  %vm3097_vm11 = vweird.f32 %v7321_v39  ;;  %v7347_v57 = vld [vmem:[#allocation5 + $0x18] sm:$0xff]  ;;  %v3339_v7 = vld [vmem:[#allocation3 + $0x28] sm:$0xff] }
 0x43a   : > { %4448 = vrcp.f32 %v7321_v39  ;;  %v3334_v37 = vld [vmem:[#allocation3] sm:$0xff]  ;;  %v3073_v43 = vand.u32 2147483648, %v7327_v55  ;;  %v3071_v13 = vand.u32 2147483647, %v7327_v55  ;;  %v3148_v9 = vand.u32 2147483648, %v7330_v27  ;;  %v3337_v31 = vld [vmem:[#allocation3 + $0x18] sm:$0xff] }
 0x43b   : > { %4450 = vlog2.f32 %v3336_v38  ;;  %vm7340_vm5 = vcmp.eq.f32.partialorder %v3131_v53, 8.507059e+37  ;;  %v3134_v32 = vor.u32 1.1754944e-38, %v3133_v46  ;;  %v7344_v44 = vor.u32 1.1754944e-38, %v3103_v58  ;;  %v7374_v40 = vld [vmem:[#allocation5 + $0x8] sm:$0xff]  ;;  %v3034_v21 = vld [vmem:[#allocation4 + $0x20] sm:$0xff]  ;;  %v3305_v62 = vld [vmem:[#allocation2 + $0x18] sm:$0xff] }
 0x43c   : > { %4452 = vrcp.f32 %v7327_v55  ;;  %vm7351_vm7 = vcmp.eq.f32.partialorder %v3101_v29, 8.507059e+37  ;;  %vm3067_vm2 = vweird.f32 %v7327_v55  ;;  %vm3142_vm6 = vweird.f32 %v7330_v27  ;;  %v3335_v5 = vld [vmem:[#allocation3 + $0x8] sm:$0xff]  ;;  %v7434_v33 = vld [vmem:[#allocation5 + $0x40] sm:$0xff] }
 0x43d   : > { %4454 = vlog2.f32 %v3334_v37  ;;  %v3146_v3 = vand.u32 2147483647, %v7330_v27  ;;  %v7361_v34 = vor.u32 1.1754944e-38, %v3073_v43  ;;  %v3116_v12 = vand.u32 2147483647, %v7347_v57  ;;  %v3306_v16 = vld [vmem:[#allocation2 + $0x20] sm:$0xff] }
 0x43e   : > { %v7338_v8 = vpop.eup %4444  ;;  %4456 = vrcp.f32 %v7330_v27  ;;  %v3118_v41 = vand.u32 2147483648, %v7347_v57  ;;  %vm7367_vm8 = vcmp.eq.f32.partialorder %v3071_v13, 8.507059e+37  ;;  %v7371_v52 = vor.u32 1.1754944e-38, %v3148_v9  ;;  %v3030_v48 = vld [vmem:[#allocation4] sm:$0xff] }
 0x43f   : > { %v4447_v49 = vpop.eup %4446  ;;  %v3123_v42 = vmul.f32 %v7338_v8, %v7318_v2  ;;  %vm3128_vm13 = vweird.f32 %v7338_v8  ;;  %4458 = vrcp.f32 %v7347_v57  ;;  %vm3112_vm15 = vweird.f32 %v7347_v57 }
 0x440   : > { %v7358_v61 = vpop.eup %4448  ;;  %v7378_v23 = vmul.f32 0.6931472, %v4447_v49  ;;  %4460 = vlog2.f32 %v3339_v7  ;;  %vm7387_vm10 = vcmp.eq.f32.partialorder %v3146_v3, 8.507059e+37  ;;  %vm7397_vm9 = vmor %vm3127_vm1, %vm3128_vm13  ;;  %v7402_v6 = vor.u32 1.1754944e-38, %v3118_v41 }
 0x441   : > { %v4451_v22 = vpop.eup %4450  ;;  %v3124_v4 = vsub.f32 1.0, %v3123_v42  ;;  %v3093_v63 = vmul.f32 %v7358_v61, %v7321_v39  ;;  %vm3098_vm14 = vweird.f32 %v7358_v61  ;;  %4462 = vlog2.f32 %v3337_v31  ;;  %v3032_v39 = vld [vmem:[#allocation4 + $0x10] sm:$0xff] }
 0x442   : > { %v7376_v50 = vpop.eup %4452  ;;  %v7381_v26 = vmul.f32 0.6931472, %v4451_v22  ;;  %4464 = vrcp.f32 %v7374_v40  ;;  %v3088_v15 = vand.u32 2147483648, %v7374_v40  ;;  %vm7414_vm0 = vmor %vm3097_vm11, %vm3098_vm14  ;;  %vm7421_vm3 = vcmp.eq.f32.partialorder %v3116_v12, 8.507059e+37  ;;  %v3035_v12 = vld [vmem:[#allocation4 + $0x28] sm:$0xff] }
 0x443   : > { %v4455_v60 = vpop.eup %4454  ;;  %v3125_v59 = vmul.f32 %v7338_v8, %v3124_v4  ;;  %v3094_v14 = vsub.f32 1.0, %v3093_v63  ;;  %v3063_v28 = vmul.f32 %v7376_v50, %v7327_v55  ;;  %vm3068_vm4 = vweird.f32 %v7376_v50 }
 0x444   : > { %v7391_v36 = vpop.eup %4456  ;;  %v7418_v10 = vmul.f32 0.6931472, %v4455_v60  ;;  %vm3082_vm1 = vweird.f32 %v7374_v40  ;;  %v3086_v30 = vand.u32 2147483647, %v7374_v40  ;;  %vm7442_vm11 = vmor %vm3067_vm2, %vm3068_vm4  ;;  %v7448_v46 = vor.u32 1.1754944e-38, %v3088_v15 }
 0x445   : > { %v3126_v19 = vadd.f32 %v7338_v8, %v3125_v59  ;;  %v3095_v18 = vmul.f32 %v7358_v61, %v3094_v14  ;;  %v3064_v54 = vsub.f32 1.0, %v3063_v28  ;;  %v3138_v11 = vmul.f32 %v7391_v36, %v7330_v27  ;;  %v7427_v24 = vpop.eup %4458 }
 0x446   : > { %vm3143_vm12 = vweird.f32 %v7391_v36  ;;  %v4461_v2 = vpop.eup %4460  ;;  %v3108_v53 = vmul.f32 %v7427_v24, %v7347_v57  ;;  %4466 = vlog2.f32 %v3335_v5  ;;  %vm3113_vm2 = vweird.f32 %v7427_v24 }
 0x447   : > { %v3130_v35 = vsel %vm7397_vm9, %v7338_v8, %v3126_v19  ;;  %v3096_v20 = vadd.f32 %v7358_v61, %v3095_v18  ;;  %v3065_v45 = vmul.f32 %v7376_v50, %v3064_v54  ;;  %v3139_v51 = vsub.f32 1.0, %v3138_v11  ;;  %v4463_v58 = vpop.eup %4462  ;;  %v3304_v8 = vld [vmem:[#allocation2 + $0x10] sm:$0xff]  ;;  %v3033_v19 = vld [vmem:[#allocation4 + $0x18] sm:$0xff] }
 0x448   : > { %v3135_v17 = vsel %vm7340_vm5, %v3134_v32, %v3130_v35  ;;  %v7455_v13 = vpop.eup %4464  ;;  %vm7464_vm5 = vmor %vm3142_vm6, %vm3143_vm12  ;;  %v3109_v49 = vsub.f32 1.0, %v3108_v53  ;;  %vm7469_vm13 = vcmp.eq.f32.partialorder %v3086_v30, 8.507059e+37  ;;  %4468 = vrcp.f32 %v7434_v33  ;;  %v3340_v32 = vld [vmem:[#allocation3 + $0x30] sm:$0xff] }
 0x449   : > { %v3136_v37 = vmul.f32 %v3135_v17, %v3034_v21  ;;  %v3100_v29 = vsel %vm7414_vm0, %v7358_v61, %v3096_v20  ;;  %v3066_v43 = vadd.f32 %v7376_v50, %v3065_v45  ;;  %v3140_v55 = vmul.f32 %v7391_v36, %v3139_v51  ;;  %v3302_v61 = vld [vmem:[#allocation2] sm:$0xff]  ;;  %v7522_v51 = vld [vmem:[#allocation5 + $0x38] sm:$0xff] }
 0x44a   : > { %v3105_v9 = vsel %vm7351_vm7, %v7344_v44, %v3100_v29  ;;  %v3361_v41 = vmul.f32 0.6931472, %v4461_v2  ;;  %v3110_v31 = vmul.f32 %v7427_v24, %v3109_v49  ;;  %v3078_v22 = vmul.f32 %v7455_v13, %v7374_v40  ;;  %vm7492_vm7 = vmor %vm3112_vm15, %vm3113_vm2  ;;  %v3031_v2 = vld [vmem:[#allocation4 + $0x8] sm:$0xff] }
 0x44b   : > { %v3322_v44 = vsub.f32 %v3136_v37, %v3306_v16  ;;  %v3106_v47 = vmul.f32 %v3105_v9, %v3032_v39  ;;  %v3070_v3 = vsel %vm7442_vm11, %v7376_v50, %v3066_v43  ;;  %v3141_v27 = vadd.f32 %v7391_v36, %v3140_v55  ;;  %v7532_v37 = vld [vmem:[#allocation5 + $0x30] sm:$0xff] }
 0x44c   : > { %v3075_v7 = vsel %vm7367_vm8, %v7361_v34, %v3070_v3  ;;  %v4467_v1 = vpop.eup %4466  ;;  %v3111_v14 = vadd.f32 %v7427_v24, %v3110_v31  ;;  %v3079_v28 = vsub.f32 1.0, %v3078_v22  ;;  %vm3083_vm6 = vweird.f32 %v7455_v13  ;;  %v3310_v22 = vld [vmem:[#allocation2 + $0x40] sm:$0xff] }
 0x44d   : > { %v3386_v4 = vsub.f32 %v3322_v44, %v7378_v23  ;;  %v3320_v63 = vsub.f32 %v3106_v47, %v3304_v8  ;;  %v3076_v60 = vmul.f32 %v3075_v7, %v3030_v48  ;;  %v3145_v50 = vsel %vm7464_vm5, %v7391_v36, %v3141_v27  ;;  %v3307_v23 = vld [vmem:[#allocation2 + $0x28] sm:$0xff]  ;;  %vm7515_vm14 = vmor %vm3082_vm1, %vm3083_vm6  ;;  %v3341_v8 = vld [vmem:[#allocation3 + $0x38] sm:$0xff] }
 0x44e   : > { %v3150_v59 = vsel %vm7387_vm10, %v7371_v52, %v3145_v50  ;;  %v4469_v18 = vpop.eup %4468  ;;  %v3115_v54 = vsel %vm7492_vm7, %v7427_v24, %v3111_v14  ;;  %v3357_v11 = vmul.f32 0.6931472, %v4463_v58  ;;  %v3080_v52 = vmul.f32 %v7455_v13, %v3079_v28  ;;  %v3342_v24 = vld [vmem:[#allocation3 + $0x40] sm:$0xff]  ;;  %v3303_v58 = vld [vmem:[#allocation2 + $0x8] sm:$0xff]  ;;  %v7564_v28 = vld [vmem:[#allocation5 + $0x50] sm:$0xff] }
 0x44f   : > { %v3402_v36 = vmul.f32 -1.0, %v3386_v4  ;;  %v3384_v56 = vsub.f32 %v3320_v63, %v7381_v26  ;;  %v3318_v15 = vsub.f32 %v3076_v60, %v3302_v61  ;;  %v3151_v57 = vmul.f32 %v3150_v59, %v3035_v12  ;;  %v3038_v47 = vld [vmem:[#allocation4 + $0x40] sm:$0xff]  ;;  %v7550_v12 = vld [vmem:[#allocation5 + $0x58] sm:$0xff] }
 0x450   : > { %vm3187_vm8 = vweird.f32 %v7434_v33  ;;  %v3120_v26 = vsel %vm7421_vm3, %v7402_v6, %v3115_v54  ;;  %v3081_v20 = vadd.f32 %v7455_v13, %v3080_v52  ;;  %v3191_v45 = vand.u32 2147483647, %v7434_v33  ;;  %v3345_v60 = vld [vmem:[#allocation3 + $0x58] sm:$0xff]  ;;  %v7577_v52 = vld [vmem:[#allocation5 + $0x48] sm:$0xff] }
 0x451   : > { %3436 = vperm.xlu2 %4443, %v3402_v36   ;;  %v3400_v25 = vmul.f32 -1.0, %v3384_v56  ;;  %v3382_v5 = vsub.f32 %v3318_v15, %v7418_v10  ;;  %v3323_v21 = vsub.f32 %v3151_v57, %v3307_v23  ;;  %v3121_v35 = vmul.f32 %v3120_v26, %v3033_v19 }
 0x452   : > { %v3183_v10 = vmul.f32 %v4469_v18, %v7434_v33  ;;  %vm3188_vm15 = vweird.f32 %v4469_v18  ;;  %v3193_v40 = vand.u32 2147483648, %v7434_v33  ;;  %v3085_v16 = vsel %vm7515_vm14, %v7455_v13, %v3081_v20  ;;  %v3344_v20 = vld [vmem:[#allocation3 + $0x50] sm:$0xff] }
 0x453   : > { %3426 = vperm.xlu1 %4442, %v3400_v25   ;;  %v3398_v6 = vmul.f32 -1.0, %v3382_v5  ;;  %v3387_v0 = vsub.f32 %v3323_v21, %v3361_v41  ;;  %v3321_v17 = vsub.f32 %v3121_v35, %v3305_v62  ;;  %4470 = vlog2.f32 %v3342_v24  ;;  %vm7537_vm10 = vmor %vm3187_vm8, %vm3188_vm15 }
 0x454   : > { %v3184_v39 = vsub.f32 1.0, %v3183_v10  ;;  %v3090_v53 = vsel %vm7469_vm13, %v7448_v46, %v3085_v16  ;;  %4472 = vrcp.f32 %v7522_v51  ;;  %v3353_v55 = vmul.f32 0.6931472, %v4467_v1 }
 0x455   : > { %3416 = vperm.xlu0 %4441, %v3398_v6   ;;  %v3403_v38 = vmul.f32 -1.0, %v3387_v0  ;;  %v3385_v29 = vsub.f32 %v3321_v17, %v3357_v11  ;;  %v3091_v43 = vmul.f32 %v3090_v53, %v3031_v2  ;;  %vm7541_vm9 = vcmp.eq.f32.partialorder %v3191_v45, 8.507059e+37  ;;  %v3037_v0 = vld [vmem:[#allocation4 + $0x38] sm:$0xff]  ;;  %v3039_v17 = vld [vmem:[#allocation4 + $0x48] sm:$0xff] }
 0x456   : > { %v3185_v9 = vmul.f32 %v4469_v18, %v3184_v39  ;;  %v3194_v46 = vor.u32 1.1754944e-38, %v3193_v40  ;;  %4474 = vrcp.f32 %v7532_v37  ;;  %v3176_v3 = vand.u32 2147483647, %v7522_v51 }
 0x457   : > { %v3401_v49 = vmul.f32 -1.0, %v3385_v29  ;;  %v3319_v42 = vsub.f32 %v3091_v43, %v3303_v58  ;;  %v3178_v33 = vand.u32 2147483648, %v7522_v51  ;;  %4476 = vlog2.f32 %v3341_v8  ;;  %v7608_v43 = vld [vmem:[#allocation5 + $0x70] sm:$0xff] }
 0x458   : > { %v3186_v44 = vadd.f32 %v4469_v18, %v3185_v9  ;;  %4478 = vlog2.f32 %v3340_v32  ;;  %vm3172_vm4 = vweird.f32 %v7522_v51  ;;  %v3161_v4 = vand.u32 2147483647, %v7532_v37  ;;  %v3309_v9 = vld [vmem:[#allocation2 + $0x38] sm:$0xff]  ;;  %v3036_v32 = vld [vmem:[#allocation4 + $0x30] sm:$0xff] }
 0x459   : > { %3441 = vperm.xlu2 %4443, %v3403_v38   ;;  %v4471_v27 = vpop.eup %4470  ;;  %v3383_v7 = vsub.f32 %v3319_v42, %v3353_v55  ;;  %v3163_v63 = vand.u32 2147483648, %v7532_v37  ;;  %vm7558_vm0 = vcmp.eq.f32.partialorder %v3176_v3, 8.507059e+37  ;;  %v3179_v14 = vor.u32 1.1754944e-38, %v3178_v33  ;;  %v3343_v33 = vld [vmem:[#allocation3 + $0x48] sm:$0xff] }
 0x45a   : > { %v3190_v61 = vsel %vm7537_vm10, %v4469_v18, %v3186_v44  ;;  %v4473_v41 = vpop.eup %4472  ;;  %v3367_v1 = vmul.f32 0.6931472, %v4471_v27  ;;  %vm3157_vm12 = vweird.f32 %v7532_v37  ;;  %4480 = vrcp.f32 %v7550_v12 }
 0x45b   : > { %3431 = vperm.xlu1 %4442, %v3401_v49   ;;  %v3195_v31 = vsel %vm7541_vm9, %v3194_v46, %v3190_v61  ;;  %v3399_v50 = vmul.f32 -1.0, %v3383_v7  ;;  %v3168_v59 = vmul.f32 %v4473_v41, %v7522_v51  ;;  %vm3173_vm3 = vweird.f32 %v4473_v41 }
 0x45c   : > { %v3196_v34 = vmul.f32 %v3195_v31, %v3038_v47  ;;  %v7566_v36 = vpop.eup %4474  ;;  %vm3232_vm1 = vweird.f32 %v7550_v12  ;;  %4482 = vlog2.f32 %v3345_v60  ;;  %vm7571_vm11 = vcmp.eq.f32.partialorder %v3161_v4, 8.507059e+37  ;;  %vm7582_vm5 = vmor %vm3172_vm4, %vm3173_vm3 }
 0x45d   : > { %3421 = vperm.xlu0 %4441, %v3399_v50   ;;  %v3169_v15 = vsub.f32 1.0, %v3168_v59  ;;  %v4477_v57 = vpop.eup %4476  ;;  %v3153_v19 = vmul.f32 %v7566_v36, %v7532_v37  ;;  %v3236_v54 = vand.u32 2147483647, %v7550_v12  ;;  %v3238_v11 = vand.u32 2147483648, %v7550_v12 }
 0x45e   : > { %v3326_v56 = vsub.f32 %v3196_v34, %v3310_v22  ;;  %v4479_v25 = vpop.eup %4478  ;;  %v3164_v26 = vor.u32 1.1754944e-38, %v3163_v63  ;;  %4484 = vrcp.f32 %v7564_v28  ;;  %vm3158_vm2 = vweird.f32 %v7566_v36  ;;  %v3316_v63 = vld [vmem:[#allocation2 + $0x70] sm:$0xff] }
 0x45f   : > { %v3170_v21 = vmul.f32 %v4473_v41, %v3169_v15  ;;  %v3154_v30 = vsub.f32 1.0, %v3153_v19  ;;  %vm3217_vm13 = vweird.f32 %v7564_v28  ;;  %v3221_v24 = vand.u32 2147483647, %v7564_v28  ;;  %vm7602_vm6 = vmor %vm3157_vm12, %vm3158_vm2 }
 0x460   : > { %v3390_v5 = vsub.f32 %v3326_v56, %v3367_v1  ;;  %v3223_v35 = vand.u32 2147483648, %v7564_v28  ;;  %v3365_v6 = vmul.f32 0.6931472, %v4477_v57  ;;  %4486 = vrcp.f32 %v7577_v52  ;;  %v4481_v51 = vpop.eup %4480  ;;  %v3348_v57 = vld [vmem:[#allocation3 + $0x70] sm:$0xff] }
 0x461   : > { %v3171_v45 = vadd.f32 %v4473_v41, %v3170_v21  ;;  %v3155_v2 = vmul.f32 %v7566_v36, %v3154_v30  ;;  %v3363_v40 = vmul.f32 0.6931472, %v4479_v25  ;;  %vm7592_vm7 = vcmp.eq.f32.partialorder %v3236_v54, 8.507059e+37  ;;  %v3313_v21 = vld [vmem:[#allocation2 + $0x58] sm:$0xff]  ;;  %v7650_v30 = vld [vmem:[#allocation5 + $0x68] sm:$0xff] }
 0x462   : > { %v3406_v10 = vmul.f32 -1.0, %v3390_v5  ;;  %v3239_v16 = vor.u32 1.1754944e-38, %v3238_v11  ;;  %v4483_v39 = vpop.eup %4482  ;;  %v3228_v58 = vmul.f32 %v4481_v51, %v7550_v12  ;;  %4488 = vlog2.f32 %v3344_v20 }
 0x463   : > { %v3175_v38 = vsel %vm7582_vm5, %v4473_v41, %v3171_v45  ;;  %v3206_v29 = vand.u32 2147483647, %v7577_v52  ;;  %v3156_v8 = vadd.f32 %v7566_v36, %v3155_v2  ;;  %vm7613_vm8 = vcmp.eq.f32.partialorder %v3221_v24, 8.507059e+37  ;;  %v3308_v41 = vld [vmem:[#allocation2 + $0x30] sm:$0xff] }
 0x464   : > { %3456 = vperm.xlu2 %4443, %v3406_v10   ;;  %v3180_v55 = vsel %vm7558_vm0, %v3179_v14, %v3175_v38  ;;  %v3224_v37 = vor.u32 1.1754944e-38, %v3223_v35  ;;  %vm3202_vm14 = vweird.f32 %v7577_v52  ;;  %v4485_v48 = vpop.eup %4484  ;;  %v3229_v49 = vsub.f32 1.0, %v3228_v58  ;;  %v3040_v24 = vld [vmem:[#allocation4 + $0x50] sm:$0xff] }
 0x465   : > { %v3181_v46 = vmul.f32 %v3180_v55, %v3037_v0  ;;  %vm3233_vm15 = vweird.f32 %v4481_v51  ;;  %v3208_v42 = vand.u32 2147483648, %v7577_v52  ;;  %v3160_v44 = vsel %vm7602_vm6, %v7566_v36, %v3156_v8  ;;  %v3041_v36 = vld [vmem:[#allocation4 + $0x58] sm:$0xff]  ;;  %v3311_v55 = vld [vmem:[#allocation2 + $0x48] sm:$0xff]  ;;  %v7670_v8 = vld [vmem:[#allocation5 + $0x60] sm:$0xff] }
 0x466   : > { %v3373_v47 = vmul.f32 0.6931472, %v4483_v39  ;;  %v3213_v3 = vmul.f32 %v4485_v48, %v7564_v28  ;;  %4490 = vrcp.f32 %v7608_v43  ;;  %v4487_v27 = vpop.eup %4486  ;;  %v3165_v61 = vsel %vm7571_vm11, %v3164_v26, %v3160_v44  ;;  %vm7632_vm9 = vmor %vm3232_vm1, %vm3233_vm15 }
 0x467   : > { %v3325_v7 = vsub.f32 %v3181_v46, %v3309_v9  ;;  %v3230_v31 = vmul.f32 %v4481_v51, %v3229_v49  ;;  %vm7626_vm10 = vcmp.eq.f32.partialorder %v3206_v29, 8.507059e+37  ;;  %v3166_v4 = vmul.f32 %v3165_v61, %v3036_v32 }
 0x468   : > { %v3214_v60 = vsub.f32 1.0, %v3213_v3  ;;  %vm3218_vm4 = vweird.f32 %v4485_v48  ;;  %v3198_v50 = vmul.f32 %v4487_v27, %v7577_v52  ;;  %v4489_v34 = vpop.eup %4488  ;;  %v3209_v23 = vor.u32 1.1754944e-38, %v3208_v42 }
 0x469   : > { %v3389_v1 = vsub.f32 %v3325_v7, %v3365_v6  ;;  %v3231_v59 = vadd.f32 %v4481_v51, %v3230_v31  ;;  %4492 = vlog2.f32 %v3343_v33  ;;  %v3324_v14 = vsub.f32 %v3166_v4, %v3308_v41  ;;  %vm7642_vm12 = vmor %vm3217_vm13, %vm3218_vm4  ;;  %v3044_v33 = vld [vmem:[#allocation4 + $0x70] sm:$0xff]  ;;  %v7684_v41 = vld [vmem:[#allocation5 + $0x78] sm:$0xff] }
 0x46a   : > { %v3215_v56 = vmul.f32 %v4485_v48, %v3214_v60  ;;  %v3199_v15 = vsub.f32 1.0, %v3198_v50  ;;  %vm3203_vm0 = vweird.f32 %v4487_v27  ;;  %vm3277_vm3 = vweird.f32 %v7608_v43 }
 0x46b   : > { %v3405_v12 = vmul.f32 -1.0, %v3389_v1  ;;  %v3235_v19 = vsel %vm7632_vm9, %v4481_v51, %v3231_v59  ;;  %v3281_v54 = vand.u32 2147483647, %v7608_v43  ;;  %v3388_v25 = vsub.f32 %v3324_v14, %v3363_v40  ;;  %vm7655_vm1 = vmor %vm3202_vm14, %vm3203_vm0  ;;  %v3312_v40 = vld [vmem:[#allocation2 + $0x50] sm:$0xff] }
 0x46c   : > { %v4491_v11 = vpop.eup %4490  ;;  %v3240_v5 = vsel %vm7592_vm7, %v3239_v16, %v3235_v19  ;;  %v3216_v26 = vadd.f32 %v4485_v48, %v3215_v56  ;;  %v3200_v62 = vmul.f32 %v4487_v27, %v3199_v15  ;;  %v3283_v10 = vand.u32 2147483648, %v7608_v43 }
 0x46d   : > { %3451 = vperm.xlu1 %4442, %v3405_v12   ;;  %v3241_v28 = vmul.f32 %v3240_v5, %v3041_v36  ;;  %v3273_v20 = vmul.f32 %v4491_v11, %v7608_v43  ;;  %4494 = vlog2.f32 %v3348_v57  ;;  %v3404_v45 = vmul.f32 -1.0, %v3388_v25  ;;  %v3346_v36 = vld [vmem:[#allocation3 + $0x60] sm:$0xff] }
 0x46e   : > { %v3220_v6 = vsel %vm7642_vm12, %v4485_v48, %v3216_v26  ;;  %v3201_v51 = vadd.f32 %v4487_v27, %v3200_v62  ;;  %vm3278_vm11 = vweird.f32 %v4491_v11  ;;  %4496 = vrcp.f32 %v7650_v30  ;;  %v3043_v26 = vld [vmem:[#allocation4 + $0x68] sm:$0xff] }
 0x46f   : > { %v4493_v0 = vpop.eup %4492  ;;  %v3329_v2 = vsub.f32 %v3241_v28, %v3313_v21  ;;  %v3225_v52 = vsel %vm7613_vm8, %v3224_v37, %v3220_v6  ;;  %v3274_v16 = vsub.f32 1.0, %v3273_v20  ;;  %3446 = vperm.xlu0 %4441, %v3404_v45   ;;  %v3371_v38 = vmul.f32 0.6931472, %v4489_v34  ;;  %vm7675_vm5 = vmor %vm3277_vm3, %vm3278_vm11  ;;  %v3349_v28 = vld [vmem:[#allocation3 + $0x78] sm:$0xff]  ;;  %v3315_v45 = vld [vmem:[#allocation2 + $0x68] sm:$0xff] }
 0x470   : > { %v3226_v39 = vmul.f32 %v3225_v52, %v3040_v24  ;;  %v3205_v53 = vsel %vm7655_vm1, %v4487_v27, %v3201_v51  ;;  %v3369_v48 = vmul.f32 0.6931472, %v4493_v0  ;;  %v3284_v32 = vor.u32 1.1754944e-38, %v3283_v10  ;;  %v3347_v27 = vld [vmem:[#allocation3 + $0x68] sm:$0xff] }
 0x471   : > { %v3393_v58 = vsub.f32 %v3329_v2, %v3373_v47  ;;  %v3210_v29 = vsel %vm7626_vm10, %v3209_v23, %v3205_v53  ;;  %v3275_v9 = vmul.f32 %v4491_v11, %v3274_v16  ;;  %vm3282_vm2 = vcmp.eq.f32.partialorder %v3281_v54, 8.507059e+37  ;;  %v3042_v53 = vld [vmem:[#allocation4 + $0x60] sm:$0xff] }
 0x472   : > { %v3328_v13 = vsub.f32 %v3226_v39, %v3312_v40  ;;  %v3211_v37 = vmul.f32 %v3210_v29, %v3039_v17  ;;  %4498 = vrcp.f32 %v7670_v8  ;;  %vm3262_vm13 = vweird.f32 %v7650_v30 }
 0x473   : > { %v4495_v49 = vpop.eup %4494  ;;  %v3409_v42 = vmul.f32 -1.0, %v3393_v58  ;;  %v3276_v44 = vadd.f32 %v4491_v11, %v3275_v9  ;;  %v3266_v61 = vand.u32 2147483647, %v7650_v30  ;;  %v3268_v1 = vand.u32 2147483648, %v7650_v30 }
 0x474   : > { %v3392_v47 = vsub.f32 %v3328_v13, %v3371_v38  ;;  %v3327_v3 = vsub.f32 %v3211_v37, %v3311_v55  ;;  %v4497_v7 = vpop.eup %4496  ;;  %v3379_v34 = vmul.f32 0.6931472, %v4495_v49  ;;  %4500 = vlog2.f32 %v3347_v27  ;;  %v3314_v13 = vld [vmem:[#allocation2 + $0x60] sm:$0xff] }
 0x475   : > { %3471 = vperm.xlu2 %4443, %v3409_v42   ;;  %v3280_v43 = vsel %vm7675_vm5, %v4491_v11, %v3276_v44  ;;  %v3258_v60 = vmul.f32 %v4497_v7, %v7650_v30  ;;  %vm3263_vm7 = vweird.f32 %v4497_v7  ;;  %4502 = vrcp.f32 %v7684_v41  ;;  %v3045_v42 = vld [vmem:[#allocation4 + $0x78] sm:$0xff] }
 0x476   : > { %v3408_v31 = vmul.f32 -1.0, %v3392_v47  ;;  %v3391_v22 = vsub.f32 %v3327_v3, %v3369_v48  ;;  %v3285_v4 = vsel %vm3282_vm2, %v3284_v32, %v3280_v43  ;;  %v3251_v57 = vand.u32 2147483647, %v7670_v8  ;;  %vm7693_vm6 = vmor %vm3262_vm13, %vm3263_vm7 }
 0x477   : > { %v3286_v50 = vmul.f32 %v3285_v4, %v3044_v33  ;;  %v3259_v23 = vsub.f32 1.0, %v3258_v60  ;;  %v3253_v12 = vand.u32 2147483648, %v7670_v8  ;;  %v3269_v54 = vor.u32 1.1754944e-38, %v3268_v1  ;;  %v3317_v33 = vld [vmem:[#allocation2 + $0x78] sm:$0xff] }
 0x478   : > { %3466 = vperm.xlu1 %4442, %v3408_v31   ;;  %v3407_v59 = vmul.f32 -1.0, %v3391_v22  ;;  %v4499_v56 = vpop.eup %4498  ;;  %vm3267_vm8 = vcmp.eq.f32.partialorder %v3266_v61, 8.507059e+37  ;;  %4504 = vlog2.f32 %v3346_v36  ;;  %vm3247_vm14 = vweird.f32 %v7670_v8 }
 0x479   : > { %v3332_v14 = vsub.f32 %v3286_v50, %v3316_v63  ;;  %v3260_v15 = vmul.f32 %v4497_v7, %v3259_v23  ;;  %v3243_v11 = vmul.f32 %v4499_v56, %v7670_v8  ;;  %vm3248_vm15 = vweird.f32 %v4499_v56 }
 0x47a   : > { %3461 = vperm.xlu0 %4441, %v3407_v59   ;;  %v4501_v5 = vpop.eup %4500  ;;  %vm7701_vm10 = vcmp.eq.f32.partialorder %v3251_v57, 8.507059e+37  ;;  %v3254_v20 = vor.u32 1.1754944e-38, %v3253_v12  ;;  %vm3292_vm9 = vweird.f32 %v7684_v41  ;;  %vm3249_vm4 = vmor %vm3247_vm14, %vm3248_vm15  ;;  %v3298_v52 = vand.u32 2147483648, %v7684_v41 }
 0x47b   : > { %v3396_v19 = vsub.f32 %v3332_v14, %v3379_v34  ;;  %v3261_v25 = vadd.f32 %v4497_v7, %v3260_v15  ;;  %v3244_v62 = vsub.f32 1.0, %v3243_v11  ;;  %v4503_v24 = vpop.eup %4502  ;;  %v3377_v2 = vmul.f32 0.6931472, %v4501_v5 }
 0x47c   : > { %v3288_v51 = vmul.f32 %v4503_v24, %v7684_v41  ;;  %4506 = vlog2.f32 %v3349_v28  ;;  %vm3293_vm0 = vweird.f32 %v4503_v24  ;;  %v3296_v16 = vand.u32 2147483647, %v7684_v41 }
 0x47d   : > { %v3412_v21 = vmul.f32 -1.0, %v3396_v19  ;;  %v3265_v30 = vsel %vm7693_vm6, %v4497_v7, %v3261_v25  ;;  %v3245_v6 = vmul.f32 %v4499_v56, %v3244_v62  ;;  %vm3294_vm12 = vmor %vm3292_vm9, %vm3293_vm0  ;;  %v3299_v8 = vor.u32 1.1754944e-38, %v3298_v52 }
 0x47e   : > { %v3270_v10 = vsel %vm3267_vm8, %v3269_v54, %v3265_v30  ;;  %v3289_v17 = vsub.f32 1.0, %v3288_v51  ;;  %v4505_v39 = vpop.eup %4504  ;;  %vm3297_vm3 = vcmp.eq.f32.partialorder %v3296_v16, 8.507059e+37 }
 0x47f   : > { %3486 = vperm.xlu2 %4443, %v3412_v21   ;;  %v3271_v0 = vmul.f32 %v3270_v10, %v3043_v26  ;;  %v3246_v40 = vadd.f32 %v4499_v56, %v3245_v6  ;;  %v3375_v48 = vmul.f32 0.6931472, %v4505_v39 }
 0x480   : > { %v3290_v29 = vmul.f32 %v4503_v24, %v3289_v17 }
 0x481   : > { %v3331_v38 = vsub.f32 %v3271_v0, %v3315_v45  ;;  %v3250_v58 = vsel %vm3249_vm4, %v4499_v56, %v3246_v40 }
 0x482   : > { %v3255_v9 = vsel %vm7701_vm10, %v3254_v20, %v3250_v58  ;;  %v3291_v46 = vadd.f32 %v4503_v24, %v3290_v29  ;;  %v4507_v32 = vpop.eup %4506 }
 0x483   : > { %v3395_v55 = vsub.f32 %v3331_v38, %v3377_v2  ;;  %v3256_v37 = vmul.f32 %v3255_v9, %v3042_v53  ;;  %v3381_v43 = vmul.f32 0.6931472, %v4507_v32 }
 0x484   : > { %v3295_v47 = vsel %vm3294_vm12, %v4503_v24, %v3291_v46 }
 0x485   : > { %v3411_v49 = vmul.f32 -1.0, %v3395_v55  ;;  %v3330_v44 = vsub.f32 %v3256_v37, %v3314_v13  ;;  %v3300_v3 = vsel %vm3297_vm3, %v3299_v8, %v3295_v47 }
 0x486   : > { %v3301_v7 = vmul.f32 %v3300_v3, %v3045_v42 }
 0x487   : > { %3481 = vperm.xlu1 %4442, %v3411_v49   ;;  %v3394_v27 = vsub.f32 %v3330_v44, %v3375_v48 }
 0x488   : > { %v3333_v31 = vsub.f32 %v3301_v7, %v3317_v33 }
 0x489   : > { %v3410_v61 = vmul.f32 -1.0, %v3394_v27 }
 0x48a   : > { %v3397_v41 = vsub.f32 %v3333_v31, %v3381_v43 }
 0x48b   : > { %3476 = vperm.xlu0 %4441, %v3410_v61  }
 0x48c   : > { %v3413_v22 = vmul.f32 -1.0, %v3397_v41 }
 0x493   : > { %3491 = vperm.xlu0 %4441, %v3413_v22  }
 0x4ab   : > { %v3437_v4 = vpop.permute.xlu2 %3436 }
 0x4ac   : > { %3498 = vst [vmem:[#allocation13 + $0x20] sm:$0xff] %v3437_v4 }
 0x4b3   : > { %v3442_v63 = vpop.permute.xlu2 %3441 }
 0x4b4   : > { %3499 = vst [vmem:[#allocation13 + $0x28] sm:$0xff] %v3442_v63 }
 0x4be   : > { %v3457_v60 = vpop.permute.xlu2 %3456 }
 0x4bf   : > { %3502 = vst [vmem:[#allocation13 + $0x40] sm:$0xff] %v3457_v60 }
 0x4c5   : > { %v3427_v50 = vpop.permute.xlu1 %3426 }
 0x4c6   : > { %3496 = vst [vmem:[#allocation13 + $0x10] sm:$0xff] %v3427_v50 }
 0x4c7   : > { %v3417_v34 = vpop.permute.xlu0 %3416 }
 0x4c8   : > { %3494 = vst [vmem:[#allocation13] sm:$0xff] %v3417_v34 }
 0x4cd   : > { %v3432_v1 = vpop.permute.xlu1 %3431 }
 0x4ce   : > { %3497 = vst [vmem:[#allocation13 + $0x18] sm:$0xff] %v3432_v1 }
 0x4cf   : > { %v3472_v59 = vpop.permute.xlu2 %3471  ;;  %v3422_v23 = vpop.permute.xlu0 %3421 }
 0x4d0   : > { %3505 = vst [vmem:[#allocation13 + $0x58] sm:$0xff] %v3472_v59 }
 0x4d1   : > { %3495 = vst [vmem:[#allocation13 + $0x8] sm:$0xff] %v3422_v23 }
 0x4d9   : > { %v3487_v14 = vpop.permute.xlu2 %3486 }
 0x4da   : > { %3508 = vst [vmem:[#allocation13 + $0x70] sm:$0xff] %v3487_v14 }
 0x4df   : > { %v3452_v36 = vpop.permute.xlu1 %3451 }
 0x4e0   : > { %3501 = vst [vmem:[#allocation13 + $0x38] sm:$0xff] %v3452_v36 }
 0x4e1   : > { %v3447_v56 = vpop.permute.xlu0 %3446 }
 0x4e2   : > { %3500 = vst [vmem:[#allocation13 + $0x30] sm:$0xff] %v3447_v56 }
 0x4ea   : > { %v3467_v15 = vpop.permute.xlu1 %3466 }
 0x4eb   : > { %3504 = vst [vmem:[#allocation13 + $0x50] sm:$0xff] %v3467_v15 }
 0x4ec   : > { %v3462_v57 = vpop.permute.xlu0 %3461 }
 0x4ed   : > { %3503 = vst [vmem:[#allocation13 + $0x48] sm:$0xff] %v3462_v57 }
 0x4f9   : > { %v3482_v12 = vpop.permute.xlu1 %3481 }
 0x4fa   : > { %3507 = vst [vmem:[#allocation13 + $0x68] sm:$0xff] %v3482_v12 }
 0x4fd   : > { %v3477_v19 = vpop.permute.xlu0 %3476 }
 0x4fe   : > { %3506 = vst [vmem:[#allocation13 + $0x60] sm:$0xff] %v3477_v19 }
 0x505   : > { %v3492_v18 = vpop.permute.xlu0 %3491 }
 0x506   : > { %3509 = vst [vmem:[#allocation13 + $0x78] sm:$0xff] %v3492_v18 }
 0x507 PF: > { %p4216_p3 = scmp.eq.s32.totalorder %s4786_s21, 1  ;;  %s3520_s14 = sshll.u32 %s7741_s4, 4  ;;  %s3521_s14 = int_to_ptr.hbm [resolvable:$true] %s3520_s14 }
 0x508   : > { %s4729_s25 = smov [#allocation13]   ;;  %s4730_s11 = smov 128  }
 0x509   : > { %s3518_s28 = sshll.u32 %s4729_s25, 4  ;;  %s4731_s15 = smov 8   ;;  %s3519_s28 = int_to_ptr.vmem [resolvable:$true] %s3518_s28 }
 0x50a   : > { %4194 = dma.vmem_to_hbm [thread:$0]  (%p4216_p3), %s3519_s28, 2048, %s3521_s14, [#allocation8], %s4730_s11, %s4730_s11, %s4731_s15  }
 0x50b   : > { %4693 = dma.done.wait (%p4216_p3), [#allocation8], 2048  }
 0x50c   : > { %4695 = vsyncadd (%p4216_p3), [#allocation8], 4294965248 }
 0x50d PF: > { %s17_s20 = sadd.s32 1, %s4718_s20   ;;  %s8706_s15 = smov %s4702_s16 }
 0x50e   : > { %p14_p4 = scmp.ge.s32.totalorder %s17_s20, 4   ;;  %s8707_s16 = smov %s4706_s17 }
 0x50f   : > { %s8708_s17 = smov %s4836_s13  ;;  %s8709_s18 = smov %s4714_s19 }
 0x510   : > { %s8710_s19 = smov %s8712_s6  ;;  %16 = sbr.rel (!%p14_p4) target bundleno = 8 (0x8), region = 102 }
 0x515   :  { %3537 = vsyncpa [#allocation7], 1 }
 0x516   :  { %3539 = vsyncpa [#allocation7 + $0x1], 1 }
 0x517   :  { %3540 = vsyncpa [#allocation10], 1 }
 0x518   :  { %3541 = vsyncpa [#allocation8], 1 }
 0x519   :  { %3543 = vsyncpa [#allocation8 + $0x1], 1 }

</bundles_post_ra>
